<compile_context>
chip_gen: v7x
topology: tpu7x:2x2x1
jax: 0.10.0
libtpu: 0.0.40
codegen_flags: <defaults>
</compile_context>

<pallas_src>
import functools

import jax
import jax.numpy as jnp
from jax.experimental import pallas as pl
from jax.experimental.pallas import tpu as pltpu


def _layernorm(x, gamma, beta, eps=1e-5):
    # x: (N, C) f32, gamma/beta: (1, C) f32.  eps matches nn.LayerNorm default.
    mean = jnp.mean(x, axis=-1, keepdims=True)
    var = jnp.mean((x - mean) ** 2, axis=-1, keepdims=True)
    inv = jax.lax.rsqrt(var + eps)
    return (x - mean) * inv * gamma + beta


def _gelu_exact(x):
    # nn.GELU() default: exact erf formulation
    return 0.5 * x * (1.0 + jax.lax.erf(x / jnp.sqrt(2.0).astype(x.dtype)))


def transformer_block_kernel(
    x_ref,                    # (1, N, C)  f32
    ln1_g_ref, ln1_b_ref,     # (1, C)     f32
    ln2_g_ref, ln2_b_ref,     # (1, C)     f32
    wq_ref, wk_ref, wv_ref,   # (h, C, d)  bf16   (softmax scale folded into wq)
    wo_ref,                   # (h, d, C)  bf16
    bo_ref,                   # (1, C)     f32
    w1_ref, b1_ref,           # (C, H) bf16, (1, H) f32
    w2_ref, b2_ref,           # (H, C) bf16, (1, C) f32
    o_ref,                    # (1, N, C)
    *, num_heads: int,
):
    xb = x_ref[0].astype(jnp.float32)                 # (N, C)
    N, C = xb.shape

    # ---- attention branch: attn(norm1(x)) ----
    h1 = _layernorm(xb, ln1_g_ref[...], ln1_b_ref[...])   # (N, C) f32
    h1_bf = h1.astype(jnp.bfloat16)

    acc = jnp.zeros((N, C), jnp.float32)              # attention output (pre-bias)
    for hh in range(num_heads):                       # static unroll; leading-axis weight index
        qh = jnp.dot(h1_bf, wq_ref[hh],
                     preferred_element_type=jnp.float32).astype(jnp.bfloat16)  # (N, d), pre-scaled
        kh = jnp.dot(h1_bf, wk_ref[hh],
                     preferred_element_type=jnp.float32).astype(jnp.bfloat16)  # (N, d)
        vh = jnp.dot(h1_bf, wv_ref[hh],
                     preferred_element_type=jnp.float32).astype(jnp.bfloat16)  # (N, d)

        # scores[q, k] = qh[q, :] . kh[k, :]   (contract last dims, no explicit transpose)
        scores = jax.lax.dot_general(
            qh, kh, (((1,), (1,)), ((), ())),
            preferred_element_type=jnp.float32)       # (N, N) f32

        m = jnp.max(scores, axis=-1, keepdims=True)
        p = jnp.exp(scores - m)
        denom = jnp.sum(p, axis=-1, keepdims=True)
        probs = (p * pl.reciprocal(denom, approx=True)).astype(jnp.bfloat16)

        oh = jnp.dot(probs, vh, preferred_element_type=jnp.float32).astype(jnp.bfloat16)  # (N, d)
        # accumulate the output projection per head (sublane-sliced weight, lane-dense acc)
        acc = acc + jnp.dot(oh, wo_ref[hh], preferred_element_type=jnp.float32)           # (N, C)

    x1 = xb + acc + bo_ref[...]                       # residual 1 (f32)

    # ---- MLP branch: mlp(norm2(x1)) ----
    h2 = _layernorm(x1, ln2_g_ref[...], ln2_b_ref[...])
    m1 = jnp.dot(h2.astype(jnp.bfloat16), w1_ref[...],
                 preferred_element_type=jnp.float32) + b1_ref[...]
    g = _gelu_exact(m1)
    # dropout (eval) = identity
    m2 = jnp.dot(g.astype(jnp.bfloat16), w2_ref[...],
                 preferred_element_type=jnp.float32) + b2_ref[...]
    # dropout (eval) = identity

    out = x1 + m2                                     # residual 2
    o_ref[0] = out.astype(o_ref.dtype)


def transformer_block(x, params, num_heads):
    B, N, C = x.shape
    H = params["w1"].shape[1]
    d = C // num_heads
    scale = d ** (-0.5)
    bf = jnp.bfloat16

    # Pre-split qkv / output-projection weights per head (done once at the XLA level):
    #   wqkv (C, 3C) columns ordered (qkv, head, d)  ->  (3, heads, C, d)
    wqkv = params["wqkv"].astype(jnp.float32).reshape(C, 3, num_heads, d).transpose(1, 2, 0, 3)
    wq = (wqkv[0] * scale).astype(bf)                 # fold softmax scale into Wq
    wk = wqkv[1].astype(bf)
    wv = wqkv[2].astype(bf)
    wo = params["wo"].astype(bf).reshape(num_heads, d, C)
    w1 = params["w1"].astype(bf)
    w2 = params["w2"].astype(bf)

    weights = [
        params["ln1_g"], params["ln1_b"],
        params["ln2_g"], params["ln2_b"],
        wq, wk, wv, wo, params["bo"],
        w1, params["b1"], w2, params["b2"],
    ]

    def const_spec(arr):
        nd = arr.ndim
        return pl.BlockSpec(arr.shape, lambda b, _nd=nd: (0,) * _nd)

    kernel = functools.partial(transformer_block_kernel, num_heads=num_heads)

    flops = B * N * (8 * C * C + 4 * N * C + 4 * C * H)
    transcendentals = B * (num_heads * N * N + N * H)
    bytes_accessed = (2 * B * N * C * 4                       # x in + out (f32)
                      + (3 * C * C + C * C + 2 * C * H) * 2   # bf16 weights
                      + (6 * C + H) * 4)                      # LN params + biases

    return pl.pallas_call(
        kernel,
        out_shape=jax.ShapeDtypeStruct((B, N, C), x.dtype),
        grid_spec=pltpu.PrefetchScalarGridSpec(
            num_scalar_prefetch=0,
            grid=(B,),
            in_specs=[pl.BlockSpec((1, N, C), lambda b: (b, 0, 0))]
                     + [const_spec(w) for w in weights],
            out_specs=pl.BlockSpec((1, N, C), lambda b: (b, 0, 0)),
        ),
        compiler_params=pltpu.CompilerParams(
            dimension_semantics=("parallel",),
            vmem_limit_bytes=48 * 1024 * 1024,
        ),
        cost_estimate=pl.CostEstimate(
            flops=flops,
            transcendentals=transcendentals,
            bytes_accessed=bytes_accessed,
        ),
    )(x, *weights)


def init_params(key, dim, num_heads, mlp_dim):
    ks = jax.random.split(key, 6)
    std = 0.02
    bf = jnp.bfloat16
    return {
        "ln1_g": jnp.ones((1, dim), jnp.float32),
        "ln1_b": jnp.zeros((1, dim), jnp.float32),
        "ln2_g": jnp.ones((1, dim), jnp.float32),
        "ln2_b": jnp.zeros((1, dim), jnp.float32),
        # stored pre-transposed (y = x @ W + b); matmul weights kept in bf16
        "wqkv": (std * jax.random.normal(ks[0], (dim, 3 * dim), jnp.float32)).astype(bf),
        "wo":   (std * jax.random.normal(ks[1], (dim, dim), jnp.float32)).astype(bf),
        "bo":   std * jax.random.normal(ks[2], (1, dim), jnp.float32),
        "w1":   (std * jax.random.normal(ks[3], (dim, mlp_dim), jnp.float32)).astype(bf),
        "b1":   std * jax.random.normal(ks[4], (1, mlp_dim), jnp.float32),
        "w2":   (std * jax.random.normal(ks[5], (mlp_dim, dim), jnp.float32)).astype(bf),
        "b2":   jnp.zeros((1, dim), jnp.float32),
    }


def reference_block(x, params, num_heads):
    # Pure-JAX f32 reference of the same forward pass (same bf16-stored weight values).
    B, N, C = x.shape
    d = C // num_heads
    scale = d ** (-0.5)
    f32 = lambda a: a.astype(jnp.float32)

    def ln(v, g, b, eps=1e-5):
        mu = jnp.mean(v, -1, keepdims=True)
        var = jnp.mean((v - mu) ** 2, -1, keepdims=True)
        return (v - mu) / jnp.sqrt(var + eps) * g + b

    h = ln(x, params["ln1_g"], params["ln1_b"])
    qkv = h @ f32(params["wqkv"])                        # (B, N, 3C)
    qkv = qkv.reshape(B, N, 3, num_heads, d).transpose(2, 0, 3, 1, 4)
    q, k, v = qkv[0], qkv[1], qkv[2]                     # (B, h, N, d)
    attn = jnp.einsum("bhqd,bhkd->bhqk", q, k) * scale
    attn = jax.nn.softmax(attn, axis=-1)
    out = jnp.einsum("bhqk,bhkd->bhqd", attn, v)
    out = out.transpose(0, 2, 1, 3).reshape(B, N, C)
    x1 = x + out @ f32(params["wo"]) + params["bo"]

    h2 = ln(x1, params["ln2_g"], params["ln2_b"])
    m = h2 @ f32(params["w1"]) + params["b1"]
    m = 0.5 * m * (1.0 + jax.lax.erf(m / jnp.sqrt(2.0)))
    m = m @ f32(params["w2"]) + params["b2"]
    return x1 + m


if __name__ == "__main__":
    # Lane/MXU-friendly (but still small) sizes: C multiple of 128, N multiple of 8.
    B, N, dim = 2, 128, 128
    num_heads, mlp_dim = 4, 256

    key = jax.random.PRNGKey(0)
    kx, kp = jax.random.split(key)
    x = jax.random.normal(kx, (B, N, dim), jnp.float32)
    params = init_params(kp, dim, num_heads, mlp_dim)

    out = transformer_block(x, params, num_heads)
    out = jax.block_until_ready(out)

    ref = reference_block(x, params, num_heads)
    assert out.shape == (B, N, dim)
    # bf16 matmul inputs + approx reciprocal -> small expected deviation vs f32 reference.
    max_err = float(jnp.max(jnp.abs(out - ref)))
    assert jnp.allclose(out, ref, atol=2e-2, rtol=2e-2), f"max_err={max_err}"

    print("KERNEL_OK")
</pallas_src>

<mosaic_0001>
module attributes {stable_mosaic.version = 11 : i64} {
  func.func @transformer_block_kernel(%arg0: i32, %arg1: memref<1x128x128xf32, #tpu.memory_space<vmem>>, %arg2: memref<1x128xf32, #tpu.memory_space<vmem>>, %arg3: memref<1x128xf32, #tpu.memory_space<vmem>>, %arg4: memref<1x128xf32, #tpu.memory_space<vmem>>, %arg5: memref<1x128xf32, #tpu.memory_space<vmem>>, %arg6: memref<4x128x32xbf16, #tpu.memory_space<vmem>>, %arg7: memref<4x128x32xbf16, #tpu.memory_space<vmem>>, %arg8: memref<4x128x32xbf16, #tpu.memory_space<vmem>>, %arg9: memref<4x32x128xbf16, #tpu.memory_space<vmem>>, %arg10: memref<1x128xf32, #tpu.memory_space<vmem>>, %arg11: memref<128x256xbf16, #tpu.memory_space<vmem>>, %arg12: memref<1x256xf32, #tpu.memory_space<vmem>>, %arg13: memref<256x128xbf16, #tpu.memory_space<vmem>>, %arg14: memref<1x128xf32, #tpu.memory_space<vmem>>, %arg15: memref<1x128x128xf32, #tpu.memory_space<vmem>>) attributes {dimension_semantics = [#tpu.dimension_semantics<parallel>], iteration_bounds = array<i64: 2>, scalar_prefetch = 0 : i64, scratch_operands = 0 : i64, tpu.core_type = #tpu.core_type<tc>, window_params = [{transform_indices = @transform_0, window_bounds = array<i64: 1, 128, 128>}, {pipeline_mode = #tpu.pipeline_mode<synchronous>, transform_indices = @transform_1, window_bounds = array<i64: 1, 128>}, {pipeline_mode = #tpu.pipeline_mode<synchronous>, transform_indices = @transform_2, window_bounds = array<i64: 1, 128>}, {pipeline_mode = #tpu.pipeline_mode<synchronous>, transform_indices = @transform_3, window_bounds = array<i64: 1, 128>}, {pipeline_mode = #tpu.pipeline_mode<synchronous>, transform_indices = @transform_4, window_bounds = array<i64: 1, 128>}, {pipeline_mode = #tpu.pipeline_mode<synchronous>, transform_indices = @transform_5, window_bounds = array<i64: 4, 128, 32>}, {pipeline_mode = #tpu.pipeline_mode<synchronous>, transform_indices = @transform_6, window_bounds = array<i64: 4, 128, 32>}, {pipeline_mode = #tpu.pipeline_mode<synchronous>, transform_indices = @transform_7, window_bounds = array<i64: 4, 128, 32>}, {pipeline_mode = #tpu.pipeline_mode<synchronous>, transform_indices = @transform_8, window_bounds = array<i64: 4, 32, 128>}, {pipeline_mode = #tpu.pipeline_mode<synchronous>, transform_indices = @transform_9, window_bounds = array<i64: 1, 128>}, {pipeline_mode = #tpu.pipeline_mode<synchronous>, transform_indices = @transform_10, window_bounds = array<i64: 128, 256>}, {pipeline_mode = #tpu.pipeline_mode<synchronous>, transform_indices = @transform_11, window_bounds = array<i64: 1, 256>}, {pipeline_mode = #tpu.pipeline_mode<synchronous>, transform_indices = @transform_12, window_bounds = array<i64: 256, 128>}, {pipeline_mode = #tpu.pipeline_mode<synchronous>, transform_indices = @transform_13, window_bounds = array<i64: 1, 128>}, {transform_indices = @transform_14, window_bounds = array<i64: 1, 128, 128>}]} {
    %c0 = arith.constant 0 : index
    %c0_0 = arith.constant 0 : index
    %c0_1 = arith.constant 0 : index
    %0 = vector.load %arg1[%c0, %c0_0, %c0_1] : memref<1x128x128xf32, #tpu.memory_space<vmem>>, vector<1x128x128xf32>
    %1 = vector.shape_cast %0 : vector<1x128x128xf32> to vector<128x128xf32>
    %c0_2 = arith.constant 0 : index
    %c0_3 = arith.constant 0 : index
    %2 = vector.load %arg2[%c0_2, %c0_3] : memref<1x128xf32, #tpu.memory_space<vmem>>, vector<1x128xf32>
    %c0_4 = arith.constant 0 : index
    %c0_5 = arith.constant 0 : index
    %3 = vector.load %arg3[%c0_4, %c0_5] : memref<1x128xf32, #tpu.memory_space<vmem>>, vector<1x128xf32>
    %cst = arith.constant dense<0.000000e+00> : vector<128xf32>
    %4 = vector.multi_reduction <add>, %1, %cst [1] : vector<128x128xf32> to vector<128xf32>
    %5 = vector.shape_cast %4 : vector<128xf32> to vector<128x1xf32>
    %cst_6 = arith.constant 1.280000e+02 : f32
    %6 = vector.broadcast %cst_6 : f32 to vector<128x1xf32>
    %7 = arith.divf %5, %6 : vector<128x1xf32>
    %8 = vector.broadcast %7 : vector<128x1xf32> to vector<128x128xf32>
    %9 = arith.subf %1, %8 : vector<128x128xf32>
    %10 = arith.mulf %9, %9 : vector<128x128xf32>
    %cst_7 = arith.constant dense<0.000000e+00> : vector<128xf32>
    %11 = vector.multi_reduction <add>, %10, %cst_7 [1] : vector<128x128xf32> to vector<128xf32>
    %12 = vector.shape_cast %11 : vector<128xf32> to vector<128x1xf32>
    %cst_8 = arith.constant 1.280000e+02 : f32
    %13 = vector.broadcast %cst_8 : f32 to vector<128x1xf32>
    %14 = arith.divf %12, %13 : vector<128x1xf32>
    %cst_9 = arith.constant 9.99999974E-6 : f32
    %15 = vector.broadcast %cst_9 : f32 to vector<128x1xf32>
    %16 = arith.addf %14, %15 : vector<128x1xf32>
    %17 = math.rsqrt %16 : vector<128x1xf32>
    %18 = vector.broadcast %7 : vector<128x1xf32> to vector<128x128xf32>
    %19 = arith.subf %1, %18 : vector<128x128xf32>
    %20 = vector.broadcast %17 : vector<128x1xf32> to vector<128x128xf32>
    %21 = arith.mulf %19, %20 : vector<128x128xf32>
    %22 = vector.broadcast %2 : vector<1x128xf32> to vector<128x128xf32>
    %23 = arith.mulf %21, %22 : vector<128x128xf32>
    %24 = vector.broadcast %3 : vector<1x128xf32> to vector<128x128xf32>
    %25 = arith.addf %23, %24 : vector<128x128xf32>
    %26 = arith.truncf %25 : vector<128x128xf32> to vector<128x128xbf16>
    %cst_10 = arith.constant 0.000000e+00 : f32
    %27 = vector.broadcast %cst_10 : f32 to vector<128x128xf32>
    %c0_11 = arith.constant 0 : index
    %c0_12 = arith.constant 0 : index
    %c0_13 = arith.constant 0 : index
    %28 = vector.load %arg6[%c0_11, %c0_12, %c0_13] : memref<4x128x32xbf16, #tpu.memory_space<vmem>>, vector<1x128x32xbf16>
    %29 = vector.shape_cast %28 : vector<1x128x32xbf16> to vector<128x32xbf16>
    %cst_14 = arith.constant dense<0.000000e+00> : vector<128x32xf32>
    %30 = tpu.matmul %26, %29, %cst_14 {dimension_numbers = #tpu.dot_dimension_numbers<[1], [0], [0], [1], [0, 0, 1, 1], [], []>} : vector<128x128xbf16>, vector<128x32xbf16>, vector<128x32xf32> -> vector<128x32xf32>
    %31 = arith.truncf %30 : vector<128x32xf32> to vector<128x32xbf16>
    %c0_15 = arith.constant 0 : index
    %c0_16 = arith.constant 0 : index
    %c0_17 = arith.constant 0 : index
    %32 = vector.load %arg7[%c0_15, %c0_16, %c0_17] : memref<4x128x32xbf16, #tpu.memory_space<vmem>>, vector<1x128x32xbf16>
    %33 = vector.shape_cast %32 : vector<1x128x32xbf16> to vector<128x32xbf16>
    %cst_18 = arith.constant dense<0.000000e+00> : vector<128x32xf32>
    %34 = tpu.matmul %26, %33, %cst_18 {dimension_numbers = #tpu.dot_dimension_numbers<[1], [0], [0], [1], [0, 0, 1, 1], [], []>} : vector<128x128xbf16>, vector<128x32xbf16>, vector<128x32xf32> -> vector<128x32xf32>
    %35 = arith.truncf %34 : vector<128x32xf32> to vector<128x32xbf16>
    %c0_19 = arith.constant 0 : index
    %c0_20 = arith.constant 0 : index
    %c0_21 = arith.constant 0 : index
    %36 = vector.load %arg8[%c0_19, %c0_20, %c0_21] : memref<4x128x32xbf16, #tpu.memory_space<vmem>>, vector<1x128x32xbf16>
    %37 = vector.shape_cast %36 : vector<1x128x32xbf16> to vector<128x32xbf16>
    %cst_22 = arith.constant dense<0.000000e+00> : vector<128x32xf32>
    %38 = tpu.matmul %26, %37, %cst_22 {dimension_numbers = #tpu.dot_dimension_numbers<[1], [0], [0], [1], [0, 0, 1, 1], [], []>} : vector<128x128xbf16>, vector<128x32xbf16>, vector<128x32xf32> -> vector<128x32xf32>
    %39 = arith.truncf %38 : vector<128x32xf32> to vector<128x32xbf16>
    %cst_23 = arith.constant dense<0.000000e+00> : vector<128x128xf32>
    %40 = tpu.matmul %31, %35, %cst_23 {dimension_numbers = #tpu.dot_dimension_numbers<[1], [1], [0], [0], [0, 0, 1, 0], [], []>} : vector<128x32xbf16>, vector<128x32xbf16>, vector<128x128xf32> -> vector<128x128xf32>
    %cst_24 = arith.constant dense<0xFF800000> : vector<128xf32>
    %41 = vector.multi_reduction <maximumf>, %40, %cst_24 [1] : vector<128x128xf32> to vector<128xf32>
    %42 = vector.shape_cast %41 : vector<128xf32> to vector<128x1xf32>
    %43 = vector.broadcast %42 : vector<128x1xf32> to vector<128x128xf32>
    %44 = arith.subf %40, %43 : vector<128x128xf32>
    %45 = math.exp %44 : vector<128x128xf32>
    %cst_25 = arith.constant dense<0.000000e+00> : vector<128xf32>
    %46 = vector.multi_reduction <add>, %45, %cst_25 [1] : vector<128x128xf32> to vector<128xf32>
    %47 = vector.shape_cast %46 : vector<128xf32> to vector<128x1xf32>
    %48 = tpu.reciprocal %47 {approx = true} : vector<128x1xf32> -> vector<128x1xf32>
    %49 = vector.broadcast %48 : vector<128x1xf32> to vector<128x128xf32>
    %50 = arith.mulf %45, %49 : vector<128x128xf32>
    %51 = arith.truncf %50 : vector<128x128xf32> to vector<128x128xbf16>
    %cst_26 = arith.constant dense<0.000000e+00> : vector<128x32xf32>
    %52 = tpu.matmul %51, %39, %cst_26 {dimension_numbers = #tpu.dot_dimension_numbers<[1], [0], [0], [1], [0, 0, 1, 1], [], []>} : vector<128x128xbf16>, vector<128x32xbf16>, vector<128x32xf32> -> vector<128x32xf32>
    %53 = arith.truncf %52 : vector<128x32xf32> to vector<128x32xbf16>
    %c0_27 = arith.constant 0 : index
    %c0_28 = arith.constant 0 : index
    %c0_29 = arith.constant 0 : index
    %54 = vector.load %arg9[%c0_27, %c0_28, %c0_29] : memref<4x32x128xbf16, #tpu.memory_space<vmem>>, vector<1x32x128xbf16>
    %55 = vector.shape_cast %54 : vector<1x32x128xbf16> to vector<32x128xbf16>
    %cst_30 = arith.constant dense<0.000000e+00> : vector<128x128xf32>
    %56 = tpu.matmul %53, %55, %cst_30 {dimension_numbers = #tpu.dot_dimension_numbers<[1], [0], [0], [1], [0, 0, 1, 1], [], []>} : vector<128x32xbf16>, vector<32x128xbf16>, vector<128x128xf32> -> vector<128x128xf32>
    %57 = arith.addf %27, %56 : vector<128x128xf32>
    %c1 = arith.constant 1 : index
    %c0_31 = arith.constant 0 : index
    %c0_32 = arith.constant 0 : index
    %58 = vector.load %arg6[%c1, %c0_31, %c0_32] : memref<4x128x32xbf16, #tpu.memory_space<vmem>>, vector<1x128x32xbf16>
    %59 = vector.shape_cast %58 : vector<1x128x32xbf16> to vector<128x32xbf16>
    %cst_33 = arith.constant dense<0.000000e+00> : vector<128x32xf32>
    %60 = tpu.matmul %26, %59, %cst_33 {dimension_numbers = #tpu.dot_dimension_numbers<[1], [0], [0], [1], [0, 0, 1, 1], [], []>} : vector<128x128xbf16>, vector<128x32xbf16>, vector<128x32xf32> -> vector<128x32xf32>
    %61 = arith.truncf %60 : vector<128x32xf32> to vector<128x32xbf16>
    %c1_34 = arith.constant 1 : index
    %c0_35 = arith.constant 0 : index
    %c0_36 = arith.constant 0 : index
    %62 = vector.load %arg7[%c1_34, %c0_35, %c0_36] : memref<4x128x32xbf16, #tpu.memory_space<vmem>>, vector<1x128x32xbf16>
    %63 = vector.shape_cast %62 : vector<1x128x32xbf16> to vector<128x32xbf16>
    %cst_37 = arith.constant dense<0.000000e+00> : vector<128x32xf32>
    %64 = tpu.matmul %26, %63, %cst_37 {dimension_numbers = #tpu.dot_dimension_numbers<[1], [0], [0], [1], [0, 0, 1, 1], [], []>} : vector<128x128xbf16>, vector<128x32xbf16>, vector<128x32xf32> -> vector<128x32xf32>
    %65 = arith.truncf %64 : vector<128x32xf32> to vector<128x32xbf16>
    %c1_38 = arith.constant 1 : index
    %c0_39 = arith.constant 0 : index
    %c0_40 = arith.constant 0 : index
    %66 = vector.load %arg8[%c1_38, %c0_39, %c0_40] : memref<4x128x32xbf16, #tpu.memory_space<vmem>>, vector<1x128x32xbf16>
    %67 = vector.shape_cast %66 : vector<1x128x32xbf16> to vector<128x32xbf16>
    %cst_41 = arith.constant dense<0.000000e+00> : vector<128x32xf32>
    %68 = tpu.matmul %26, %67, %cst_41 {dimension_numbers = #tpu.dot_dimension_numbers<[1], [0], [0], [1], [0, 0, 1, 1], [], []>} : vector<128x128xbf16>, vector<128x32xbf16>, vector<128x32xf32> -> vector<128x32xf32>
    %69 = arith.truncf %68 : vector<128x32xf32> to vector<128x32xbf16>
    %cst_42 = arith.constant dense<0.000000e+00> : vector<128x128xf32>
    %70 = tpu.matmul %61, %65, %cst_42 {dimension_numbers = #tpu.dot_dimension_numbers<[1], [1], [0], [0], [0, 0, 1, 0], [], []>} : vector<128x32xbf16>, vector<128x32xbf16>, vector<128x128xf32> -> vector<128x128xf32>
    %cst_43 = arith.constant dense<0xFF800000> : vector<128xf32>
    %71 = vector.multi_reduction <maximumf>, %70, %cst_43 [1] : vector<128x128xf32> to vector<128xf32>
    %72 = vector.shape_cast %71 : vector<128xf32> to vector<128x1xf32>
    %73 = vector.broadcast %72 : vector<128x1xf32> to vector<128x128xf32>
    %74 = arith.subf %70, %73 : vector<128x128xf32>
    %75 = math.exp %74 : vector<128x128xf32>
    %cst_44 = arith.constant dense<0.000000e+00> : vector<128xf32>
    %76 = vector.multi_reduction <add>, %75, %cst_44 [1] : vector<128x128xf32> to vector<128xf32>
    %77 = vector.shape_cast %76 : vector<128xf32> to vector<128x1xf32>
    %78 = tpu.reciprocal %77 {approx = true} : vector<128x1xf32> -> vector<128x1xf32>
    %79 = vector.broadcast %78 : vector<128x1xf32> to vector<128x128xf32>
    %80 = arith.mulf %75, %79 : vector<128x128xf32>
    %81 = arith.truncf %80 : vector<128x128xf32> to vector<128x128xbf16>
    %cst_45 = arith.constant dense<0.000000e+00> : vector<128x32xf32>
    %82 = tpu.matmul %81, %69, %cst_45 {dimension_numbers = #tpu.dot_dimension_numbers<[1], [0], [0], [1], [0, 0, 1, 1], [], []>} : vector<128x128xbf16>, vector<128x32xbf16>, vector<128x32xf32> -> vector<128x32xf32>
    %83 = arith.truncf %82 : vector<128x32xf32> to vector<128x32xbf16>
    %c1_46 = arith.constant 1 : index
    %c0_47 = arith.constant 0 : index
    %c0_48 = arith.constant 0 : index
    %84 = vector.load %arg9[%c1_46, %c0_47, %c0_48] : memref<4x32x128xbf16, #tpu.memory_space<vmem>>, vector<1x32x128xbf16>
    %85 = vector.shape_cast %84 : vector<1x32x128xbf16> to vector<32x128xbf16>
    %cst_49 = arith.constant dense<0.000000e+00> : vector<128x128xf32>
    %86 = tpu.matmul %83, %85, %cst_49 {dimension_numbers = #tpu.dot_dimension_numbers<[1], [0], [0], [1], [0, 0, 1, 1], [], []>} : vector<128x32xbf16>, vector<32x128xbf16>, vector<128x128xf32> -> vector<128x128xf32>
    %87 = arith.addf %57, %86 : vector<128x128xf32>
    %c2 = arith.constant 2 : index
    %c0_50 = arith.constant 0 : index
    %c0_51 = arith.constant 0 : index
    %88 = vector.load %arg6[%c2, %c0_50, %c0_51] : memref<4x128x32xbf16, #tpu.memory_space<vmem>>, vector<1x128x32xbf16>
    %89 = vector.shape_cast %88 : vector<1x128x32xbf16> to vector<128x32xbf16>
    %cst_52 = arith.constant dense<0.000000e+00> : vector<128x32xf32>
    %90 = tpu.matmul %26, %89, %cst_52 {dimension_numbers = #tpu.dot_dimension_numbers<[1], [0], [0], [1], [0, 0, 1, 1], [], []>} : vector<128x128xbf16>, vector<128x32xbf16>, vector<128x32xf32> -> vector<128x32xf32>
    %91 = arith.truncf %90 : vector<128x32xf32> to vector<128x32xbf16>
    %c2_53 = arith.constant 2 : index
    %c0_54 = arith.constant 0 : index
    %c0_55 = arith.constant 0 : index
    %92 = vector.load %arg7[%c2_53, %c0_54, %c0_55] : memref<4x128x32xbf16, #tpu.memory_space<vmem>>, vector<1x128x32xbf16>
    %93 = vector.shape_cast %92 : vector<1x128x32xbf16> to vector<128x32xbf16>
    %cst_56 = arith.constant dense<0.000000e+00> : vector<128x32xf32>
    %94 = tpu.matmul %26, %93, %cst_56 {dimension_numbers = #tpu.dot_dimension_numbers<[1], [0], [0], [1], [0, 0, 1, 1], [], []>} : vector<128x128xbf16>, vector<128x32xbf16>, vector<128x32xf32> -> vector<128x32xf32>
    %95 = arith.truncf %94 : vector<128x32xf32> to vector<128x32xbf16>
    %c2_57 = arith.constant 2 : index
    %c0_58 = arith.constant 0 : index
    %c0_59 = arith.constant 0 : index
    %96 = vector.load %arg8[%c2_57, %c0_58, %c0_59] : memref<4x128x32xbf16, #tpu.memory_space<vmem>>, vector<1x128x32xbf16>
    %97 = vector.shape_cast %96 : vector<1x128x32xbf16> to vector<128x32xbf16>
    %cst_60 = arith.constant dense<0.000000e+00> : vector<128x32xf32>
    %98 = tpu.matmul %26, %97, %cst_60 {dimension_numbers = #tpu.dot_dimension_numbers<[1], [0], [0], [1], [0, 0, 1, 1], [], []>} : vector<128x128xbf16>, vector<128x32xbf16>, vector<128x32xf32> -> vector<128x32xf32>
    %99 = arith.truncf %98 : vector<128x32xf32> to vector<128x32xbf16>
    %cst_61 = arith.constant dense<0.000000e+00> : vector<128x128xf32>
    %100 = tpu.matmul %91, %95, %cst_61 {dimension_numbers = #tpu.dot_dimension_numbers<[1], [1], [0], [0], [0, 0, 1, 0], [], []>} : vector<128x32xbf16>, vector<128x32xbf16>, vector<128x128xf32> -> vector<128x128xf32>
    %cst_62 = arith.constant dense<0xFF800000> : vector<128xf32>
    %101 = vector.multi_reduction <maximumf>, %100, %cst_62 [1] : vector<128x128xf32> to vector<128xf32>
    %102 = vector.shape_cast %101 : vector<128xf32> to vector<128x1xf32>
    %103 = vector.broadcast %102 : vector<128x1xf32> to vector<128x128xf32>
    %104 = arith.subf %100, %103 : vector<128x128xf32>
    %105 = math.exp %104 : vector<128x128xf32>
    %cst_63 = arith.constant dense<0.000000e+00> : vector<128xf32>
    %106 = vector.multi_reduction <add>, %105, %cst_63 [1] : vector<128x128xf32> to vector<128xf32>
    %107 = vector.shape_cast %106 : vector<128xf32> to vector<128x1xf32>
    %108 = tpu.reciprocal %107 {approx = true} : vector<128x1xf32> -> vector<128x1xf32>
    %109 = vector.broadcast %108 : vector<128x1xf32> to vector<128x128xf32>
    %110 = arith.mulf %105, %109 : vector<128x128xf32>
    %111 = arith.truncf %110 : vector<128x128xf32> to vector<128x128xbf16>
    %cst_64 = arith.constant dense<0.000000e+00> : vector<128x32xf32>
    %112 = tpu.matmul %111, %99, %cst_64 {dimension_numbers = #tpu.dot_dimension_numbers<[1], [0], [0], [1], [0, 0, 1, 1], [], []>} : vector<128x128xbf16>, vector<128x32xbf16>, vector<128x32xf32> -> vector<128x32xf32>
    %113 = arith.truncf %112 : vector<128x32xf32> to vector<128x32xbf16>
    %c2_65 = arith.constant 2 : index
    %c0_66 = arith.constant 0 : index
    %c0_67 = arith.constant 0 : index
    %114 = vector.load %arg9[%c2_65, %c0_66, %c0_67] : memref<4x32x128xbf16, #tpu.memory_space<vmem>>, vector<1x32x128xbf16>
    %115 = vector.shape_cast %114 : vector<1x32x128xbf16> to vector<32x128xbf16>
    %cst_68 = arith.constant dense<0.000000e+00> : vector<128x128xf32>
    %116 = tpu.matmul %113, %115, %cst_68 {dimension_numbers = #tpu.dot_dimension_numbers<[1], [0], [0], [1], [0, 0, 1, 1], [], []>} : vector<128x32xbf16>, vector<32x128xbf16>, vector<128x128xf32> -> vector<128x128xf32>
    %117 = arith.addf %87, %116 : vector<128x128xf32>
    %c3 = arith.constant 3 : index
    %c0_69 = arith.constant 0 : index
    %c0_70 = arith.constant 0 : index
    %118 = vector.load %arg6[%c3, %c0_69, %c0_70] : memref<4x128x32xbf16, #tpu.memory_space<vmem>>, vector<1x128x32xbf16>
    %119 = vector.shape_cast %118 : vector<1x128x32xbf16> to vector<128x32xbf16>
    %cst_71 = arith.constant dense<0.000000e+00> : vector<128x32xf32>
    %120 = tpu.matmul %26, %119, %cst_71 {dimension_numbers = #tpu.dot_dimension_numbers<[1], [0], [0], [1], [0, 0, 1, 1], [], []>} : vector<128x128xbf16>, vector<128x32xbf16>, vector<128x32xf32> -> vector<128x32xf32>
    %121 = arith.truncf %120 : vector<128x32xf32> to vector<128x32xbf16>
    %c3_72 = arith.constant 3 : index
    %c0_73 = arith.constant 0 : index
    %c0_74 = arith.constant 0 : index
    %122 = vector.load %arg7[%c3_72, %c0_73, %c0_74] : memref<4x128x32xbf16, #tpu.memory_space<vmem>>, vector<1x128x32xbf16>
    %123 = vector.shape_cast %122 : vector<1x128x32xbf16> to vector<128x32xbf16>
    %cst_75 = arith.constant dense<0.000000e+00> : vector<128x32xf32>
    %124 = tpu.matmul %26, %123, %cst_75 {dimension_numbers = #tpu.dot_dimension_numbers<[1], [0], [0], [1], [0, 0, 1, 1], [], []>} : vector<128x128xbf16>, vector<128x32xbf16>, vector<128x32xf32> -> vector<128x32xf32>
    %125 = arith.truncf %124 : vector<128x32xf32> to vector<128x32xbf16>
    %c3_76 = arith.constant 3 : index
    %c0_77 = arith.constant 0 : index
    %c0_78 = arith.constant 0 : index
    %126 = vector.load %arg8[%c3_76, %c0_77, %c0_78] : memref<4x128x32xbf16, #tpu.memory_space<vmem>>, vector<1x128x32xbf16>
    %127 = vector.shape_cast %126 : vector<1x128x32xbf16> to vector<128x32xbf16>
    %cst_79 = arith.constant dense<0.000000e+00> : vector<128x32xf32>
    %128 = tpu.matmul %26, %127, %cst_79 {dimension_numbers = #tpu.dot_dimension_numbers<[1], [0], [0], [1], [0, 0, 1, 1], [], []>} : vector<128x128xbf16>, vector<128x32xbf16>, vector<128x32xf32> -> vector<128x32xf32>
    %129 = arith.truncf %128 : vector<128x32xf32> to vector<128x32xbf16>
    %cst_80 = arith.constant dense<0.000000e+00> : vector<128x128xf32>
    %130 = tpu.matmul %121, %125, %cst_80 {dimension_numbers = #tpu.dot_dimension_numbers<[1], [1], [0], [0], [0, 0, 1, 0], [], []>} : vector<128x32xbf16>, vector<128x32xbf16>, vector<128x128xf32> -> vector<128x128xf32>
    %cst_81 = arith.constant dense<0xFF800000> : vector<128xf32>
    %131 = vector.multi_reduction <maximumf>, %130, %cst_81 [1] : vector<128x128xf32> to vector<128xf32>
    %132 = vector.shape_cast %131 : vector<128xf32> to vector<128x1xf32>
    %133 = vector.broadcast %132 : vector<128x1xf32> to vector<128x128xf32>
    %134 = arith.subf %130, %133 : vector<128x128xf32>
    %135 = math.exp %134 : vector<128x128xf32>
    %cst_82 = arith.constant dense<0.000000e+00> : vector<128xf32>
    %136 = vector.multi_reduction <add>, %135, %cst_82 [1] : vector<128x128xf32> to vector<128xf32>
    %137 = vector.shape_cast %136 : vector<128xf32> to vector<128x1xf32>
    %138 = tpu.reciprocal %137 {approx = true} : vector<128x1xf32> -> vector<128x1xf32>
    %139 = vector.broadcast %138 : vector<128x1xf32> to vector<128x128xf32>
    %140 = arith.mulf %135, %139 : vector<128x128xf32>
    %141 = arith.truncf %140 : vector<128x128xf32> to vector<128x128xbf16>
    %cst_83 = arith.constant dense<0.000000e+00> : vector<128x32xf32>
    %142 = tpu.matmul %141, %129, %cst_83 {dimension_numbers = #tpu.dot_dimension_numbers<[1], [0], [0], [1], [0, 0, 1, 1], [], []>} : vector<128x128xbf16>, vector<128x32xbf16>, vector<128x32xf32> -> vector<128x32xf32>
    %143 = arith.truncf %142 : vector<128x32xf32> to vector<128x32xbf16>
    %c3_84 = arith.constant 3 : index
    %c0_85 = arith.constant 0 : index
    %c0_86 = arith.constant 0 : index
    %144 = vector.load %arg9[%c3_84, %c0_85, %c0_86] : memref<4x32x128xbf16, #tpu.memory_space<vmem>>, vector<1x32x128xbf16>
    %145 = vector.shape_cast %144 : vector<1x32x128xbf16> to vector<32x128xbf16>
    %cst_87 = arith.constant dense<0.000000e+00> : vector<128x128xf32>
    %146 = tpu.matmul %143, %145, %cst_87 {dimension_numbers = #tpu.dot_dimension_numbers<[1], [0], [0], [1], [0, 0, 1, 1], [], []>} : vector<128x32xbf16>, vector<32x128xbf16>, vector<128x128xf32> -> vector<128x128xf32>
    %147 = arith.addf %117, %146 : vector<128x128xf32>
    %148 = arith.addf %1, %147 : vector<128x128xf32>
    %c0_88 = arith.constant 0 : index
    %c0_89 = arith.constant 0 : index
    %149 = vector.load %arg10[%c0_88, %c0_89] : memref<1x128xf32, #tpu.memory_space<vmem>>, vector<1x128xf32>
    %150 = vector.broadcast %149 : vector<1x128xf32> to vector<128x128xf32>
    %151 = arith.addf %148, %150 : vector<128x128xf32>
    %c0_90 = arith.constant 0 : index
    %c0_91 = arith.constant 0 : index
    %152 = vector.load %arg4[%c0_90, %c0_91] : memref<1x128xf32, #tpu.memory_space<vmem>>, vector<1x128xf32>
    %c0_92 = arith.constant 0 : index
    %c0_93 = arith.constant 0 : index
    %153 = vector.load %arg5[%c0_92, %c0_93] : memref<1x128xf32, #tpu.memory_space<vmem>>, vector<1x128xf32>
    %cst_94 = arith.constant dense<0.000000e+00> : vector<128xf32>
    %154 = vector.multi_reduction <add>, %151, %cst_94 [1] : vector<128x128xf32> to vector<128xf32>
    %155 = vector.shape_cast %154 : vector<128xf32> to vector<128x1xf32>
    %cst_95 = arith.constant 1.280000e+02 : f32
    %156 = vector.broadcast %cst_95 : f32 to vector<128x1xf32>
    %157 = arith.divf %155, %156 : vector<128x1xf32>
    %158 = vector.broadcast %157 : vector<128x1xf32> to vector<128x128xf32>
    %159 = arith.subf %151, %158 : vector<128x128xf32>
    %160 = arith.mulf %159, %159 : vector<128x128xf32>
    %cst_96 = arith.constant dense<0.000000e+00> : vector<128xf32>
    %161 = vector.multi_reduction <add>, %160, %cst_96 [1] : vector<128x128xf32> to vector<128xf32>
    %162 = vector.shape_cast %161 : vector<128xf32> to vector<128x1xf32>
    %cst_97 = arith.constant 1.280000e+02 : f32
    %163 = vector.broadcast %cst_97 : f32 to vector<128x1xf32>
    %164 = arith.divf %162, %163 : vector<128x1xf32>
    %cst_98 = arith.constant 9.99999974E-6 : f32
    %165 = vector.broadcast %cst_98 : f32 to vector<128x1xf32>
    %166 = arith.addf %164, %165 : vector<128x1xf32>
    %167 = math.rsqrt %166 : vector<128x1xf32>
    %168 = vector.broadcast %157 : vector<128x1xf32> to vector<128x128xf32>
    %169 = arith.subf %151, %168 : vector<128x128xf32>
    %170 = vector.broadcast %167 : vector<128x1xf32> to vector<128x128xf32>
    %171 = arith.mulf %169, %170 : vector<128x128xf32>
    %172 = vector.broadcast %152 : vector<1x128xf32> to vector<128x128xf32>
    %173 = arith.mulf %171, %172 : vector<128x128xf32>
    %174 = vector.broadcast %153 : vector<1x128xf32> to vector<128x128xf32>
    %175 = arith.addf %173, %174 : vector<128x128xf32>
    %176 = arith.truncf %175 : vector<128x128xf32> to vector<128x128xbf16>
    %c0_99 = arith.constant 0 : index
    %c0_100 = arith.constant 0 : index
    %177 = vector.load %arg11[%c0_99, %c0_100] : memref<128x256xbf16, #tpu.memory_space<vmem>>, vector<128x256xbf16>
    %cst_101 = arith.constant dense<0.000000e+00> : vector<128x256xf32>
    %178 = tpu.matmul %176, %177, %cst_101 {dimension_numbers = #tpu.dot_dimension_numbers<[1], [0], [0], [1], [0, 0, 1, 1], [], []>} : vector<128x128xbf16>, vector<128x256xbf16>, vector<128x256xf32> -> vector<128x256xf32>
    %c0_102 = arith.constant 0 : index
    %c0_103 = arith.constant 0 : index
    %179 = vector.load %arg12[%c0_102, %c0_103] : memref<1x256xf32, #tpu.memory_space<vmem>>, vector<1x256xf32>
    %180 = vector.broadcast %179 : vector<1x256xf32> to vector<128x256xf32>
    %181 = arith.addf %178, %180 : vector<128x256xf32>
    %cst_104 = arith.constant 5.000000e-01 : f32
    %182 = vector.broadcast %cst_104 : f32 to vector<128x256xf32>
    %183 = arith.mulf %182, %181 : vector<128x256xf32>
    %cst_105 = arith.constant 2.000000e+00 : f32
    %184 = math.sqrt %cst_105 : f32
    %185 = vector.broadcast %184 : f32 to vector<128x256xf32>
    %186 = arith.divf %181, %185 : vector<128x256xf32>
    %187 = math.erf %186 : vector<128x256xf32>
    %cst_106 = arith.constant 1.000000e+00 : f32
    %188 = vector.broadcast %cst_106 : f32 to vector<128x256xf32>
    %189 = arith.addf %188, %187 : vector<128x256xf32>
    %190 = arith.mulf %183, %189 : vector<128x256xf32>
    %191 = arith.truncf %190 : vector<128x256xf32> to vector<128x256xbf16>
    %c0_107 = arith.constant 0 : index
    %c0_108 = arith.constant 0 : index
    %192 = vector.load %arg13[%c0_107, %c0_108] : memref<256x128xbf16, #tpu.memory_space<vmem>>, vector<256x128xbf16>
    %cst_109 = arith.constant dense<0.000000e+00> : vector<128x128xf32>
    %193 = tpu.matmul %191, %192, %cst_109 {dimension_numbers = #tpu.dot_dimension_numbers<[1], [0], [0], [1], [0, 0, 1, 1], [], []>} : vector<128x256xbf16>, vector<256x128xbf16>, vector<128x128xf32> -> vector<128x128xf32>
    %c0_110 = arith.constant 0 : index
    %c0_111 = arith.constant 0 : index
    %194 = vector.load %arg14[%c0_110, %c0_111] : memref<1x128xf32, #tpu.memory_space<vmem>>, vector<1x128xf32>
    %195 = vector.broadcast %194 : vector<1x128xf32> to vector<128x128xf32>
    %196 = arith.addf %193, %195 : vector<128x128xf32>
    %197 = arith.addf %151, %196 : vector<128x128xf32>
    %c0_112 = arith.constant 0 : index
    %c0_113 = arith.constant 0 : index
    %c0_114 = arith.constant 0 : index
    %198 = vector.load %arg15[%c0_112, %c0_113, %c0_114] : memref<1x128x128xf32, #tpu.memory_space<vmem>>, vector<1x128x128xf32>
    %199 = vector.shape_cast %198 : vector<1x128x128xf32> to vector<128x128xf32>
    %200 = vector.shape_cast %197 : vector<128x128xf32> to vector<1x128x128xf32>
    tpu.vector_store %arg15[%c0_112, %c0_113, %c0_114], %200 {strides = array<i32>} : memref<1x128x128xf32, #tpu.memory_space<vmem>>, vector<1x128x128xf32>,
    return
  }
  func.func @transform_0(%arg0: i32) -> (i32, i32, i32) {
    %c0_i32 = arith.constant 0 : i32
    %c0_i32_0 = arith.constant 0 : i32
    %c0_i32_1 = arith.constant 0 : i32
    return %arg0, %c0_i32, %c0_i32_0 : i32, i32, i32
  }
  func.func @transform_1(%arg0: i32) -> (i32, i32) {
    %c0_i32 = arith.constant 0 : i32
    %c0_i32_0 = arith.constant 0 : i32
    %c0_i32_1 = arith.constant 0 : i32
    return %c0_i32, %c0_i32_0 : i32, i32
  }
  func.func @transform_2(%arg0: i32) -> (i32, i32) {
    %c0_i32 = arith.constant 0 : i32
    %c0_i32_0 = arith.constant 0 : i32
    %c0_i32_1 = arith.constant 0 : i32
    return %c0_i32, %c0_i32_0 : i32, i32
  }
  func.func @transform_3(%arg0: i32) -> (i32, i32) {
    %c0_i32 = arith.constant 0 : i32
    %c0_i32_0 = arith.constant 0 : i32
    %c0_i32_1 = arith.constant 0 : i32
    return %c0_i32, %c0_i32_0 : i32, i32
  }
  func.func @transform_4(%arg0: i32) -> (i32, i32) {
    %c0_i32 = arith.constant 0 : i32
    %c0_i32_0 = arith.constant 0 : i32
    %c0_i32_1 = arith.constant 0 : i32
    return %c0_i32, %c0_i32_0 : i32, i32
  }
  func.func @transform_5(%arg0: i32) -> (i32, i32, i32) {
    %c0_i32 = arith.constant 0 : i32
    %c0_i32_0 = arith.constant 0 : i32
    %c0_i32_1 = arith.constant 0 : i32
    %c0_i32_2 = arith.constant 0 : i32
    return %c0_i32, %c0_i32_0, %c0_i32_1 : i32, i32, i32
  }
  func.func @transform_6(%arg0: i32) -> (i32, i32, i32) {
    %c0_i32 = arith.constant 0 : i32
    %c0_i32_0 = arith.constant 0 : i32
    %c0_i32_1 = arith.constant 0 : i32
    %c0_i32_2 = arith.constant 0 : i32
    return %c0_i32, %c0_i32_0, %c0_i32_1 : i32, i32, i32
  }
  func.func @transform_7(%arg0: i32) -> (i32, i32, i32) {
    %c0_i32 = arith.constant 0 : i32
    %c0_i32_0 = arith.constant 0 : i32
    %c0_i32_1 = arith.constant 0 : i32
    %c0_i32_2 = arith.constant 0 : i32
    return %c0_i32, %c0_i32_0, %c0_i32_1 : i32, i32, i32
  }
  func.func @transform_8(%arg0: i32) -> (i32, i32, i32) {
    %c0_i32 = arith.constant 0 : i32
    %c0_i32_0 = arith.constant 0 : i32
    %c0_i32_1 = arith.constant 0 : i32
    %c0_i32_2 = arith.constant 0 : i32
    return %c0_i32, %c0_i32_0, %c0_i32_1 : i32, i32, i32
  }
  func.func @transform_9(%arg0: i32) -> (i32, i32) {
    %c0_i32 = arith.constant 0 : i32
    %c0_i32_0 = arith.constant 0 : i32
    %c0_i32_1 = arith.constant 0 : i32
    return %c0_i32, %c0_i32_0 : i32, i32
  }
  func.func @transform_10(%arg0: i32) -> (i32, i32) {
    %c0_i32 = arith.constant 0 : i32
    %c0_i32_0 = arith.constant 0 : i32
    %c0_i32_1 = arith.constant 0 : i32
    return %c0_i32, %c0_i32_0 : i32, i32
  }
  func.func @transform_11(%arg0: i32) -> (i32, i32) {
    %c0_i32 = arith.constant 0 : i32
    %c0_i32_0 = arith.constant 0 : i32
    %c0_i32_1 = arith.constant 0 : i32
    return %c0_i32, %c0_i32_0 : i32, i32
  }
  func.func @transform_12(%arg0: i32) -> (i32, i32) {
    %c0_i32 = arith.constant 0 : i32
    %c0_i32_0 = arith.constant 0 : i32
    %c0_i32_1 = arith.constant 0 : i32
    return %c0_i32, %c0_i32_0 : i32, i32
  }
  func.func @transform_13(%arg0: i32) -> (i32, i32) {
    %c0_i32 = arith.constant 0 : i32
    %c0_i32_0 = arith.constant 0 : i32
    %c0_i32_1 = arith.constant 0 : i32
    return %c0_i32, %c0_i32_0 : i32, i32
  }
  func.func @transform_14(%arg0: i32) -> (i32, i32, i32) {
    %c0_i32 = arith.constant 0 : i32
    %c0_i32_0 = arith.constant 0 : i32
    %c0_i32_1 = arith.constant 0 : i32
    return %arg0, %c0_i32, %c0_i32_0 : i32, i32, i32
  }
}

</mosaic_0001>

<bundles_post_ra>
// kernel: tpu_custom_call.1
= control target key start
LH: loop header
LB: loop body
LE: loop exit
PB: predicated region body
PF: predicated region fallthrough
CT: control target
= control target key end

     0   :  { %s10338_s0 = inlined_call_operand.vmem [shape: f32[2,128,128], index: 0, kind: input, shape index: {}]   ;;  %s10339_s1 = inlined_call_operand.vmem [shape: f32[1,128], index: 1, kind: input, shape index: {}]   ;;  %s10340_s2 = inlined_call_operand.vmem [shape: f32[1,128], index: 2, kind: input, shape index: {}]   ;;  %s10341_s3 = inlined_call_operand.vmem [shape: f32[1,128], index: 3, kind: input, shape index: {}]   ;;  %s10342_s4 = inlined_call_operand.vmem [shape: f32[1,128], index: 4, kind: input, shape index: {}]   ;;  %s10343_s5 = inlined_call_operand.vmem [shape: bf16[4,128,32], index: 5, kind: input, shape index: {}]   ;;  %s10344_s6 = inlined_call_operand.vmem [shape: bf16[4,128,32], index: 6, kind: input, shape index: {}]   ;;  %s10345_s7 = inlined_call_operand.vmem [shape: bf16[4,128,32], index: 7, kind: input, shape index: {}]   ;;  %s10346_s8 = inlined_call_operand.vmem [shape: bf16[4,32,128], index: 8, kind: input, shape index: {}]   ;;  %s10347_s9 = inlined_call_operand.vmem [shape: f32[1,128], index: 9, kind: input, shape index: {}]   ;;  %s10348_s10 = inlined_call_operand.vmem [shape: bf16[128,256], index: 10, kind: input, shape index: {}]   ;;  %s10349_s11 = inlined_call_operand.vmem [shape: f32[1,256], index: 11, kind: input, shape index: {}]   ;;  %s10350_s12 = inlined_call_operand.vmem [shape: bf16[256,128], index: 12, kind: input, shape index: {}]   ;;  %s10351_s13 = inlined_call_operand.vmem [shape: f32[1,128], index: 13, kind: input, shape index: {}]   ;;  %s10352_s14 = inlined_call_operand.hbm [shape: f32[2,128,128], index: 14, kind: output, shape index: {}]  }
   0x1   :  { %10362 = sst [smem:[#allocation15_spill]] %s10338_s0 }
   0x2   :  { %10363 = sst [smem:[#allocation16_spill]] %s10339_s1 }
   0x3   :  { %19 = vsyncpa [#allocation3], 0 }
   0x4   :  { %21 = vsyncpa [#allocation3 + $0x1], 0  ;;  %s8279_s29 = smov 0   ;;  %s8281_s30 = smov 0  }
   0x5   :  { %s8283_s15 = smov 0   ;;  %s8285_s16 = smov 0  }
   0x6 LB: > { %s8300_s17 = sadd.s32 4294967295, %s8198_s16   ;;  %s5950_s18 = sadd.s32 4294967294, %s8198_s16   ;;  %s8198_s16 = sphi %s8285_s16, %s10414_s16   ;;  %s8194_s15 = sphi %s8283_s15, %s10413_s15   ;;  %s8190_s30 = sphi %s8281_s30, %s10412_s30   ;;  %s8186_s29 = sphi %s8279_s29, %s10411_s29  }
   0x7   : > { %s8304_s19 = sadd.s32 1, %s8198_s16   ;;  %s333_s20 = sadd.s32 1, %s8194_s15 }
   0x8   : > { %s330_s21 = ssub.s32 %s8198_s16, %s8304_s19  ;;  %p343_p0 = scmp.ne.s32.totalorder %s8194_s15, %s8190_s30 }
   0x9   : > { %p331_p1 = scmp.eq.s32.totalorder %s330_s21, 0  ;;  %p344_p2 = scmp.eq.s32.totalorder %s8300_s17, 1 }
   0xa   : > { %p349_p3 = scmp.ne.s32.totalorder %s8190_s30, %s8186_s29  ;;  %p350_p4 = scmp.eq.s32.totalorder %s5950_s18, 1 }
   0xb   : > { %s8315_s22 = scalar_select %p331_p1, %s8194_s15, %s333_s20  }
   0xc   : > { %p8317_p5 = por %p344_p2, %p343_p0  ;;  %p8321_p6 = por %p350_p4, %p349_p3 }
   0xd   : > { %10364 = sst [smem:[#allocation5_spill]] %s8315_s22  ;;  %p5953_p7 = scmp.ge.s32.totalorder %s8198_s16, 1 }
   0xe   : > { %p415_p8 = scmp.lt.s32.totalorder %s8198_s16, 3 }
  0x10   : > { %p416_p9 = pnand %p5953_p7, %p415_p8 }
  0x12   : > { %419 = sbr.rel (%p416_p9) target bundleno = 4857 (0x12f9), region = 76 }
  0x19   : > { %p461_p10 = scmp.lt.s32.totalorder %s8300_s17, 1  ;;  %s10367_s0 = sld [smem:[#allocation15_spill]]  ;;  %v7592_v16 = vld [vmem:[%s10343_s5] sm:$0xff]   ;;  %v7594_v61 = vld [vmem:[%s10343_s5 + $0x8] sm:$0xff]   ;;  %vm1221_vm0 = vcmask 261120  }
  0x1a   : > { %v7593_v17 = vld [vmem:[%s10345_s7] sm:$0xff]   ;;  %6750 = vmatprep.subr.bf16.mxu1 %v7592_v16  ;;  %v7595_v62 = vld [vmem:[%s10345_s7 + $0x8] sm:$0xff]   ;;  %s10368_s1 = sld [smem:[#allocation16_spill]]  ;;  %s458_s20 = sand.u32 1, %s8190_s30  }
  0x1b   : > { %s462_s25 = scalar_select %p461_p10, %s8300_s17, 1  ;;  %6814 = vmatprep.subr.bf16.mxu0 %v7593_v17  ;;  %6751 = vmatpush3.bf16.msra.mxu1 %v7592_v16 }
  0x1c   : > { %6815 = vmatpush3.bf16.msra.mxu0 %v7593_v17  ;;  %6752 = vmatprep.subr.bf16.mxu1 %v7594_v61 }
  0x1d   : > { %s6324_s26 = sshll.u32 %s462_s25, 7  ;;  %6816 = vmatprep.subr.bf16.mxu0 %v7595_v62  ;;  %s5954_s25 = sshll.u32 %s458_s20, 7 }
  0x1f   : > { %s8332_s18 = scalar_lea.vmem %s10367_s0, %s6324_s26  ;;  %6753 = vmatpush3.bf16.msra.mxu1 %v7594_v61  ;;  %s10239_s26 = scalar_lea.vmem [#allocation2], %s5954_s25 }
  0x20   : > { %v467_v0 = vld [vmem:[%s8332_s18] sm:$0xff]  ;;  %v469_v1 = vld [vmem:[%s8332_s18 + $0x10] sm:$0xff]  ;;  %v468_v2 = vld [vmem:[%s8332_s18 + $0x8] sm:$0xff]  ;;  %6817 = vmatpush3.bf16.msra.mxu0 %v7595_v62  ;;  %s6325_s0 = sshll.u32 %s8300_s17, 11  ;;  %s10297_s17 = scalar_lea.sflag [#allocation3], %s458_s20 }
  0x21   : > { %485 = vadd.xlane.f32.xlu0 %v467_v0  ;;  %489 = vadd.xlane.f32.xlu1 %v469_v1  ;;  %v470_v3 = vld [vmem:[%s8332_s18 + $0x18] sm:$0xff]  ;;  %v471_v4 = vld [vmem:[%s8332_s18 + $0x20] sm:$0xff]  ;;  %v472_v5 = vld [vmem:[%s8332_s18 + $0x28] sm:$0xff]  ;;  %s10288_s28 = scalar_lea.hbm %s10352_s14, %s6325_s0 }
  0x22   : > { %v473_v6 = vld [vmem:[%s8332_s18 + $0x30] sm:$0xff]  ;;  %v474_v7 = vld [vmem:[%s8332_s18 + $0x38] sm:$0xff]  ;;  %v8343_v8 = vld [vmem:[%s8332_s18 + $0x40] sm:$0xff] }
  0x23   : > { %v8346_v9 = vld [vmem:[%s8332_s18 + $0x48] sm:$0xff]  ;;  %v8349_v10 = vld [vmem:[%s8332_s18 + $0x50] sm:$0xff]  ;;  %v8352_v11 = vld [vmem:[%s8332_s18 + $0x58] sm:$0xff] }
  0x24   : > { %v8357_v12 = vld [vmem:[%s8332_s18 + $0x60] sm:$0xff]  ;;  %v8360_v13 = vld [vmem:[%s8332_s18 + $0x68] sm:$0xff]  ;;  %v8365_v14 = vld [vmem:[%s8332_s18 + $0x70] sm:$0xff] }
  0x25   : > { %487 = vadd.xlane.f32.xlu0 %v468_v2  ;;  %491 = vadd.xlane.f32.xlu1 %v470_v3  ;;  %v8368_v15 = vld [vmem:[%s8332_s18 + $0x78] sm:$0xff] }
  0x29   : > { %493 = vadd.xlane.f32.xlu0 %v471_v4  ;;  %495 = vadd.xlane.f32.xlu1 %v472_v5 }
  0x2d   : > { %497 = vadd.xlane.f32.xlu0 %v473_v6  ;;  %499 = vadd.xlane.f32.xlu1 %v474_v7 }
  0x31   : > { %501 = vadd.xlane.f32.xlu0 %v8343_v8  ;;  %503 = vadd.xlane.f32.xlu1 %v8346_v9 }
  0x35   : > { %505 = vadd.xlane.f32.xlu0 %v8349_v10  ;;  %507 = vadd.xlane.f32.xlu1 %v8352_v11 }
  0x39   : > { %509 = vadd.xlane.f32.xlu0 %v8357_v12  ;;  %511 = vadd.xlane.f32.xlu1 %v8360_v13 }
  0x3d   : > { %513 = vadd.xlane.f32.xlu0 %v8365_v14  ;;  %515 = vadd.xlane.f32.xlu1 %v8368_v15 }
  0xae   : > { %v486_v18 = vpop.xlane.xlu0 %485  ;;  %v490_v19 = vpop.xlane.xlu1 %489 }
  0xaf   : > { %v518_v20 = vmul.f32 0.0078125, %v486_v18  ;;  %v520_v21 = vmul.f32 0.0078125, %v490_v19 }
  0xb1   : > { %v8380_v22 = vsub.f32 %v467_v0, %v518_v20  ;;  %v8382_v23 = vsub.f32 %v469_v1, %v520_v21 }
  0xb2   : > { %v488_v24 = vpop.xlane.xlu0 %487  ;;  %v492_v25 = vpop.xlane.xlu1 %491 }
  0xb3   : > { %v519_v26 = vmul.f32 0.0078125, %v488_v24  ;;  %v550_v27 = vmul.f32 %v8380_v22, %v8380_v22  ;;  %v521_v28 = vmul.f32 0.0078125, %v492_v25  ;;  %v552_v29 = vmul.f32 %v8382_v23, %v8382_v23  ;;  %v7598_v24 = vld [vmem:[%s10343_s5 + $0x18] sm:$0xff]  }
  0xb4   : > { %v7599_v25 = vld [vmem:[%s10345_s7 + $0x18] sm:$0xff]  }
  0xb5   : > { %566 = vadd.xlane.f32.xlu0 %v550_v27  ;;  %v8388_v30 = vsub.f32 %v468_v2, %v519_v26  ;;  %v8390_v31 = vsub.f32 %v470_v3, %v521_v28  ;;  %v7601_v27 = vld [vmem:[%s10345_s7 + $0x20] sm:$0xff]   ;;  %v7602_v28 = vld [vmem:[%s10343_s5 + $0x28] sm:$0xff]  }
  0xb6   : > { %v494_v32 = vpop.xlane.xlu0 %493  ;;  %v496_v33 = vpop.xlane.xlu1 %495 }
  0xb7   : > { %v522_v34 = vmul.f32 0.0078125, %v494_v32  ;;  %v551_v35 = vmul.f32 %v8388_v30, %v8388_v30  ;;  %v523_v36 = vmul.f32 0.0078125, %v496_v33  ;;  %v553_v37 = vmul.f32 %v8390_v31, %v8390_v31  ;;  %v7604_v32 = vld [vmem:[%s10343_s5 + $0x30] sm:$0xff]  }
  0xb8   : > { %v7605_v33 = vld [vmem:[%s10345_s7 + $0x30] sm:$0xff]  }
  0xb9   : > { %570 = vadd.xlane.f32.xlu0 %v552_v29  ;;  %568 = vadd.xlane.f32.xlu1 %v551_v35  ;;  %v8396_v38 = vsub.f32 %v471_v4, %v522_v34  ;;  %v8398_v39 = vsub.f32 %v472_v5, %v523_v36  ;;  %v7603_v29 = vld [vmem:[%s10345_s7 + $0x28] sm:$0xff]   ;;  %v7606_v34 = vld [vmem:[%s10343_s5 + $0x38] sm:$0xff]   ;;  %v8497_v36 = vld [vmem:[%s10344_s6] sm:$0xff]  }
  0xba   : > { %v498_v40 = vpop.xlane.xlu0 %497  ;;  %v500_v41 = vpop.xlane.xlu1 %499  ;;  %v7607_v35 = vld [vmem:[%s10345_s7 + $0x38] sm:$0xff]  }
  0xbb   : > { %v524_v42 = vmul.f32 0.0078125, %v498_v40  ;;  %v554_v43 = vmul.f32 %v8396_v38, %v8396_v38  ;;  %v525_v44 = vmul.f32 0.0078125, %v500_v41  ;;  %v555_v45 = vmul.f32 %v8398_v39, %v8398_v39 }
  0xbd   : > { %572 = vadd.xlane.f32.xlu1 %v553_v37  ;;  %574 = vadd.xlane.f32.xlu0 %v554_v43  ;;  %v8404_v46 = vsub.f32 %v473_v6, %v524_v42  ;;  %v8406_v47 = vsub.f32 %v474_v7, %v525_v44 }
  0xbe   : > { %v502_v48 = vpop.xlane.xlu0 %501  ;;  %v504_v49 = vpop.xlane.xlu1 %503 }
  0xbf   : > { %v526_v50 = vmul.f32 0.0078125, %v502_v48  ;;  %v556_v51 = vmul.f32 %v8404_v46, %v8404_v46  ;;  %v527_v52 = vmul.f32 0.0078125, %v504_v49  ;;  %v557_v53 = vmul.f32 %v8406_v47, %v8406_v47 }
  0xc1   : > { %576 = vadd.xlane.f32.xlu1 %v555_v45  ;;  %578 = vadd.xlane.f32.xlu0 %v556_v51  ;;  %v8413_v54 = vsub.f32 %v8343_v8, %v526_v50  ;;  %v8416_v55 = vsub.f32 %v8346_v9, %v527_v52 }
  0xc2   : > { %v506_v56 = vpop.xlane.xlu0 %505  ;;  %v508_v57 = vpop.xlane.xlu1 %507 }
  0xc3   : > { %v528_v58 = vmul.f32 0.0078125, %v506_v56  ;;  %v558_v59 = vmul.f32 %v8413_v54, %v8413_v54  ;;  %v529_v60 = vmul.f32 0.0078125, %v508_v57  ;;  %v559_v63 = vmul.f32 %v8416_v55, %v8416_v55 }
  0xc5   : > { %580 = vadd.xlane.f32.xlu1 %v557_v53  ;;  %582 = vadd.xlane.f32.xlu0 %v558_v59  ;;  %v8429_v0 = vsub.f32 %v8349_v10, %v528_v58  ;;  %v8432_v1 = vsub.f32 %v8352_v11, %v529_v60  ;;  %v7596_v10 = vld [vmem:[%s10343_s5 + $0x10] sm:$0xff]  }
  0xc6   : > { %v510_v2 = vpop.xlane.xlu0 %509  ;;  %v512_v3 = vpop.xlane.xlu1 %511  ;;  %v7597_v11 = vld [vmem:[%s10345_s7 + $0x10] sm:$0xff]   ;;  %6754 = vmatprep.subr.bf16.mxu1 %v7596_v10 }
  0xc7   : > { %v530_v4 = vmul.f32 0.0078125, %v510_v2  ;;  %v560_v5 = vmul.f32 %v8429_v0, %v8429_v0  ;;  %v531_v6 = vmul.f32 0.0078125, %v512_v3  ;;  %v561_v7 = vmul.f32 %v8432_v1, %v8432_v1  ;;  %6818 = vmatprep.subr.bf16.mxu0 %v7597_v11  ;;  %6755 = vmatpush3.bf16.msra.mxu1 %v7596_v10 }
  0xc8   : > { %6819 = vmatpush3.bf16.msra.mxu0 %v7597_v11  ;;  %6756 = vmatprep.subr.bf16.mxu1 %v7598_v24 }
  0xc9   : > { %584 = vadd.xlane.f32.xlu1 %v559_v63  ;;  %586 = vadd.xlane.f32.xlu0 %v560_v5  ;;  %v8439_v8 = vsub.f32 %v8357_v12, %v530_v4  ;;  %v8442_v9 = vsub.f32 %v8360_v13, %v531_v6  ;;  %v8504_v6 = vld [vmem:[%s10368_s1] ss:$0 sm:$0xff]  ;;  %s8201_s1 = smov [#allocation2]  }
  0xca   : > { %v514_v16 = vpop.xlane.xlu0 %513  ;;  %v516_v17 = vpop.xlane.xlu1 %515  ;;  %6820 = vmatprep.subr.bf16.mxu0 %v7599_v25  ;;  %s8140_s25 = sshll.u32 %s8201_s1, 4  ;;  %s8141_s25 = int_to_ptr.vmem [resolvable:$false] %s8140_s25 }
  0xcb   : > { %v532_v18 = vmul.f32 0.0078125, %v514_v16  ;;  %v562_v19 = vmul.f32 %v8439_v8, %v8439_v8  ;;  %v533_v20 = vmul.f32 0.0078125, %v516_v17  ;;  %v563_v12 = vmul.f32 %v8442_v9, %v8442_v9  ;;  %6757 = vmatpush3.bf16.msra.mxu1 %v7598_v24  ;;  %v8511_v24 = vld [vmem:[%s10340_s2] ss:$0 sm:$0xff]  ;;  %s8142_s0 = scalar_lea.vmem %s8141_s25, 4096 }
  0xcc   : > { %6821 = vmatpush3.bf16.msra.mxu0 %v7599_v25 }
  0xcd   : > { %588 = vadd.xlane.f32.xlu1 %v561_v7  ;;  %590 = vadd.xlane.f32.xlu0 %v562_v19  ;;  %v8455_v13 = vsub.f32 %v8365_v14, %v532_v18  ;;  %v8458_v21 = vsub.f32 %v8368_v15, %v533_v20  ;;  %v7600_v15 = vld [vmem:[%s10343_s5 + $0x20] sm:$0xff]  }
  0xce   : > { %6758 = vmatprep.subr.bf16.mxu1 %v7600_v15  ;;  %6822 = vmatprep.subr.bf16.mxu0 %v7601_v27 }
  0xcf   : > { %v564_v26 = vmul.f32 %v8455_v13, %v8455_v13  ;;  %v565_v14 = vmul.f32 %v8458_v21, %v8458_v21  ;;  %6759 = vmatpush3.bf16.msra.mxu1 %v7600_v15 }
  0xd0   : > { %6823 = vmatpush3.bf16.msra.mxu0 %v7601_v27  ;;  %6760 = vmatprep.subr.bf16.mxu1 %v7602_v28 }
  0xd1   : > { %592 = vadd.xlane.f32.xlu1 %v563_v12  ;;  %594 = vadd.xlane.f32.xlu0 %v564_v26 }
  0xd2   : > { %6824 = vmatprep.subr.bf16.mxu0 %v7603_v29 }
  0xd3   : > { %6761 = vmatpush3.bf16.msra.mxu1 %v7602_v28 }
  0xd4   : > { %6825 = vmatpush3.bf16.msra.mxu0 %v7603_v29  ;;  %6762 = vmatprep.subr.bf16.mxu1 %v7604_v32 }
  0xd5   : > { %596 = vadd.xlane.f32.xlu1 %v565_v14  ;;  %6826 = vmatprep.subr.bf16.mxu0 %v7605_v33 }
  0xd7   : > { %6763 = vmatpush3.bf16.msra.mxu1 %v7604_v32 }
  0xd8   : > { %6827 = vmatpush3.bf16.msra.mxu0 %v7605_v33  ;;  %6764 = vmatprep.subr.bf16.mxu1 %v7606_v34 }
  0xd9   : > { %6828 = vmatprep.subr.bf16.mxu0 %v7607_v35 }
  0xdb   : > { %6765 = vmatpush3.bf16.msra.mxu1 %v7606_v34 }
  0xdc   : > { %6829 = vmatpush3.bf16.msra.mxu0 %v7607_v35  ;;  %6782 = vmatprep.subr.bf16.mxu1 %v8497_v36 }
 0x142   : > { %v567_v37 = vpop.xlane.xlu0 %566 }
 0x143   : > { %v598_v40 = vmul.f32 0.0078125, %v567_v37 }
 0x145   : > { %v614_v41 = vadd.f32 1e-05, %v598_v40 }
 0x146   : > { %v569_v42 = vpop.xlane.xlu1 %568  ;;  %v571_v43 = vpop.xlane.xlu0 %570 }
 0x147   : > { %7736 = vrsqrt.f32 %v614_v41  ;;  %v599_v44 = vmul.f32 0.0078125, %v569_v42  ;;  %v600_v45 = vmul.f32 0.0078125, %v571_v43 }
 0x149   : > { %v615_v48 = vadd.f32 1e-05, %v599_v44  ;;  %v616_v49 = vadd.f32 1e-05, %v600_v45 }
 0x14a   : > { %v573_v50 = vpop.xlane.xlu1 %572  ;;  %v575_v51 = vpop.xlane.xlu0 %574 }
 0x14b   : > { %7738 = vrsqrt.f32 %v615_v48  ;;  %v601_v52 = vmul.f32 0.0078125, %v573_v50  ;;  %v602_v53 = vmul.f32 0.0078125, %v575_v51 }
 0x14c   : > { %7740 = vrsqrt.f32 %v616_v49 }
 0x14d   : > { %v617_v56 = vadd.f32 1e-05, %v601_v52  ;;  %v618_v57 = vadd.f32 1e-05, %v602_v53 }
 0x14e   : > { %v577_v58 = vpop.xlane.xlu1 %576  ;;  %v579_v59 = vpop.xlane.xlu0 %578 }
 0x14f   : > { %7742 = vrsqrt.f32 %v617_v56  ;;  %v603_v60 = vmul.f32 0.0078125, %v577_v58  ;;  %v604_v61 = vmul.f32 0.0078125, %v579_v59 }
 0x150   : > { %7744 = vrsqrt.f32 %v618_v57 }
 0x151   : > { %v7737_v62 = vpop.eup %7736  ;;  %v619_v63 = vadd.f32 1e-05, %v603_v60  ;;  %v620_v2 = vadd.f32 1e-05, %v604_v61 }
 0x152   : > { %v646_v3 = vmul.f32 %v7737_v62, %v8380_v22  ;;  %v581_v4 = vpop.xlane.xlu1 %580  ;;  %v583_v5 = vpop.xlane.xlu0 %582 }
 0x153   : > { %7746 = vrsqrt.f32 %v619_v63  ;;  %v605_v7 = vmul.f32 0.0078125, %v581_v4  ;;  %v606_v10 = vmul.f32 0.0078125, %v583_v5 }
 0x154   : > { %7748 = vrsqrt.f32 %v620_v2  ;;  %v668_v19 = vmul.f32 %v8504_v6, %v646_v3 }
 0x155   : > { %v7739_v11 = vpop.eup %7738  ;;  %v621_v16 = vadd.f32 1e-05, %v605_v7  ;;  %v622_v17 = vadd.f32 1e-05, %v606_v10 }
 0x156   : > { %v7741_v18 = vpop.eup %7740  ;;  %v647_v20 = vmul.f32 %v7739_v11, %v8388_v30  ;;  %v585_v22 = vpop.xlane.xlu1 %584  ;;  %v690_v30 = vadd.f32 %v8511_v24, %v668_v19 }
 0x157   : > { %v587_v12 = vpop.xlane.xlu0 %586  ;;  %v648_v25 = vmul.f32 %v7741_v18, %v8382_v23  ;;  %7750 = vrsqrt.f32 %v621_v16  ;;  %v607_v26 = vmul.f32 0.0078125, %v585_v22 }
 0x158   : > { %v608_v14 = vmul.f32 0.0078125, %v587_v12  ;;  %v669_v15 = vmul.f32 %v8504_v6, %v647_v20  ;;  %7752 = vrsqrt.f32 %v622_v17 }
 0x159   : > { %v7743_v27 = vpop.eup %7742  ;;  %v623_v28 = vadd.f32 1e-05, %v607_v26  ;;  %v670_v34 = vmul.f32 %v8504_v6, %v648_v25 }
 0x15a   : > { %v624_v29 = vadd.f32 1e-05, %v608_v14  ;;  %v7745_v32 = vpop.eup %7744  ;;  %v691_v33 = vadd.f32 %v8511_v24, %v669_v15  ;;  %v649_v35 = vmul.f32 %v7743_v27, %v8390_v31  ;;  %v589_v37 = vpop.xlane.xlu1 %588  ;;  %v7611_v27 = vld [vmem:[%s10344_s6 + $0x18] sm:$0xff]  }
 0x15b   : > { %v591_v23 = vpop.xlane.xlu0 %590  ;;  %v650_v40 = vmul.f32 %v7745_v32, %v8396_v38  ;;  %7754 = vrsqrt.f32 %v623_v28  ;;  %v609_v41 = vmul.f32 0.0078125, %v589_v37  ;;  %v692_v51 = vadd.f32 %v8511_v24, %v670_v34  ;;  %v7612_v37 = vld [vmem:[%s10344_s6 + $0x20] sm:$0xff]  }
 0x15c   : > { %v8520_v42 = vpack.c.bf16 %v691_v33, %v690_v30  ;;  %v671_v43 = vmul.f32 %v8504_v6, %v649_v35  ;;  %7756 = vrsqrt.f32 %v624_v29  ;;  %v610_v44 = vmul.f32 0.0078125, %v591_v23 }
 0x15d   : > { %v7747_v45 = vpop.eup %7746  ;;  %v672_v48 = vmul.f32 %v8504_v6, %v650_v40  ;;  %v625_v49 = vadd.f32 1e-05, %v609_v41 }
 0x15e   : > { %v7749_v50 = vpop.eup %7748  ;;  %v693_v31 = vadd.f32 %v8511_v24, %v671_v43  ;;  %v651_v52 = vmul.f32 %v7747_v45, %v8398_v39  ;;  %v626_v38 = vadd.f32 1e-05, %v610_v44  ;;  %v593_v53 = vpop.xlane.xlu1 %592  ;;  %6766 = vmatprep.mubr.bf16.mxu1 %v8520_v42  ;;  %6830 = vmatprep.mubr.bf16.mxu0 %v8520_v42  ;;  %v7609_v39 = vld [vmem:[%s10344_s6 + $0x8] sm:$0xff]  }
 0x15f   : > { %v595_v56 = vpop.xlane.xlu0 %594  ;;  %v652_v57 = vmul.f32 %v7749_v50, %v8404_v46  ;;  %7758 = vrsqrt.f32 %v625_v49  ;;  %v611_v58 = vmul.f32 0.0078125, %v593_v53  ;;  %v694_v63 = vadd.f32 %v8511_v24, %v672_v48  ;;  %v7613_v49 = vld [vmem:[%s10344_s6 + $0x28] sm:$0xff]   ;;  %v7614_v53 = vld [vmem:[%s10344_s6 + $0x30] sm:$0xff]  }
 0x160   : > { %v8530_v59 = vpack.c.bf16 %v693_v31, %v692_v51  ;;  %v673_v60 = vmul.f32 %v8504_v6, %v651_v52  ;;  %7760 = vrsqrt.f32 %v626_v38  ;;  %v612_v61 = vmul.f32 0.0078125, %v595_v56 }
 0x161   : > { %v7751_v62 = vpop.eup %7750  ;;  %v627_v2 = vadd.f32 1e-05, %v611_v58  ;;  %v674_v46 = vmul.f32 %v8504_v6, %v652_v57 }
 0x162   : > { %v7753_v3 = vpop.eup %7752  ;;  %v695_v4 = vadd.f32 %v8511_v24, %v673_v60  ;;  %v653_v5 = vmul.f32 %v7751_v62, %v8406_v47  ;;  %v628_v7 = vadd.f32 1e-05, %v612_v61  ;;  %v597_v10 = vpop.xlane.xlu1 %596  ;;  %6767 = vmatmul.mubr.bf16.vlgmr.msra.gmra.mrb[0].mxu1 %v8530_v59  ;;  %6831 = vmatmul.mubr.bf16.vlgmr.msra.gmra.mrb[0].mxu0 %v8530_v59  ;;  %v7610_v47 = vld [vmem:[%s10344_s6 + $0x10] sm:$0xff]  }
 0x163   : > { %v654_v11 = vmul.f32 %v7753_v3, %v8413_v54  ;;  %7762 = vrsqrt.f32 %v627_v2  ;;  %v613_v16 = vmul.f32 0.0078125, %v597_v10  ;;  %6783 = vmatpush3.bf16.msra.mxu1 %v8497_v36  ;;  %v696_v54 = vadd.f32 %v8511_v24, %v674_v46 }
 0x164   : > { %v8544_v17 = vpack.c.bf16 %v695_v4, %v694_v63  ;;  %v675_v18 = vmul.f32 %v8504_v6, %v653_v5  ;;  %7764 = vrsqrt.f32 %v628_v7  ;;  %6784 = vmatprep.subr.bf16.mxu1 %v7609_v39 }
 0x165   : > { %v7755_v19 = vpop.eup %7754  ;;  %v676_v20 = vmul.f32 %v8504_v6, %v654_v11  ;;  %v629_v22 = vadd.f32 1e-05, %v613_v16 }
 0x166   : > { %v7757_v12 = vpop.eup %7756  ;;  %v697_v25 = vadd.f32 %v8511_v24, %v675_v18  ;;  %v655_v36 = vmul.f32 %v7755_v19, %v8416_v55  ;;  %6770 = vmatprep.mubr.bf16.mxu1 %v8544_v17  ;;  %6834 = vmatprep.mubr.bf16.mxu0 %v8544_v17 }
 0x167   : > { %v656_v26 = vmul.f32 %v7757_v12, %v8429_v0  ;;  %7766 = vrsqrt.f32 %v629_v22  ;;  %6785 = vmatpush3.bf16.msra.mxu1 %v7609_v39  ;;  %v698_v55 = vadd.f32 %v8511_v24, %v676_v20 }
 0x168   : > { %v8557_v14 = vpack.c.bf16 %v697_v25, %v696_v54  ;;  %v677_v15 = vmul.f32 %v8504_v6, %v655_v36  ;;  %6786 = vmatprep.subr.bf16.mxu1 %v7610_v47 }
 0x169   : > { %v7759_v28 = vpop.eup %7758  ;;  %v678_v30 = vmul.f32 %v8504_v6, %v656_v26 }
 0x16a   : > { %v7761_v29 = vpop.eup %7760  ;;  %v699_v32 = vadd.f32 %v8511_v24, %v677_v15  ;;  %v657_v0 = vmul.f32 %v7759_v28, %v8432_v1  ;;  %6771 = vmatmul.mubr.bf16.gmra.mrb[4].mxu1 %v8557_v14  ;;  %6835 = vmatmul.mubr.bf16.gmra.mrb[4].mxu0 %v8557_v14 }
 0x16b   : > { %v658_v33 = vmul.f32 %v7761_v29, %v8439_v8  ;;  %6787 = vmatpush3.bf16.msra.mxu1 %v7610_v47  ;;  %v700_v41 = vadd.f32 %v8511_v24, %v678_v30 }
 0x16c   : > { %v8570_v34 = vpack.c.bf16 %v699_v32, %v698_v55  ;;  %v679_v35 = vmul.f32 %v8504_v6, %v657_v0  ;;  %6788 = vmatprep.subr.bf16.mxu1 %v7611_v27 }
 0x16d   : > { %v7763_v23 = vpop.eup %7762  ;;  %v680_v40 = vmul.f32 %v8504_v6, %v658_v33 }
 0x16e   : > { %v7765_v1 = vpop.eup %7764  ;;  %v701_v43 = vadd.f32 %v8511_v24, %v679_v35  ;;  %v659_v8 = vmul.f32 %v7763_v23, %v8442_v9  ;;  %6774 = vmatprep.mubr.bf16.mxu1 %v8570_v34  ;;  %6838 = vmatprep.mubr.bf16.mxu0 %v8570_v34 }
 0x16f   : > { %v660_v44 = vmul.f32 %v7765_v1, %v8455_v13  ;;  %6789 = vmatpush3.bf16.msra.mxu1 %v7611_v27  ;;  %v702_v51 = vadd.f32 %v8511_v24, %v680_v40 }
 0x170   : > { %v8583_v45 = vpack.c.bf16 %v701_v43, %v700_v41  ;;  %v681_v48 = vmul.f32 %v8504_v6, %v659_v8  ;;  %6790 = vmatprep.subr.bf16.mxu1 %v7612_v37 }
 0x171   : > { %v7767_v50 = vpop.eup %7766  ;;  %v682_v31 = vmul.f32 %v8504_v6, %v660_v44 }
 0x172   : > { %v703_v9 = vadd.f32 %v8511_v24, %v681_v48  ;;  %v661_v52 = vmul.f32 %v7767_v50, %v8458_v21  ;;  %6775 = vmatmul.mubr.bf16.gmra.mrb[8].mxu1 %v8583_v45  ;;  %6839 = vmatmul.mubr.bf16.gmra.mrb[8].mxu0 %v8583_v45 }
 0x173   : > { %6791 = vmatpush3.bf16.msra.mxu1 %v7612_v37  ;;  %v704_v56 = vadd.f32 %v8511_v24, %v682_v31 }
 0x174   : > { %v8595_v13 = vpack.c.bf16 %v703_v9, %v702_v51  ;;  %v683_v38 = vmul.f32 %v8504_v6, %v661_v52  ;;  %6792 = vmatprep.subr.bf16.mxu1 %v7613_v49  ;;  %v7615_v6 = vld [vmem:[%s10344_s6 + $0x38] sm:$0xff]  }
 0x176   : > { %v705_v57 = vadd.f32 %v8511_v24, %v683_v38  ;;  %6778 = vmatprep.mubr.bf16.mxu1 %v8595_v13  ;;  %6842 = vmatprep.mubr.bf16.mxu0 %v8595_v13 }
 0x177   : > { %6793 = vmatpush3.bf16.msra.mxu1 %v7613_v49 }
 0x178   : > { %v8605_v21 = vpack.c.bf16 %v705_v57, %v704_v56  ;;  %6794 = vmatprep.subr.bf16.mxu1 %v7614_v53 }
 0x17a   : > { %6779 = vmatmul.mubr.bf16.gmra.mrb[12].mxu1 %v8605_v21  ;;  %6843 = vmatmul.mubr.bf16.gmra.mrb[12].mxu0 %v8605_v21 }
 0x17b   : > { %6795 = vmatpush3.bf16.msra.mxu1 %v7614_v53  ;;  %6798 = vmatprep.mubr.bf16.mxu1 %v8520_v42 }
 0x17c   : > { %6796 = vmatprep.subr.bf16.mxu1 %v7615_v6 }
 0x17f   : > { %6797 = vmatpush3.bf16.msra.mxu1 %v7615_v6 }
 0x182   : > { %6799 = vmatmul.mubr.bf16.vlgmr.msra.gmra.mrb[16].mxu1 %v8530_v59 }
 0x183   : > { %6802 = vmatprep.mubr.bf16.mxu1 %v8544_v17 }
 0x18a   : > { %6803 = vmatmul.mubr.bf16.gmra.mrb[20].mxu1 %v8557_v14 }
 0x18b   : > { %6806 = vmatprep.mubr.bf16.mxu1 %v8570_v34 }
 0x192   : > { %6807 = vmatmul.mubr.bf16.gmra.mrb[24].mxu1 %v8583_v45 }
 0x193   : > { %6810 = vmatprep.mubr.bf16.mxu1 %v8595_v13 }
 0x19a   : > { %6811 = vmatmul.mubr.bf16.gmra.mrb[28].mxu1 %v8605_v21 }
 0x235   : > { %v8620_v24 = vpop.f32.mrb[0].mxu1  ;;  %v6832_v58 = vpop.f32.mrb[0].mxu0 }
 0x236   : > { %v812_v60 = vpop.f32.mrb[1].mxu1  ;;  %v1150_v61 = vpop.f32.mrb[1].mxu0 }
 0x237   : > { %v8622_v39 = vpop.f32.mrb[2].mxu1  ;;  %v6833_v62 = vpop.f32.mrb[2].mxu0 }
 0x238   : > { %v876_v63 = vpack.c.bf16 %v8622_v39, %v8620_v24  ;;  %v1214_v2 = vpack.c.bf16 %v6833_v62, %v6832_v58  ;;  %v815_v3 = vpop.f32.mrb[3].mxu1  ;;  %v1153_v4 = vpop.f32.mrb[3].mxu0  ;;  %v7620_v24 = vld [vmem:[%s10344_s6 + $0x60] sm:$0xff]   ;;  %v7621_v39 = vld [vmem:[%s10344_s6 + $0x68] sm:$0xff]  }
 0x239   : > { %v875_v46 = vpack.c.bf16 %v815_v3, %v812_v60  ;;  %v1213_v5 = vpack.c.bf16 %v1153_v4, %v1150_v61 }
 0x23b   : > { %6862 = vmatprep.mubr.msk.bf16.mxu1 %vm1221_vm0, %v875_v46  ;;  %6878 = vmatprep.subr.bf16.mxu0 %v1213_v5 }
 0x23c   : > { %6879 = vmatpush3.bf16.msra.mxu0 %v1213_v5 }
 0x23d   : > { %v8627_v7 = vpop.f32.mrb[4].mxu1  ;;  %v6836_v10 = vpop.f32.mrb[4].mxu0  ;;  %6880 = vmatprep.subr.bf16.mxu0 %v1214_v2 }
 0x23e   : > { %v8629_v11 = vpop.f32.mrb[5].mxu1  ;;  %v1166_v16 = vpop.f32.mrb[5].mxu0 }
 0x23f   : > { %v8631_v18 = vpop.f32.mrb[6].mxu1  ;;  %v6837_v47 = vpop.f32.mrb[6].mxu0 }
 0x240   : > { %v878_v19 = vpack.c.bf16 %v8631_v18, %v8627_v7  ;;  %v1216_v20 = vpack.c.bf16 %v6837_v47, %v6836_v10  ;;  %v8635_v22 = vpop.f32.mrb[7].mxu1  ;;  %v1169_v12 = vpop.f32.mrb[7].mxu0  ;;  %6881 = vmatpush3.bf16.msra.mxu0 %v1214_v2  ;;  %v7623_v7 = vld [vmem:[%s10344_s6 + $0x78] sm:$0xff]  }
 0x241   : > { %v877_v54 = vpack.c.bf16 %v8635_v22, %v8629_v11  ;;  %v1215_v25 = vpack.c.bf16 %v1169_v12, %v1166_v16 }
 0x243   : > { %6882 = vmatprep.subr.bf16.mxu0 %v1215_v25 }
 0x244   : > { %6883 = vmatpush3.bf16.msra.mxu0 %v1215_v25 }
 0x245   : > { %v8639_v36 = vpop.f32.mrb[8].mxu1  ;;  %v6840_v26 = vpop.f32.mrb[8].mxu0  ;;  %6884 = vmatprep.subr.bf16.mxu0 %v1216_v20 }
 0x246   : > { %v8641_v15 = vpop.f32.mrb[9].mxu1  ;;  %v1182_v27 = vpop.f32.mrb[9].mxu0 }
 0x247   : > { %v8643_v28 = vpop.f32.mrb[10].mxu1  ;;  %v6841_v55 = vpop.f32.mrb[10].mxu0 }
 0x248   : > { %v880_v29 = vpack.c.bf16 %v8643_v28, %v8639_v36  ;;  %v1218_v32 = vpack.c.bf16 %v6841_v55, %v6840_v26  ;;  %v8647_v30 = vpop.f32.mrb[11].mxu1  ;;  %v1185_v0 = vpop.f32.mrb[11].mxu0  ;;  %6885 = vmatpush3.bf16.msra.mxu0 %v1216_v20 }
 0x249   : > { %v879_v33 = vpack.c.bf16 %v8647_v30, %v8641_v15  ;;  %v1217_v35 = vpack.c.bf16 %v1185_v0, %v1182_v27 }
 0x24b   : > { %6886 = vmatprep.subr.bf16.mxu0 %v1217_v35 }
 0x24c   : > { %6887 = vmatpush3.bf16.msra.mxu0 %v1217_v35 }
 0x24d   : > { %v8651_v37 = vpop.f32.mrb[12].mxu1  ;;  %v6844_v23 = vpop.f32.mrb[12].mxu0  ;;  %6888 = vmatprep.subr.bf16.mxu0 %v1218_v32 }
 0x24e   : > { %v8653_v40 = vpop.f32.mrb[13].mxu1  ;;  %v1198_v1 = vpop.f32.mrb[13].mxu0 }
 0x24f   : > { %v8655_v41 = vpop.f32.mrb[14].mxu1  ;;  %v6845_v43 = vpop.f32.mrb[14].mxu0 }
 0x250   : > { %v882_v8 = vpack.c.bf16 %v8655_v41, %v8651_v37  ;;  %v1220_v44 = vpack.c.bf16 %v6845_v43, %v6844_v23  ;;  %v8659_v48 = vpop.f32.mrb[15].mxu1  ;;  %v1201_v49 = vpop.f32.mrb[15].mxu0  ;;  %6889 = vmatpush3.bf16.msra.mxu0 %v1218_v32  ;;  %v7616_v43 = vld [vmem:[%s10344_s6 + $0x40] sm:$0xff]  }
 0x251   : > { %v881_v50 = vpack.c.bf16 %v8659_v48, %v8653_v40  ;;  %v1219_v51 = vpack.c.bf16 %v1201_v49, %v1198_v1  ;;  %v7617_v49 = vld [vmem:[%s10344_s6 + $0x48] sm:$0xff]  }
 0x253   : > { %6890 = vmatprep.subr.bf16.mxu0 %v1219_v51 }
 0x254   : > { %6891 = vmatpush3.bf16.msra.mxu0 %v1219_v51  ;;  %v7618_v51 = vld [vmem:[%s10344_s6 + $0x50] sm:$0xff]  }
 0x255   : > { %v6800_v9 = vpop.f32.mrb[16].mxu1  ;;  %6892 = vmatprep.subr.bf16.mxu0 %v1220_v44 }
 0x256   : > { %v981_v31 = vpop.f32.mrb[17].mxu1 }
 0x257   : > { %v6801_v52 = vpop.f32.mrb[18].mxu1 }
 0x258   : > { %v1045_v38 = vpack.c.bf16 %v6801_v52, %v6800_v9  ;;  %v984_v53 = vpop.f32.mrb[19].mxu1  ;;  %6893 = vmatpush3.bf16.msra.mxu0 %v1220_v44  ;;  %v7619_v9 = vld [vmem:[%s10344_s6 + $0x58] sm:$0xff]  }
 0x259   : > { %v1044_v56 = vpack.c.bf16 %v984_v53, %v981_v31 }
 0x25a   : > { %v1250_v3 = vsel %vm1221_vm0, %v1045_v38, 0 }
 0x25b   : > { %v1247_v57 = vsel %vm1221_vm0, %v1044_v56, 0  ;;  %7518 = vmatprep.subr.msk.bf16.mxu1 %vm1221_vm0, %v1044_v56 }
 0x25c   : > { %6847 = vmatpush3.bf16.xpose.msra.mxu1 %v1247_v57 }
 0x25d   : > { %v6804_v6 = vpop.f32.mrb[20].mxu1  ;;  %7519 = vmatprep.subr.msk.bf16.mxu1 %vm1221_vm0, %v1045_v38 }
 0x25e   : > { %v997_v58 = vpop.f32.mrb[21].mxu1 }
 0x25f   : > { %v6805_v60 = vpop.f32.mrb[22].mxu1 }
 0x260   : > { %v1047_v61 = vpack.c.bf16 %v6805_v60, %v6804_v6  ;;  %v1000_v62 = vpop.f32.mrb[23].mxu1 }
 0x261   : > { %v1046_v2 = vpack.c.bf16 %v1000_v62, %v997_v58 }
 0x262   : > { %v1256_v0 = vsel %vm1221_vm0, %v1047_v61, 0 }
 0x263   : > { %v1253_v20 = vsel %vm1221_vm0, %v1046_v2, 0 }
 0x264   : > { %6849 = vmatpush3.bf16.xpose.msra.mxu1 %v1250_v3 }
 0x265   : > { %v6808_v4 = vpop.f32.mrb[24].mxu1  ;;  %7520 = vmatprep.subr.msk.bf16.mxu1 %vm1221_vm0, %v1046_v2 }
 0x266   : > { %v1013_v46 = vpop.f32.mrb[25].mxu1 }
 0x267   : > { %v6809_v5 = vpop.f32.mrb[26].mxu1 }
 0x268   : > { %v1049_v10 = vpack.c.bf16 %v6809_v5, %v6808_v4  ;;  %v1016_v16 = vpop.f32.mrb[27].mxu1 }
 0x269   : > { %v1048_v47 = vpack.c.bf16 %v1016_v16, %v1013_v46 }
 0x26a   : > { %v1262_v23 = vsel %vm1221_vm0, %v1049_v10, 0 }
 0x26b   : > { %v1259_v35 = vsel %vm1221_vm0, %v1048_v47, 0 }
 0x26c   : > { %6851 = vmatpush3.bf16.xpose.msra.mxu1 %v1253_v20 }
 0x26d   : > { %v6812_v12 = vpop.f32.mrb[28].mxu1  ;;  %7521 = vmatprep.subr.msk.bf16.mxu1 %vm1221_vm0, %v1047_v61 }
 0x26e   : > { %v1029_v25 = vpop.f32.mrb[29].mxu1 }
 0x26f   : > { %v6813_v26 = vpop.f32.mrb[30].mxu1 }
 0x270   : > { %v1051_v27 = vpack.c.bf16 %v6813_v26, %v6812_v12  ;;  %v1032_v55 = vpop.f32.mrb[31].mxu1 }
 0x271   : > { %v1050_v32 = vpack.c.bf16 %v1032_v55, %v1029_v25 }
 0x272   : > { %v1268_v44 = vsel %vm1221_vm0, %v1051_v27, 0 }
 0x273   : > { %v1265_v1 = vsel %vm1221_vm0, %v1050_v32, 0 }
 0x274   : > { %6853 = vmatpush3.bf16.xpose.msra.mxu1 %v1256_v0 }
 0x275   : > { %7522 = vmatprep.subr.msk.bf16.mxu1 %vm1221_vm0, %v1048_v47 }
 0x27c   : > { %6855 = vmatpush3.bf16.xpose.msra.mxu1 %v1259_v35 }
 0x27d   : > { %7523 = vmatprep.subr.msk.bf16.mxu1 %vm1221_vm0, %v1049_v10 }
 0x284   : > { %6857 = vmatpush3.bf16.xpose.msra.mxu1 %v1262_v23 }
 0x285   : > { %7524 = vmatprep.subr.msk.bf16.mxu1 %vm1221_vm0, %v1050_v32 }
 0x28c   : > { %6859 = vmatpush3.bf16.xpose.msra.mxu1 %v1265_v1 }
 0x28d   : > { %7525 = vmatprep.subr.msk.bf16.mxu1 %vm1221_vm0, %v1051_v27 }
 0x294   : > { %6861 = vmatpush3.bf16.xpose.msra.mxu1 %v1268_v44 }
 0x295   : > { %6942 = vmatprep.subr.bf16.mxu1 %v7616_v43 }
 0x29b   : > { %6863 = vmatmul.mubr.msk.bf16.vlgmr.msra.gmra.mrb[32].mxu1 %vm1221_vm0, %v876_v63  ;;  %v7622_v63 = vld [vmem:[%s10344_s6 + $0x70] sm:$0xff]  }
 0x29c   : > { %6866 = vmatprep.mubr.msk.bf16.mxu1 %vm1221_vm0, %v877_v54  ;;  %6943 = vmatpush3.bf16.msra.mxu1 %v7616_v43 }
 0x29d   : > { %6944 = vmatprep.subr.bf16.mxu1 %v7617_v49 }
 0x2a0   : > { %6945 = vmatpush3.bf16.msra.mxu1 %v7617_v49 }
 0x2a1   : > { %6946 = vmatprep.subr.bf16.mxu1 %v7618_v51 }
 0x2a3   : > { %6867 = vmatmul.mubr.msk.bf16.gmra.mrb[36].mxu1 %vm1221_vm0, %v878_v19 }
 0x2a4   : > { %6870 = vmatprep.mubr.msk.bf16.mxu1 %vm1221_vm0, %v879_v33  ;;  %6947 = vmatpush3.bf16.msra.mxu1 %v7618_v51 }
 0x2a5   : > { %6948 = vmatprep.subr.bf16.mxu1 %v7619_v9 }
 0x2a8   : > { %6949 = vmatpush3.bf16.msra.mxu1 %v7619_v9 }
 0x2a9   : > { %6950 = vmatprep.subr.bf16.mxu1 %v7620_v24 }
 0x2ab   : > { %6871 = vmatmul.mubr.msk.bf16.gmra.mrb[40].mxu1 %vm1221_vm0, %v880_v29 }
 0x2ac   : > { %6874 = vmatprep.mubr.msk.bf16.mxu1 %vm1221_vm0, %v881_v50  ;;  %6951 = vmatpush3.bf16.msra.mxu1 %v7620_v24 }
 0x2ad   : > { %6952 = vmatprep.subr.bf16.mxu1 %v7621_v39 }
 0x2b0   : > { %6953 = vmatpush3.bf16.msra.mxu1 %v7621_v39 }
 0x2b1   : > { %6954 = vmatprep.subr.bf16.mxu1 %v7622_v63 }
 0x2b3   : > { %6875 = vmatmul.mubr.msk.bf16.gmra.mrb[44].mxu1 %vm1221_vm0, %v882_v8 }
 0x2b4   : > { %6955 = vmatpush3.bf16.msra.mxu1 %v7622_v63  ;;  %6958 = vmatprep.mubr.bf16.mxu1 %v8520_v42 }
 0x2b5   : > { %6956 = vmatprep.subr.bf16.mxu1 %v7623_v7 }
 0x2b8   : > { %6957 = vmatpush3.bf16.msra.mxu1 %v7623_v7 }
 0x2bb   : > { %6959 = vmatmul.mubr.bf16.vlgmr.msra.gmra.mrb[48].mxu1 %v8530_v59 }
 0x2bc   : > { %6962 = vmatprep.mubr.bf16.mxu1 %v8544_v17 }
 0x2c3   : > { %6963 = vmatmul.mubr.bf16.gmra.mrb[52].mxu1 %v8557_v14 }
 0x2c4   : > { %6966 = vmatprep.mubr.bf16.mxu1 %v8570_v34 }
 0x2cb   : > { %6967 = vmatmul.mubr.bf16.gmra.mrb[56].mxu1 %v8583_v45 }
 0x2cc   : > { %6970 = vmatprep.mubr.bf16.mxu1 %v8595_v13 }
 0x2d3   : > { %6971 = vmatmul.mubr.bf16.gmra.mrb[60].mxu1 %v8605_v21 }
 0x36e   : > { %v8739_v11 = vpop.f32.mrb[32].mxu1 }
 0x36f   : > { %v8741_v18 = vpop.f32.mrb[33].mxu1 }
 0x370   : > { %1367 = vmax.xlane.f32.xlu0 %v8741_v18  ;;  %v8744_v19 = vpop.f32.mrb[34].mxu1 }
 0x371   : > { %v8746_v22 = vpop.f32.mrb[35].mxu1 }
 0x372   : > { %1369 = vmax.xlane.f32.xlu1 %v8746_v22 }
 0x374   : > { %1371 = vmax.xlane.f32.xlu0 %v8739_v11 }
 0x376   : > { %1373 = vmax.xlane.f32.xlu1 %v8744_v19  ;;  %v8751_v54 = vpop.f32.mrb[36].mxu1 }
 0x377   : > { %v8753_v36 = vpop.f32.mrb[37].mxu1 }
 0x378   : > { %1375 = vmax.xlane.f32.xlu0 %v8753_v36  ;;  %v8756_v15 = vpop.f32.mrb[38].mxu1 }
 0x379   : > { %v8758_v28 = vpop.f32.mrb[39].mxu1 }
 0x37a   : > { %1377 = vmax.xlane.f32.xlu1 %v8758_v28 }
 0x37c   : > { %1379 = vmax.xlane.f32.xlu0 %v8751_v54 }
 0x37e   : > { %1381 = vmax.xlane.f32.xlu1 %v8756_v15  ;;  %v8763_v29 = vpop.f32.mrb[40].mxu1 }
 0x37f   : > { %v8765_v30 = vpop.f32.mrb[41].mxu1 }
 0x380   : > { %1383 = vmax.xlane.f32.xlu0 %v8765_v30  ;;  %v8768_v33 = vpop.f32.mrb[42].mxu1 }
 0x381   : > { %v8770_v37 = vpop.f32.mrb[43].mxu1 }
 0x382   : > { %1385 = vmax.xlane.f32.xlu1 %v8770_v37 }
 0x384   : > { %1387 = vmax.xlane.f32.xlu0 %v8763_v29 }
 0x386   : > { %1389 = vmax.xlane.f32.xlu1 %v8768_v33  ;;  %v8775_v40 = vpop.f32.mrb[44].mxu1 }
 0x387   : > { %v8777_v41 = vpop.f32.mrb[45].mxu1 }
 0x388   : > { %1391 = vmax.xlane.f32.xlu0 %v8777_v41  ;;  %v8780_v8 = vpop.f32.mrb[46].mxu1 }
 0x389   : > { %v8782_v48 = vpop.f32.mrb[47].mxu1 }
 0x38a   : > { %1393 = vmax.xlane.f32.xlu1 %v8782_v48 }
 0x38c   : > { %1395 = vmax.xlane.f32.xlu0 %v8775_v40 }
 0x38e   : > { %1397 = vmax.xlane.f32.xlu1 %v8780_v8  ;;  %v6960_v50 = vpop.f32.mrb[48].mxu1 }
 0x38f   : > { %v1897_v31 = vpop.f32.mrb[49].mxu1 }
 0x390   : > { %v6961_v52 = vpop.f32.mrb[50].mxu1 }
 0x391   : > { %v1961_v38 = vpack.c.bf16 %v6961_v52, %v6960_v50  ;;  %v1900_v53 = vpop.f32.mrb[51].mxu1 }
 0x392   : > { %v1960_v56 = vpack.c.bf16 %v1900_v53, %v1897_v31 }
 0x393   : > { %v2166_v3 = vsel %vm1221_vm0, %v1961_v38, 0 }
 0x394   : > { %v2163_v57 = vsel %vm1221_vm0, %v1960_v56, 0  ;;  %7526 = vmatprep.subr.msk.bf16.mxu1 %vm1221_vm0, %v1960_v56 }
 0x395   : > { %7007 = vmatpush3.bf16.xpose.msra.mxu1 %v2163_v57 }
 0x396   : > { %v6964_v6 = vpop.f32.mrb[52].mxu1  ;;  %7527 = vmatprep.subr.msk.bf16.mxu1 %vm1221_vm0, %v1961_v38 }
 0x397   : > { %v1913_v58 = vpop.f32.mrb[53].mxu1 }
 0x398   : > { %v6965_v60 = vpop.f32.mrb[54].mxu1 }
 0x399   : > { %v1963_v61 = vpack.c.bf16 %v6965_v60, %v6964_v6  ;;  %v1916_v62 = vpop.f32.mrb[55].mxu1 }
 0x39a   : > { %v1962_v2 = vpack.c.bf16 %v1916_v62, %v1913_v58 }
 0x39b   : > { %v2172_v0 = vsel %vm1221_vm0, %v1963_v61, 0 }
 0x39c   : > { %v2169_v20 = vsel %vm1221_vm0, %v1962_v2, 0 }
 0x39d   : > { %7009 = vmatpush3.bf16.xpose.msra.mxu1 %v2166_v3 }
 0x39e   : > { %v6968_v4 = vpop.f32.mrb[56].mxu1  ;;  %7528 = vmatprep.subr.msk.bf16.mxu1 %vm1221_vm0, %v1962_v2 }
 0x39f   : > { %v1929_v46 = vpop.f32.mrb[57].mxu1 }
 0x3a0   : > { %v6969_v5 = vpop.f32.mrb[58].mxu1 }
 0x3a1   : > { %v1965_v10 = vpack.c.bf16 %v6969_v5, %v6968_v4  ;;  %v1932_v16 = vpop.f32.mrb[59].mxu1 }
 0x3a2   : > { %v1964_v47 = vpack.c.bf16 %v1932_v16, %v1929_v46 }
 0x3a3   : > { %v2178_v23 = vsel %vm1221_vm0, %v1965_v10, 0 }
 0x3a4   : > { %v2175_v35 = vsel %vm1221_vm0, %v1964_v47, 0 }
 0x3a5   : > { %7011 = vmatpush3.bf16.xpose.msra.mxu1 %v2169_v20 }
 0x3a6   : > { %v6972_v12 = vpop.f32.mrb[60].mxu1  ;;  %7529 = vmatprep.subr.msk.bf16.mxu1 %vm1221_vm0, %v1963_v61 }
 0x3a7   : > { %v1945_v25 = vpop.f32.mrb[61].mxu1 }
 0x3a8   : > { %v6973_v26 = vpop.f32.mrb[62].mxu1 }
 0x3a9   : > { %v1967_v27 = vpack.c.bf16 %v6973_v26, %v6972_v12  ;;  %v1948_v55 = vpop.f32.mrb[63].mxu1 }
 0x3aa   : > { %v1966_v32 = vpack.c.bf16 %v1948_v55, %v1945_v25 }
 0x3ab   : > { %v2184_v43 = vsel %vm1221_vm0, %v1967_v27, 0 }
 0x3ac   : > { %v2181_v1 = vsel %vm1221_vm0, %v1966_v32, 0 }
 0x3ad   : > { %7013 = vmatpush3.bf16.xpose.msra.mxu1 %v2172_v0 }
 0x3ae   : > { %7530 = vmatprep.subr.msk.bf16.mxu1 %vm1221_vm0, %v1964_v47 }
 0x3b5   : > { %7015 = vmatpush3.bf16.xpose.msra.mxu1 %v2175_v35 }
 0x3b6   : > { %7531 = vmatprep.subr.msk.bf16.mxu1 %vm1221_vm0, %v1965_v10 }
 0x3bd   : > { %7017 = vmatpush3.bf16.xpose.msra.mxu1 %v2178_v23 }
 0x3be   : > { %7532 = vmatprep.subr.msk.bf16.mxu1 %vm1221_vm0, %v1966_v32 }
 0x3c5   : > { %7019 = vmatpush3.bf16.xpose.msra.mxu1 %v2181_v1 }
 0x3c6   : > { %7533 = vmatprep.subr.msk.bf16.mxu1 %vm1221_vm0, %v1967_v27 }
 0x3cd   : > { %7021 = vmatpush3.bf16.xpose.msra.mxu1 %v2184_v43 }
 0x3fd   : > { %v1368_v44 = vpop.xlane.xlu0 %1367 }
 0x3fe   : > { %v1399_v49 = vsub.f32 %v8741_v18, %v1368_v44 }
 0x3ff   : > { %v1370_v51 = vpop.xlane.xlu1 %1369 }
 0x400   : > { %v1415_v9 = vmul.f32 1.442695, %v1399_v49  ;;  %v1400_v24 = vsub.f32 %v8746_v22, %v1370_v51 }
 0x401   : > { %v1372_v39 = vpop.xlane.xlu0 %1371 }
 0x402   : > { %7768 = vpow2.f32 %v1415_v9  ;;  %v1417_v63 = vmul.f32 1.442695, %v1400_v24  ;;  %v1401_v7 = vsub.f32 %v8739_v11, %v1372_v39 }
 0x403   : > { %v1374_v50 = vpop.xlane.xlu1 %1373 }
 0x404   : > { %7770 = vpow2.f32 %v1417_v63  ;;  %v1419_v31 = vmul.f32 1.442695, %v1401_v7  ;;  %v1402_v52 = vsub.f32 %v8744_v19, %v1374_v50  ;;  %v7624_v50 = vld [vmem:[%s10343_s5 + $0x40] sm:$0xff]  }
 0x405   : > { %v1376_v38 = vpop.xlane.xlu0 %1375  ;;  %6910 = vmatprep.subr.bf16.mxu0 %v7624_v50 }
 0x406   : > { %7772 = vpow2.f32 %v1419_v31  ;;  %v1421_v53 = vmul.f32 1.442695, %v1402_v52  ;;  %v1403_v56 = vsub.f32 %v8753_v36, %v1376_v38 }
 0x407   : > { %v1378_v18 = vpop.xlane.xlu1 %1377 }
 0x408   : > { %7774 = vpow2.f32 %v1421_v53  ;;  %v1423_v57 = vmul.f32 1.442695, %v1403_v56  ;;  %v1404_v22 = vsub.f32 %v8758_v28, %v1378_v18 }
 0x409   : > { %v1380_v6 = vpop.xlane.xlu0 %1379 }
 0x40a   : > { %7776 = vpow2.f32 %v1423_v57  ;;  %v1425_v58 = vmul.f32 1.442695, %v1404_v22  ;;  %v1405_v11 = vsub.f32 %v8751_v54, %v1380_v6 }
 0x40b   : > { %v1382_v60 = vpop.xlane.xlu1 %1381 }
 0x40c   : > { %v8810_v61 = vpop.eup %7768  ;;  %7778 = vpow2.f32 %v1425_v58  ;;  %v1427_v19 = vmul.f32 1.442695, %v1405_v11  ;;  %v1406_v62 = vsub.f32 %v8756_v15, %v1382_v60 }
 0x40d   : > { %v1384_v2 = vpop.xlane.xlu0 %1383  ;;  %1447 = vadd.xlane.f32.xlu0 %v8810_v61 }
 0x40e   : > { %v8814_v36 = vpop.eup %7770  ;;  %7780 = vpow2.f32 %v1427_v19  ;;  %v1429_v3 = vmul.f32 1.442695, %v1406_v62  ;;  %v1407_v28 = vsub.f32 %v8765_v30, %v1384_v2 }
 0x40f   : > { %v1386_v4 = vpop.xlane.xlu1 %1385  ;;  %1449 = vadd.xlane.f32.xlu1 %v8814_v36 }
 0x410   : > { %v8818_v54 = vpop.eup %7772  ;;  %7782 = vpow2.f32 %v1429_v3  ;;  %v1431_v46 = vmul.f32 1.442695, %v1407_v28  ;;  %v1408_v5 = vsub.f32 %v8770_v37, %v1386_v4 }
 0x411   : > { %v1388_v10 = vpop.xlane.xlu0 %1387  ;;  %1451 = vadd.xlane.f32.xlu0 %v8818_v54 }
 0x412   : > { %v8822_v15 = vpop.eup %7774  ;;  %7784 = vpow2.f32 %v1431_v46  ;;  %v1433_v16 = vmul.f32 1.442695, %v1408_v5  ;;  %v1409_v47 = vsub.f32 %v8763_v29, %v1388_v10 }
 0x413   : > { %v1390_v20 = vpop.xlane.xlu1 %1389  ;;  %1453 = vadd.xlane.f32.xlu1 %v8822_v15 }
 0x414   : > { %v8826_v30 = vpop.eup %7776  ;;  %7786 = vpow2.f32 %v1433_v16  ;;  %v1435_v12 = vmul.f32 1.442695, %v1409_v47  ;;  %v1410_v25 = vsub.f32 %v8768_v33, %v1390_v20 }
 0x415   : > { %1455 = vadd.xlane.f32.xlu0 %v8826_v30  ;;  %v1392_v37 = vpop.xlane.xlu0 %1391 }
 0x416   : > { %v8830_v26 = vpop.eup %7778  ;;  %7788 = vpow2.f32 %v1435_v12  ;;  %v1437_v27 = vmul.f32 1.442695, %v1410_v25  ;;  %v1411_v55 = vsub.f32 %v8777_v41, %v1392_v37  ;;  %v7626_v37 = vld [vmem:[%s10343_s5 + $0x50] sm:$0xff]  }
 0x417   : > { %1457 = vadd.xlane.f32.xlu1 %v8830_v26  ;;  %v1394_v29 = vpop.xlane.xlu1 %1393 }
 0x418   : > { %v8834_v32 = vpop.eup %7780  ;;  %7790 = vpow2.f32 %v1437_v27  ;;  %v1439_v0 = vmul.f32 1.442695, %v1411_v55  ;;  %v1412_v35 = vsub.f32 %v8782_v48, %v1394_v29 }
 0x419   : > { %1459 = vadd.xlane.f32.xlu0 %v8834_v32  ;;  %v1396_v33 = vpop.xlane.xlu0 %1395 }
 0x41a   : > { %v8838_v23 = vpop.eup %7782  ;;  %7792 = vpow2.f32 %v1439_v0  ;;  %v1441_v1 = vmul.f32 1.442695, %v1412_v35  ;;  %v1413_v43 = vsub.f32 %v8775_v40, %v1396_v33  ;;  %v7627_v33 = vld [vmem:[%s10343_s5 + $0x58] sm:$0xff]  }
 0x41b   : > { %1461 = vadd.xlane.f32.xlu1 %v8838_v23  ;;  %v1398_v41 = vpop.xlane.xlu1 %1397 }
 0x41c   : > { %v8842_v44 = vpop.eup %7784  ;;  %7794 = vpow2.f32 %v1441_v1  ;;  %v1443_v49 = vmul.f32 1.442695, %v1413_v43  ;;  %v1414_v51 = vsub.f32 %v8780_v8, %v1398_v41 }
 0x41d   : > { %1463 = vadd.xlane.f32.xlu0 %v8842_v44 }
 0x41e   : > { %v8846_v48 = vpop.eup %7786  ;;  %7796 = vpow2.f32 %v1443_v49  ;;  %v1445_v9 = vmul.f32 1.442695, %v1414_v51  ;;  %v7628_v51 = vld [vmem:[%s10343_s5 + $0x60] sm:$0xff]  }
 0x41f   : > { %1465 = vadd.xlane.f32.xlu1 %v8846_v48 }
 0x420   : > { %v8849_v24 = vpop.eup %7788  ;;  %7798 = vpow2.f32 %v1445_v9 }
 0x421   : > { %1467 = vadd.xlane.f32.xlu0 %v8849_v24 }
 0x422   : > { %v8852_v40 = vpop.eup %7790 }
 0x423   : > { %1469 = vadd.xlane.f32.xlu1 %v8852_v40 }
 0x424   : > { %v8855_v39 = vpop.eup %7792 }
 0x425   : > { %1471 = vadd.xlane.f32.xlu0 %v8855_v39 }
 0x426   : > { %v8858_v8 = vpop.eup %7794 }
 0x427   : > { %1473 = vadd.xlane.f32.xlu1 %v8858_v8 }
 0x428   : > { %v8861_v63 = vpop.eup %7796 }
 0x429   : > { %1475 = vadd.xlane.f32.xlu0 %v8861_v63 }
 0x42a   : > { %v8864_v7 = vpop.eup %7798 }
 0x42b   : > { %1477 = vadd.xlane.f32.xlu1 %v8864_v7 }
 0x49a   : > { %v1448_v31 = vpop.xlane.xlu0 %1447 }
 0x49b   : > { %7800 = vrcp.f32 %v1448_v31 }
 0x49c   : > { %v1450_v52 = vpop.xlane.xlu1 %1449 }
 0x49d   : > { %7802 = vrcp.f32 %v1450_v52 }
 0x49e   : > { %v1452_v38 = vpop.xlane.xlu0 %1451 }
 0x49f   : > { %7804 = vrcp.f32 %v1452_v38 }
 0x4a0   : > { %v1454_v53 = vpop.xlane.xlu1 %1453 }
 0x4a1   : > { %7806 = vrcp.f32 %v1454_v53 }
 0x4a2   : > { %v1456_v56 = vpop.xlane.xlu0 %1455 }
 0x4a3   : > { %7808 = vrcp.f32 %v1456_v56 }
 0x4a4   : > { %v1458_v18 = vpop.xlane.xlu1 %1457 }
 0x4a5   : > { %v7801_v57 = vpop.eup %7800  ;;  %7810 = vrcp.f32 %v1458_v18 }
 0x4a6   : > { %v1460_v22 = vpop.xlane.xlu0 %1459  ;;  %v1495_v11 = vmul.f32 %v7801_v57, %v8810_v61  ;;  %v7625_v61 = vld [vmem:[%s10343_s5 + $0x48] sm:$0xff]  }
 0x4a7   : > { %v7803_v6 = vpop.eup %7802  ;;  %7812 = vrcp.f32 %v1460_v22 }
 0x4a8   : > { %v1462_v58 = vpop.xlane.xlu1 %1461  ;;  %v1496_v60 = vmul.f32 %v7803_v6, %v8814_v36 }
 0x4a9   : > { %v7805_v19 = vpop.eup %7804  ;;  %7814 = vrcp.f32 %v1462_v58 }
 0x4aa   : > { %v1464_v62 = vpop.xlane.xlu0 %1463  ;;  %v1511_v2 = vpack.c.bf16 %v1496_v60, %v1495_v11  ;;  %v1497_v28 = vmul.f32 %v7805_v19, %v8818_v54  ;;  %v7635_v11 = vld [vmem:[%s10345_s7 + $0x58] sm:$0xff]   ;;  %v7636_v60 = vld [vmem:[%s10345_s7 + $0x60] sm:$0xff]   ;;  %v7637_v19 = vld [vmem:[%s10345_s7 + $0x68] sm:$0xff]  }
 0x4ab   : > { %v7807_v3 = vpop.eup %7806  ;;  %7816 = vrcp.f32 %v1464_v62  ;;  %v7638_v62 = vld [vmem:[%s10345_s7 + $0x70] sm:$0xff]  }
 0x4ac   : > { %v1498_v4 = vmul.f32 %v7807_v3, %v8822_v15  ;;  %6894 = vmatprep.mubr.bf16.mxu0 %v1511_v2  ;;  %v1466_v46 = vpop.xlane.xlu1 %1465  ;;  %v7639_v2 = vld [vmem:[%s10345_s7 + $0x78] sm:$0xff]   ;;  %v7640_v3 = vld [vmem:[%s10343_s5 + $0x80] sm:$0xff]  }
 0x4ad   : > { %v7809_v5 = vpop.eup %7808  ;;  %7818 = vrcp.f32 %v1466_v46  ;;  %7110 = vmatprep.subr.bf16.mxu1 %v7640_v3 }
 0x4ae   : > { %v1468_v10 = vpop.xlane.xlu0 %1467  ;;  %v1512_v16 = vpack.c.bf16 %v1498_v4, %v1497_v28  ;;  %v1499_v20 = vmul.f32 %v7809_v5, %v8826_v30 }
 0x4af   : > { %v7811_v36 = vpop.eup %7810  ;;  %7820 = vrcp.f32 %v1468_v10 }
 0x4b0   : > { %6895 = vmatmul.mubr.bf16.vlgmr.msra.gmra.mrb[16].mxu0 %v1512_v16  ;;  %v1470_v47 = vpop.xlane.xlu1 %1469  ;;  %v1500_v54 = vmul.f32 %v7811_v36, %v8830_v26 }
 0x4b1   : > { %v7813_v12 = vpop.eup %7812  ;;  %7822 = vrcp.f32 %v1470_v47  ;;  %6911 = vmatpush3.bf16.msra.mxu0 %v7624_v50 }
 0x4b2   : > { %v1472_v15 = vpop.xlane.xlu0 %1471  ;;  %v1513_v25 = vpack.c.bf16 %v1500_v54, %v1499_v20  ;;  %6912 = vmatprep.subr.bf16.mxu0 %v7625_v61  ;;  %v1501_v29 = vmul.f32 %v7813_v12, %v8834_v32 }
 0x4b3   : > { %v7815_v27 = vpop.eup %7814  ;;  %7824 = vrcp.f32 %v1472_v15 }
 0x4b4   : > { %6898 = vmatprep.mubr.bf16.mxu0 %v1513_v25  ;;  %v1474_v55 = vpop.xlane.xlu1 %1473  ;;  %v1502_v30 = vmul.f32 %v7815_v27, %v8838_v23 }
 0x4b5   : > { %v7817_v0 = vpop.eup %7816  ;;  %7826 = vrcp.f32 %v1474_v55  ;;  %6913 = vmatpush3.bf16.msra.mxu0 %v7625_v61 }
 0x4b6   : > { %v1476_v26 = vpop.xlane.xlu0 %1475  ;;  %v1514_v35 = vpack.c.bf16 %v1502_v30, %v1501_v29  ;;  %6914 = vmatprep.subr.bf16.mxu0 %v7626_v37  ;;  %v1503_v41 = vmul.f32 %v7817_v0, %v8842_v44 }
 0x4b7   : > { %v7819_v1 = vpop.eup %7818  ;;  %7828 = vrcp.f32 %v1476_v26 }
 0x4b8   : > { %6899 = vmatmul.mubr.bf16.gmra.mrb[20].mxu0 %v1514_v35  ;;  %v1478_v43 = vpop.xlane.xlu1 %1477  ;;  %v1504_v32 = vmul.f32 %v7819_v1, %v8846_v48  ;;  %v7629_v48 = vld [vmem:[%s10343_s5 + $0x68] sm:$0xff]  }
 0x4b9   : > { %v7821_v49 = vpop.eup %7820  ;;  %7830 = vrcp.f32 %v1478_v43  ;;  %6915 = vmatpush3.bf16.msra.mxu0 %v7626_v37 }
 0x4ba   : > { %v1515_v23 = vpack.c.bf16 %v1504_v32, %v1503_v41  ;;  %6916 = vmatprep.subr.bf16.mxu0 %v7627_v33  ;;  %v1505_v50 = vmul.f32 %v7821_v49, %v8849_v24  ;;  %v7630_v24 = vld [vmem:[%s10343_s5 + $0x70] sm:$0xff]  }
 0x4bb   : > { %v7823_v9 = vpop.eup %7822 }
 0x4bc   : > { %6902 = vmatprep.mubr.bf16.mxu0 %v1515_v23  ;;  %v1506_v31 = vmul.f32 %v7823_v9, %v8852_v40  ;;  %v7641_v9 = vld [vmem:[%s10343_s5 + $0x88] sm:$0xff]  }
 0x4bd   : > { %v7825_v52 = vpop.eup %7824  ;;  %6917 = vmatpush3.bf16.msra.mxu0 %v7627_v33 }
 0x4be   : > { %v1516_v44 = vpack.c.bf16 %v1506_v31, %v1505_v50  ;;  %6918 = vmatprep.subr.bf16.mxu0 %v7628_v51  ;;  %v1507_v53 = vmul.f32 %v7825_v52, %v8855_v39  ;;  %v7631_v39 = vld [vmem:[%s10343_s5 + $0x78] sm:$0xff]   ;;  %v7642_v52 = vld [vmem:[%s10343_s5 + $0x90] sm:$0xff]  }
 0x4bf   : > { %v7827_v38 = vpop.eup %7826 }
 0x4c0   : > { %6903 = vmatmul.mubr.bf16.gmra.mrb[24].mxu0 %v1516_v44  ;;  %v1508_v56 = vmul.f32 %v7827_v38, %v8858_v8  ;;  %v7632_v8 = vld [vmem:[%s10345_s7 + $0x40] sm:$0xff]  }
 0x4c1   : > { %v7829_v18 = vpop.eup %7828  ;;  %6919 = vmatpush3.bf16.msra.mxu0 %v7628_v51 }
 0x4c2   : > { %v1517_v57 = vpack.c.bf16 %v1508_v56, %v1507_v53  ;;  %6920 = vmatprep.subr.bf16.mxu0 %v7629_v48  ;;  %v1509_v22 = vmul.f32 %v7829_v18, %v8861_v63  ;;  %v7633_v63 = vld [vmem:[%s10345_s7 + $0x48] sm:$0xff]   ;;  %v7643_v56 = vld [vmem:[%s10343_s5 + $0x98] sm:$0xff]  }
 0x4c3   : > { %v7831_v40 = vpop.eup %7830 }
 0x4c4   : > { %6906 = vmatprep.mubr.bf16.mxu0 %v1517_v57  ;;  %v1510_v6 = vmul.f32 %v7831_v40, %v8864_v7  ;;  %v7634_v7 = vld [vmem:[%s10345_s7 + $0x50] sm:$0xff]  }
 0x4c5   : > { %6921 = vmatpush3.bf16.msra.mxu0 %v7629_v48 }
 0x4c6   : > { %v1518_v58 = vpack.c.bf16 %v1510_v6, %v1509_v22  ;;  %6922 = vmatprep.subr.bf16.mxu0 %v7630_v24 }
 0x4c8   : > { %6907 = vmatmul.mubr.bf16.gmra.mrb[28].mxu0 %v1518_v58 }
 0x4c9   : > { %6923 = vmatpush3.bf16.msra.mxu0 %v7630_v24  ;;  %6926 = vmatprep.mubr.bf16.mxu0 %v8520_v42  ;;  %v7644_v24 = vld [vmem:[%s10343_s5 + $0xa0] sm:$0xff]  }
 0x4ca   : > { %6924 = vmatprep.subr.bf16.mxu0 %v7631_v39 }
 0x4cd   : > { %6925 = vmatpush3.bf16.msra.mxu0 %v7631_v39  ;;  %v7645_v39 = vld [vmem:[%s10343_s5 + $0xa8] sm:$0xff]  }
 0x4ce   : > { %6974 = vmatprep.subr.bf16.mxu0 %v7632_v8 }
 0x4d0   : > { %6927 = vmatmul.mubr.bf16.vlgmr.msra.gmra.mrb[32].mxu0 %v8530_v59 }
 0x4d1   : > { %6930 = vmatprep.mubr.bf16.mxu0 %v8544_v17  ;;  %6975 = vmatpush3.bf16.msra.mxu0 %v7632_v8 }
 0x4d2   : > { %6976 = vmatprep.subr.bf16.mxu0 %v7633_v63 }
 0x4d5   : > { %6977 = vmatpush3.bf16.msra.mxu0 %v7633_v63 }
 0x4d6   : > { %6978 = vmatprep.subr.bf16.mxu0 %v7634_v7 }
 0x4d8   : > { %6931 = vmatmul.mubr.bf16.gmra.mrb[36].mxu0 %v8557_v14 }
 0x4d9   : > { %6934 = vmatprep.mubr.bf16.mxu0 %v8570_v34  ;;  %6979 = vmatpush3.bf16.msra.mxu0 %v7634_v7  ;;  %v7646_v7 = vld [vmem:[%s10343_s5 + $0xb0] sm:$0xff]  }
 0x4da   : > { %6980 = vmatprep.subr.bf16.mxu0 %v7635_v11 }
 0x4dd   : > { %6981 = vmatpush3.bf16.msra.mxu0 %v7635_v11 }
 0x4de   : > { %6982 = vmatprep.subr.bf16.mxu0 %v7636_v60 }
 0x4e0   : > { %6935 = vmatmul.mubr.bf16.gmra.mrb[40].mxu0 %v8583_v45 }
 0x4e1   : > { %6938 = vmatprep.mubr.bf16.mxu0 %v8595_v13  ;;  %6983 = vmatpush3.bf16.msra.mxu0 %v7636_v60 }
 0x4e2   : > { %6984 = vmatprep.subr.bf16.mxu0 %v7637_v19 }
 0x4e5   : > { %6985 = vmatpush3.bf16.msra.mxu0 %v7637_v19 }
 0x4e6   : > { %6986 = vmatprep.subr.bf16.mxu0 %v7638_v62 }
 0x4e8   : > { %6939 = vmatmul.mubr.bf16.gmra.mrb[44].mxu0 %v8605_v21 }
 0x4e9   : > { %6987 = vmatpush3.bf16.msra.mxu0 %v7638_v62  ;;  %6990 = vmatprep.mubr.bf16.mxu0 %v8520_v42 }
 0x4ea   : > { %6988 = vmatprep.subr.bf16.mxu0 %v7639_v2 }
 0x4ed   : > { %6989 = vmatpush3.bf16.msra.mxu0 %v7639_v2  ;;  %v7647_v2 = vld [vmem:[%s10343_s5 + $0xb8] sm:$0xff]  }
 0x4f0   : > { %6991 = vmatmul.mubr.bf16.vlgmr.msra.gmra.mrb[48].mxu0 %v8530_v59 }
 0x4f1   : > { %6994 = vmatprep.mubr.bf16.mxu0 %v8544_v17 }
 0x4f8   : > { %6995 = vmatmul.mubr.bf16.gmra.mrb[52].mxu0 %v8557_v14 }
 0x4f9   : > { %6998 = vmatprep.mubr.bf16.mxu0 %v8570_v34 }
 0x500   : > { %6999 = vmatmul.mubr.bf16.gmra.mrb[56].mxu0 %v8583_v45 }
 0x501   : > { %7002 = vmatprep.mubr.bf16.mxu0 %v8595_v13 }
 0x508   : > { %7003 = vmatmul.mubr.bf16.gmra.mrb[60].mxu0 %v8605_v21 }
 0x583   : > { %v8950_v28 = vpop.f32.mrb[16].mxu0 }
 0x584   : > { %v8952_v4 = vpop.f32.mrb[17].mxu0 }
 0x585   : > { %v8954_v46 = vpop.f32.mrb[18].mxu0 }
 0x586   : > { %v8958_v10 = vpop.f32.mrb[19].mxu0 }
 0x58b   : > { %v8962_v61 = vpop.f32.mrb[20].mxu0 }
 0x58c   : > { %v8964_v36 = vpop.f32.mrb[21].mxu0 }
 0x58d   : > { %v8966_v47 = vpop.f32.mrb[22].mxu0 }
 0x58e   : > { %v8970_v54 = vpop.f32.mrb[23].mxu0 }
 0x593   : > { %v8974_v15 = vpop.f32.mrb[24].mxu0 }
 0x594   : > { %10369 = vst [vmem:[#allocation6_spill] sm:$0xff] %v8974_v15  ;;  %v8976_v25 = vpop.f32.mrb[25].mxu0 }
 0x595   : > { %v8978_v37 = vpop.f32.mrb[26].mxu0 }
 0x596   : > { %10370 = vst [vmem:[#allocation7_spill] sm:$0xff] %v8978_v37  ;;  %v8982_v55 = vpop.f32.mrb[27].mxu0 }
 0x59b   : > { %v8986_v30 = vpop.f32.mrb[28].mxu0 }
 0x59c   : > { %10371 = vst [vmem:[#allocation8_spill] sm:$0xff] %v8986_v30  ;;  %v8988_v0 = vpop.f32.mrb[29].mxu0 }
 0x59d   : > { %10372 = vst [vmem:[#allocation9_spill] sm:$0xff] %v8988_v0  ;;  %v8990_v26 = vpop.f32.mrb[30].mxu0 }
 0x59e   : > { %10373 = vst [vmem:[#allocation10_spill] sm:$0xff] %v8990_v26  ;;  %v8994_v33 = vpop.f32.mrb[31].mxu0 }
 0x59f   : > { %10374 = vst [vmem:[#allocation11_spill] sm:$0xff] %v8994_v33 }
 0x5a3   : > { %v6928_v43 = vpop.f32.mrb[32].mxu0 }
 0x5a4   : > { %v1727_v41 = vpop.f32.mrb[33].mxu0 }
 0x5a5   : > { %v6929_v32 = vpop.f32.mrb[34].mxu0 }
 0x5a6   : > { %v1791_v49 = vpack.c.bf16 %v6929_v32, %v6928_v43  ;;  %v1730_v23 = vpop.f32.mrb[35].mxu0 }
 0x5a7   : > { %v1790_v51 = vpack.c.bf16 %v1730_v23, %v1727_v41  ;;  %v7648_v41 = vld [vmem:[%s10344_s6 + $0x80] sm:$0xff]  }
 0x5a9   : > { %7022 = vmatprep.mubr.msk.bf16.mxu1 %vm1221_vm0, %v1790_v51 }
 0x5aa   : > { %7023 = vmatmul.mubr.msk.bf16.vlgmr.msra.gmra.mrb[64].mxu1 %vm1221_vm0, %v1791_v49 }
 0x5ab   : > { %v6932_v50 = vpop.f32.mrb[36].mxu0  ;;  %7111 = vmatpush3.bf16.msra.mxu1 %v7640_v3 }
 0x5ac   : > { %v1743_v31 = vpop.f32.mrb[37].mxu0  ;;  %7112 = vmatprep.subr.bf16.mxu1 %v7641_v9 }
 0x5ad   : > { %v6933_v44 = vpop.f32.mrb[38].mxu0 }
 0x5ae   : > { %v1793_v48 = vpack.c.bf16 %v6933_v44, %v6932_v50  ;;  %v1746_v38 = vpop.f32.mrb[39].mxu0  ;;  %v7650_v44 = vld [vmem:[%s10344_s6 + $0x90] sm:$0xff]  }
 0x5af   : > { %v1792_v53 = vpack.c.bf16 %v1746_v38, %v1743_v31  ;;  %7113 = vmatpush3.bf16.msra.mxu1 %v7641_v9  ;;  %v7649_v9 = vld [vmem:[%s10344_s6 + $0x88] sm:$0xff]  }
 0x5b0   : > { %7114 = vmatprep.subr.bf16.mxu1 %v7642_v52 }
 0x5b1   : > { %7026 = vmatprep.mubr.msk.bf16.mxu1 %vm1221_vm0, %v1792_v53 }
 0x5b2   : > { %7027 = vmatmul.mubr.msk.bf16.gmra.mrb[68].mxu1 %vm1221_vm0, %v1793_v48 }
 0x5b3   : > { %v6936_v18 = vpop.f32.mrb[40].mxu0  ;;  %7115 = vmatpush3.bf16.msra.mxu1 %v7642_v52 }
 0x5b4   : > { %v1759_v57 = vpop.f32.mrb[41].mxu0  ;;  %7116 = vmatprep.subr.bf16.mxu1 %v7643_v56 }
 0x5b5   : > { %v6937_v40 = vpop.f32.mrb[42].mxu0 }
 0x5b6   : > { %v1795_v22 = vpack.c.bf16 %v6937_v40, %v6936_v18  ;;  %v1762_v6 = vpop.f32.mrb[43].mxu0  ;;  %v7652_v40 = vld [vmem:[%s10344_s6 + $0xa0] sm:$0xff]  }
 0x5b7   : > { %v1794_v58 = vpack.c.bf16 %v1762_v6, %v1759_v57  ;;  %7117 = vmatpush3.bf16.msra.mxu1 %v7643_v56  ;;  %v7651_v56 = vld [vmem:[%s10344_s6 + $0x98] sm:$0xff]  }
 0x5b8   : > { %7118 = vmatprep.subr.bf16.mxu1 %v7644_v24 }
 0x5b9   : > { %7030 = vmatprep.mubr.msk.bf16.mxu1 %vm1221_vm0, %v1794_v58 }
 0x5ba   : > { %7031 = vmatmul.mubr.msk.bf16.gmra.mrb[72].mxu1 %vm1221_vm0, %v1795_v22 }
 0x5bb   : > { %v6940_v8 = vpop.f32.mrb[44].mxu0  ;;  %7119 = vmatpush3.bf16.msra.mxu1 %v7644_v24 }
 0x5bc   : > { %v1775_v63 = vpop.f32.mrb[45].mxu0  ;;  %7120 = vmatprep.subr.bf16.mxu1 %v7645_v39 }
 0x5bd   : > { %v6941_v11 = vpop.f32.mrb[46].mxu0 }
 0x5be   : > { %v1797_v60 = vpack.c.bf16 %v6941_v11, %v6940_v8  ;;  %v1778_v19 = vpop.f32.mrb[47].mxu0  ;;  %v7654_v11 = vld [vmem:[%s10344_s6 + $0xb0] sm:$0xff]  }
 0x5bf   : > { %v1796_v62 = vpack.c.bf16 %v1778_v19, %v1775_v63  ;;  %7121 = vmatpush3.bf16.msra.mxu1 %v7645_v39  ;;  %v7653_v39 = vld [vmem:[%s10344_s6 + $0xa8] sm:$0xff]  }
 0x5c0   : > { %7122 = vmatprep.subr.bf16.mxu1 %v7646_v7 }
 0x5c1   : > { %7034 = vmatprep.mubr.msk.bf16.mxu1 %vm1221_vm0, %v1796_v62 }
 0x5c2   : > { %7035 = vmatmul.mubr.msk.bf16.gmra.mrb[76].mxu1 %vm1221_vm0, %v1797_v60 }
 0x5c3   : > { %v6992_v3 = vpop.f32.mrb[48].mxu0  ;;  %7123 = vmatpush3.bf16.msra.mxu1 %v7646_v7  ;;  %7126 = vmatprep.mubr.bf16.mxu1 %v8520_v42 }
 0x5c4   : > { %v2067_v43 = vpop.f32.mrb[49].mxu0  ;;  %7124 = vmatprep.subr.bf16.mxu1 %v7647_v2 }
 0x5c5   : > { %v6993_v32 = vpop.f32.mrb[50].mxu0 }
 0x5c6   : > { %v2131_v49 = vpack.c.bf16 %v6993_v32, %v6992_v3  ;;  %v2070_v23 = vpop.f32.mrb[51].mxu0 }
 0x5c7   : > { %v2130_v51 = vpack.c.bf16 %v2070_v23, %v2067_v43  ;;  %7125 = vmatpush3.bf16.msra.mxu1 %v7647_v2  ;;  %v7655_v2 = vld [vmem:[%s10344_s6 + $0xb8] sm:$0xff]  }
 0x5c8   : > { %7142 = vmatprep.subr.bf16.mxu1 %v7648_v41 }
 0x5c9   : > { %7038 = vmatprep.subr.bf16.mxu0 %v2130_v51 }
 0x5ca   : > { %7039 = vmatpush3.bf16.msra.mxu0 %v2130_v51  ;;  %7127 = vmatmul.mubr.bf16.vlgmr.msra.gmra.mrb[80].mxu1 %v8530_v59 }
 0x5cb   : > { %v6996_v50 = vpop.f32.mrb[52].mxu0  ;;  %7040 = vmatprep.subr.bf16.mxu0 %v2131_v49  ;;  %7130 = vmatprep.mubr.bf16.mxu1 %v8544_v17 }
 0x5cc   : > { %7143 = vmatpush3.bf16.msra.mxu1 %v7648_v41  ;;  %v2083_v31 = vpop.f32.mrb[53].mxu0 }
 0x5cd   : > { %v6997_v52 = vpop.f32.mrb[54].mxu0  ;;  %7144 = vmatprep.subr.bf16.mxu1 %v7649_v9 }
 0x5ce   : > { %v2133_v48 = vpack.c.bf16 %v6997_v52, %v6996_v50  ;;  %v2086_v38 = vpop.f32.mrb[55].mxu0  ;;  %7041 = vmatpush3.bf16.msra.mxu0 %v2131_v49 }
 0x5cf   : > { %v2132_v53 = vpack.c.bf16 %v2086_v38, %v2083_v31 }
 0x5d0   : > { %7145 = vmatpush3.bf16.msra.mxu1 %v7649_v9 }
 0x5d1   : > { %7042 = vmatprep.subr.bf16.mxu0 %v2132_v53  ;;  %7146 = vmatprep.subr.bf16.mxu1 %v7650_v44 }
 0x5d2   : > { %7043 = vmatpush3.bf16.msra.mxu0 %v2132_v53  ;;  %7131 = vmatmul.mubr.bf16.gmra.mrb[84].mxu1 %v8557_v14 }
 0x5d3   : > { %v7000_v18 = vpop.f32.mrb[56].mxu0  ;;  %7044 = vmatprep.subr.bf16.mxu0 %v2133_v48  ;;  %7134 = vmatprep.mubr.bf16.mxu1 %v8570_v34 }
 0x5d4   : > { %7147 = vmatpush3.bf16.msra.mxu1 %v7650_v44  ;;  %v2099_v57 = vpop.f32.mrb[57].mxu0 }
 0x5d5   : > { %v7001_v24 = vpop.f32.mrb[58].mxu0  ;;  %7148 = vmatprep.subr.bf16.mxu1 %v7651_v56 }
 0x5d6   : > { %v2135_v22 = vpack.c.bf16 %v7001_v24, %v7000_v18  ;;  %v2102_v6 = vpop.f32.mrb[59].mxu0  ;;  %7045 = vmatpush3.bf16.msra.mxu0 %v2133_v48 }
 0x5d7   : > { %v2134_v58 = vpack.c.bf16 %v2102_v6, %v2099_v57 }
 0x5d8   : > { %7149 = vmatpush3.bf16.msra.mxu1 %v7651_v56 }
 0x5d9   : > { %7046 = vmatprep.subr.bf16.mxu0 %v2134_v58  ;;  %7150 = vmatprep.subr.bf16.mxu1 %v7652_v40 }
 0x5da   : > { %7047 = vmatpush3.bf16.msra.mxu0 %v2134_v58  ;;  %7135 = vmatmul.mubr.bf16.gmra.mrb[88].mxu1 %v8583_v45 }
 0x5db   : > { %v7004_v8 = vpop.f32.mrb[60].mxu0  ;;  %7048 = vmatprep.subr.bf16.mxu0 %v2135_v22  ;;  %7138 = vmatprep.mubr.bf16.mxu1 %v8595_v13 }
 0x5dc   : > { %7151 = vmatpush3.bf16.msra.mxu1 %v7652_v40  ;;  %v2115_v63 = vpop.f32.mrb[61].mxu0 }
 0x5dd   : > { %v7005_v7 = vpop.f32.mrb[62].mxu0  ;;  %7152 = vmatprep.subr.bf16.mxu1 %v7653_v39 }
 0x5de   : > { %v2137_v60 = vpack.c.bf16 %v7005_v7, %v7004_v8  ;;  %v2118_v19 = vpop.f32.mrb[63].mxu0  ;;  %7049 = vmatpush3.bf16.msra.mxu0 %v2135_v22 }
 0x5df   : > { %v2136_v62 = vpack.c.bf16 %v2118_v19, %v2115_v63 }
 0x5e0   : > { %7153 = vmatpush3.bf16.msra.mxu1 %v7653_v39 }
 0x5e1   : > { %7050 = vmatprep.subr.bf16.mxu0 %v2136_v62  ;;  %7154 = vmatprep.subr.bf16.mxu1 %v7654_v11 }
 0x5e2   : > { %7051 = vmatpush3.bf16.msra.mxu0 %v2136_v62  ;;  %7139 = vmatmul.mubr.bf16.gmra.mrb[92].mxu1 %v8605_v21 }
 0x5e3   : > { %7052 = vmatprep.subr.bf16.mxu0 %v2137_v60  ;;  %7158 = vmatprep.mubr.bf16.mxu1 %v8520_v42 }
 0x5e4   : > { %7155 = vmatpush3.bf16.msra.mxu1 %v7654_v11 }
 0x5e5   : > { %7156 = vmatprep.subr.bf16.mxu1 %v7655_v2 }
 0x5e6   : > { %7053 = vmatpush3.bf16.msra.mxu0 %v2137_v60 }
 0x5e8   : > { %7157 = vmatpush3.bf16.msra.mxu1 %v7655_v2 }
 0x5eb   : > { %7159 = vmatmul.mubr.bf16.vlgmr.msra.gmra.mrb[96].mxu1 %v8530_v59 }
 0x5ec   : > { %7162 = vmatprep.mubr.bf16.mxu1 %v8544_v17 }
 0x5f3   : > { %7163 = vmatmul.mubr.bf16.gmra.mrb[100].mxu1 %v8557_v14 }
 0x5f4   : > { %7166 = vmatprep.mubr.bf16.mxu1 %v8570_v34 }
 0x5fb   : > { %7167 = vmatmul.mubr.bf16.gmra.mrb[104].mxu1 %v8583_v45 }
 0x5fc   : > { %7170 = vmatprep.mubr.bf16.mxu1 %v8595_v13 }
 0x603   : > { %7171 = vmatmul.mubr.bf16.gmra.mrb[108].mxu1 %v8605_v21 }
 0x67d   : > { %v9067_v3 = vpop.f32.mrb[64].mxu1 }
 0x67e   : > { %v9069_v43 = vpop.f32.mrb[65].mxu1 }
 0x67f   : > { %2283 = vmax.xlane.f32.xlu0 %v9069_v43  ;;  %v9072_v41 = vpop.f32.mrb[66].mxu1 }
 0x680   : > { %v9074_v32 = vpop.f32.mrb[67].mxu1 }
 0x681   : > { %2285 = vmax.xlane.f32.xlu1 %v9074_v32 }
 0x683   : > { %2287 = vmax.xlane.f32.xlu0 %v9067_v3 }
 0x685   : > { %2289 = vmax.xlane.f32.xlu1 %v9072_v41  ;;  %v9079_v49 = vpop.f32.mrb[68].mxu1 }
 0x686   : > { %v9081_v23 = vpop.f32.mrb[69].mxu1 }
 0x687   : > { %2291 = vmax.xlane.f32.xlu0 %v9081_v23  ;;  %v9084_v51 = vpop.f32.mrb[70].mxu1 }
 0x688   : > { %v9086_v9 = vpop.f32.mrb[71].mxu1 }
 0x689   : > { %2293 = vmax.xlane.f32.xlu1 %v9086_v9 }
 0x68b   : > { %2295 = vmax.xlane.f32.xlu0 %v9079_v49 }
 0x68d   : > { %2297 = vmax.xlane.f32.xlu1 %v9084_v51  ;;  %v9091_v50 = vpop.f32.mrb[72].mxu1 }
 0x68e   : > { %v9093_v31 = vpop.f32.mrb[73].mxu1 }
 0x68f   : > { %2299 = vmax.xlane.f32.xlu0 %v9093_v31  ;;  %v9096_v52 = vpop.f32.mrb[74].mxu1 }
 0x690   : > { %v9098_v44 = vpop.f32.mrb[75].mxu1 }
 0x691   : > { %2301 = vmax.xlane.f32.xlu1 %v9098_v44 }
 0x693   : > { %2303 = vmax.xlane.f32.xlu0 %v9091_v50 }
 0x695   : > { %2305 = vmax.xlane.f32.xlu1 %v9096_v52  ;;  %v9103_v48 = vpop.f32.mrb[76].mxu1 }
 0x696   : > { %v9105_v38 = vpop.f32.mrb[77].mxu1 }
 0x697   : > { %2307 = vmax.xlane.f32.xlu0 %v9105_v38  ;;  %v9108_v53 = vpop.f32.mrb[78].mxu1 }
 0x698   : > { %v9110_v56 = vpop.f32.mrb[79].mxu1 }
 0x699   : > { %2309 = vmax.xlane.f32.xlu1 %v9110_v56 }
 0x69b   : > { %2311 = vmax.xlane.f32.xlu0 %v9103_v48 }
 0x69d   : > { %2313 = vmax.xlane.f32.xlu1 %v9108_v53  ;;  %v9115_v18 = vpop.f32.mrb[80].mxu1 }
 0x69e   : > { %v2910_v57 = vpop.f32.mrb[81].mxu1 }
 0x69f   : > { %v9117_v24 = vpop.f32.mrb[82].mxu1 }
 0x6a0   : > { %v2913_v22 = vpop.f32.mrb[83].mxu1 }
 0x6a1   : > { %v2973_v6 = vpack.c.bf16 %v2913_v22, %v2910_v57 }
 0x6a3   : > { %7222 = vmatprep.mubr.msk.bf16.mxu1 %vm1221_vm0, %v2973_v6 }
 0x6a5   : > { %v9122_v58 = vpop.f32.mrb[84].mxu1 }
 0x6a6   : > { %v9124_v39 = vpop.f32.mrb[85].mxu1 }
 0x6a7   : > { %v9126_v8 = vpop.f32.mrb[86].mxu1 }
 0x6a8   : > { %v9130_v7 = vpop.f32.mrb[87].mxu1 }
 0x6ad   : > { %v9134_v60 = vpop.f32.mrb[88].mxu1 }
 0x6ae   : > { %v9136_v19 = vpop.f32.mrb[89].mxu1 }
 0x6af   : > { %v9138_v62 = vpop.f32.mrb[90].mxu1 }
 0x6b0   : > { %v9142_v57 = vpop.f32.mrb[91].mxu1 }
 0x6b5   : > { %v9146_v6 = vpop.f32.mrb[92].mxu1 }
 0x6b6   : > { %v9148_v35 = vpop.f32.mrb[93].mxu1 }
 0x6b7   : > { %v9150_v1 = vpop.f32.mrb[94].mxu1 }
 0x6b8   : > { %v9154_v29 = vpop.f32.mrb[95].mxu1 }
 0x6be   : > { %v7160_v12 = vpop.f32.mrb[96].mxu1 }
 0x6bf   : > { %v3080_v5 = vpop.f32.mrb[97].mxu1 }
 0x6c0   : > { %v7161_v16 = vpop.f32.mrb[98].mxu1 }
 0x6c1   : > { %v3144_v2 = vpack.c.bf16 %v7161_v16, %v7160_v12  ;;  %v3083_v63 = vpop.f32.mrb[99].mxu1 }
 0x6c2   : > { %v3143_v22 = vpack.c.bf16 %v3083_v63, %v3080_v5 }
 0x6c3   : > { %v3349_v20 = vsel %vm1221_vm0, %v3144_v2, 0 }
 0x6c4   : > { %v3346_v11 = vsel %vm1221_vm0, %v3143_v22, 0  ;;  %7534 = vmatprep.subr.msk.bf16.mxu1 %vm1221_vm0, %v3143_v22 }
 0x6c5   : > { %7207 = vmatpush3.bf16.xpose.msra.mxu1 %v3346_v11 }
 0x6c6   : > { %v7164_v40 = vpop.f32.mrb[100].mxu1  ;;  %7535 = vmatprep.subr.msk.bf16.mxu1 %vm1221_vm0, %v3144_v2 }
 0x6c7   : > { %v3096_v27 = vpop.f32.mrb[101].mxu1 }
 0x6c8   : > { %v7165_v30 = vpop.f32.mrb[102].mxu1 }
 0x6c9   : > { %v3146_v26 = vpack.c.bf16 %v7165_v30, %v7164_v40  ;;  %v3099_v0 = vpop.f32.mrb[103].mxu1 }
 0x6ca   : > { %v3145_v33 = vpack.c.bf16 %v3099_v0, %v3096_v27 }
 0x6cc   : > { %v3352_v11 = vsel %vm1221_vm0, %v3145_v33, 0 }
 0x6cd   : > { %7209 = vmatpush3.bf16.xpose.msra.mxu1 %v3349_v20  ;;  %v3355_v20 = vsel %vm1221_vm0, %v3146_v26, 0 }
 0x6ce   : > { %v7168_v15 = vpop.f32.mrb[104].mxu1  ;;  %7536 = vmatprep.subr.msk.bf16.mxu1 %vm1221_vm0, %v3145_v33 }
 0x6cf   : > { %v3112_v5 = vpop.f32.mrb[105].mxu1 }
 0x6d0   : > { %v7169_v16 = vpop.f32.mrb[106].mxu1 }
 0x6d1   : > { %v3148_v12 = vpack.c.bf16 %v7169_v16, %v7168_v15  ;;  %v3115_v63 = vpop.f32.mrb[107].mxu1  ;;  %v7657_v16 = vld [vmem:[%s10343_s5 + $0xc8] sm:$0xff]  }
 0x6d2   : > { %v3147_v22 = vpack.c.bf16 %v3115_v63, %v3112_v5  ;;  %v10376_v63 = vpack.c.bf16 %v9130_v7, %v9124_v39  ;;  %v10378_v7 = vpack.c.bf16 %v9142_v57, %v9136_v19  ;;  %v7661_v19 = vld [vmem:[%s10343_s5 + $0xe8] sm:$0xff]  }
 0x6d3   : > { %v3361_v33 = vsel %vm1221_vm0, %v3148_v12, 0 }
 0x6d4   : > { %v3358_v15 = vsel %vm1221_vm0, %v3147_v22, 0 }
 0x6d5   : > { %7211 = vmatpush3.bf16.xpose.msra.mxu1 %v3352_v11  ;;  %v7659_v11 = vld [vmem:[%s10343_s5 + $0xd8] sm:$0xff]  }
 0x6d6   : > { %v7172_v37 = vpop.f32.mrb[108].mxu1  ;;  %7537 = vmatprep.subr.msk.bf16.mxu1 %vm1221_vm0, %v3146_v26 }
 0x6d7   : > { %v3128_v30 = vpop.f32.mrb[109].mxu1 }
 0x6d8   : > { %v7173_v40 = vpop.f32.mrb[110].mxu1 }
 0x6d9   : > { %v3150_v27 = vpack.c.bf16 %v7173_v40, %v7172_v37  ;;  %v3131_v0 = vpop.f32.mrb[111].mxu1  ;;  %v7656_v37 = vld [vmem:[%s10343_s5 + $0xc0] sm:$0xff]  }
 0x6da   : > { %v3149_v2 = vpack.c.bf16 %v3131_v0, %v3128_v30  ;;  %v7660_v40 = vld [vmem:[%s10343_s5 + $0xe0] sm:$0xff]  }
 0x6db   : > { %v3367_v26 = vsel %vm1221_vm0, %v3150_v27, 0 }
 0x6dc   : > { %v3364_v5 = vsel %vm1221_vm0, %v3149_v2, 0 }
 0x6dd   : > { %7213 = vmatpush3.bf16.xpose.msra.mxu1 %v3355_v20 }
 0x6de   : > { %7538 = vmatprep.subr.msk.bf16.mxu1 %vm1221_vm0, %v3147_v22  ;;  %v7658_v22 = vld [vmem:[%s10343_s5 + $0xd0] sm:$0xff]  }
 0x6e5   : > { %7215 = vmatpush3.bf16.xpose.msra.mxu1 %v3358_v15  ;;  %v10379_v15 = vpack.c.bf16 %v9138_v62, %v9134_v60 }
 0x6e6   : > { %7539 = vmatprep.subr.msk.bf16.mxu1 %vm1221_vm0, %v3148_v12  ;;  %v10375_v12 = vpack.c.bf16 %v9117_v24, %v9115_v18  ;;  %v10377_v18 = vpack.c.bf16 %v9126_v8, %v9122_v58 }
 0x6ed   : > { %7217 = vmatpush3.bf16.xpose.msra.mxu1 %v3361_v33 }
 0x6ee   : > { %7540 = vmatprep.subr.msk.bf16.mxu1 %vm1221_vm0, %v3149_v2 }
 0x6f5   : > { %7219 = vmatpush3.bf16.xpose.msra.mxu1 %v3364_v5  ;;  %v10380_v5 = vpack.c.bf16 %v9154_v29, %v9148_v35  ;;  %v7663_v35 = vld [vmem:[%s10343_s5 + $0xf8] sm:$0xff]  }
 0x6f6   : > { %7541 = vmatprep.subr.msk.bf16.mxu1 %vm1221_vm0, %v3150_v27 }
 0x6fd   : > { %7221 = vmatpush3.bf16.xpose.msra.mxu1 %v3367_v26 }
 0x6fe   : > { %7290 = vmatprep.subr.bf16.mxu1 %v7656_v37 }
 0x704   : > { %7223 = vmatmul.mubr.msk.bf16.vlgmr.msra.gmra.mrb[112].mxu1 %vm1221_vm0, %v10375_v12 }
 0x705   : > { %7226 = vmatprep.mubr.msk.bf16.mxu1 %vm1221_vm0, %v10376_v63  ;;  %7291 = vmatpush3.bf16.msra.mxu1 %v7656_v37 }
 0x706   : > { %7292 = vmatprep.subr.bf16.mxu1 %v7657_v16 }
 0x709   : > { %7293 = vmatpush3.bf16.msra.mxu1 %v7657_v16 }
 0x70a   : > { %7294 = vmatprep.subr.bf16.mxu1 %v7658_v22 }
 0x70c   : > { %7227 = vmatmul.mubr.msk.bf16.gmra.mrb[116].mxu1 %vm1221_vm0, %v10377_v18  ;;  %v2284_v24 = vpop.xlane.xlu0 %2283 }
 0x70d   : > { %v2315_v39 = vsub.f32 %v9069_v43, %v2284_v24  ;;  %7230 = vmatprep.mubr.msk.bf16.mxu1 %vm1221_vm0, %v10378_v7  ;;  %7295 = vmatpush3.bf16.msra.mxu1 %v7658_v22 }
 0x70e   : > { %v2286_v30 = vpop.xlane.xlu1 %2285  ;;  %7296 = vmatprep.subr.bf16.mxu1 %v7659_v11 }
 0x70f   : > { %v2331_v27 = vmul.f32 1.442695, %v2315_v39  ;;  %v2316_v58 = vsub.f32 %v9074_v32, %v2286_v30 }
 0x710   : > { %v2288_v8 = vpop.xlane.xlu0 %2287 }
 0x711   : > { %7832 = vpow2.f32 %v2331_v27  ;;  %v2333_v0 = vmul.f32 1.442695, %v2316_v58  ;;  %v2317_v43 = vsub.f32 %v9067_v3, %v2288_v8  ;;  %7297 = vmatpush3.bf16.msra.mxu1 %v7659_v11  ;;  %v7665_v8 = vld [vmem:[%s10345_s7 + $0xc8] sm:$0xff]  }
 0x712   : > { %v2290_v2 = vpop.xlane.xlu1 %2289  ;;  %7298 = vmatprep.subr.bf16.mxu1 %v7660_v40 }
 0x713   : > { %7834 = vpow2.f32 %v2333_v0  ;;  %v2335_v57 = vmul.f32 1.442695, %v2317_v43  ;;  %v2318_v20 = vsub.f32 %v9072_v41, %v2290_v2  ;;  %v7662_v41 = vld [vmem:[%s10343_s5 + $0xf0] sm:$0xff]  }
 0x714   : > { %7231 = vmatmul.mubr.msk.bf16.gmra.mrb[120].mxu1 %vm1221_vm0, %v10379_v15  ;;  %v2292_v32 = vpop.xlane.xlu0 %2291 }
 0x715   : > { %7836 = vpow2.f32 %v2335_v57  ;;  %v2337_v33 = vmul.f32 1.442695, %v2318_v20  ;;  %v2319_v3 = vsub.f32 %v9081_v23, %v2292_v32  ;;  %7234 = vmatprep.mubr.msk.bf16.mxu1 %vm1221_vm0, %v10380_v5  ;;  %7299 = vmatpush3.bf16.msra.mxu1 %v7660_v40 }
 0x716   : > { %v2294_v37 = vpop.xlane.xlu1 %2293  ;;  %7300 = vmatprep.subr.bf16.mxu1 %v7661_v19 }
 0x717   : > { %7838 = vpow2.f32 %v2337_v33  ;;  %v2339_v60 = vmul.f32 1.442695, %v2319_v3  ;;  %v2320_v62 = vsub.f32 %v9086_v9, %v2294_v37  ;;  %v10381_v9 = vpack.c.bf16 %v9150_v1, %v9146_v6  ;;  %v7664_v1 = vld [vmem:[%s10345_s7 + $0xc0] sm:$0xff]  }
 0x718   : > { %v2296_v26 = vpop.xlane.xlu0 %2295 }
 0x719   : > { %7840 = vpow2.f32 %v2339_v60  ;;  %v2341_v16 = vmul.f32 1.442695, %v2320_v62  ;;  %v2321_v23 = vsub.f32 %v9079_v49, %v2296_v26  ;;  %7301 = vmatpush3.bf16.msra.mxu1 %v7661_v19  ;;  %v7667_v60 = vld [vmem:[%s10345_s7 + $0xd8] sm:$0xff]  }
 0x71a   : > { %v2298_v29 = vpop.xlane.xlu1 %2297  ;;  %7302 = vmatprep.subr.bf16.mxu1 %v7662_v41 }
 0x71b   : > { %v9229_v12 = vpop.eup %7832  ;;  %7842 = vpow2.f32 %v2341_v16  ;;  %v2343_v63 = vmul.f32 1.442695, %v2321_v23  ;;  %v2322_v22 = vsub.f32 %v9084_v51, %v2298_v29  ;;  %v7668_v23 = vld [vmem:[%s10345_s7 + $0xe0] sm:$0xff]  }
 0x71c   : > { %7235 = vmatmul.mubr.msk.bf16.gmra.mrb[124].mxu1 %vm1221_vm0, %v10381_v9  ;;  %v2300_v11 = vpop.xlane.xlu0 %2299  ;;  %2363 = vadd.xlane.f32.xlu0 %v9229_v12  ;;  %v7670_v9 = vld [vmem:[%s10345_s7 + $0xf0] sm:$0xff]  }
 0x71d   : > { %v9237_v49 = vpop.eup %7834  ;;  %7844 = vpow2.f32 %v2343_v63  ;;  %v2345_v18 = vmul.f32 1.442695, %v2322_v22  ;;  %v2323_v24 = vsub.f32 %v9093_v31, %v2300_v11  ;;  %7303 = vmatpush3.bf16.msra.mxu1 %v7662_v41  ;;  %7306 = vmatprep.mubr.bf16.mxu1 %v8520_v42 }
 0x71e   : > { %v2302_v39 = vpop.xlane.xlu1 %2301  ;;  %2365 = vadd.xlane.f32.xlu1 %v9237_v49  ;;  %7304 = vmatprep.subr.bf16.mxu1 %v7663_v35 }
 0x71f   : > { %v9245_v51 = vpop.eup %7836  ;;  %7846 = vpow2.f32 %v2345_v18  ;;  %v2347_v6 = vmul.f32 1.442695, %v2323_v24  ;;  %v2324_v7 = vsub.f32 %v9098_v44, %v2302_v39  ;;  %v7671_v24 = vld [vmem:[%s10345_s7 + $0xf8] sm:$0xff]  }
 0x720   : > { %v2304_v30 = vpop.xlane.xlu0 %2303  ;;  %2367 = vadd.xlane.f32.xlu0 %v9245_v51 }
 0x721   : > { %v9249_v31 = vpop.eup %7838  ;;  %7848 = vpow2.f32 %v2347_v6  ;;  %v2349_v40 = vmul.f32 1.442695, %v2324_v7  ;;  %v2325_v27 = vsub.f32 %v9091_v50, %v2304_v30  ;;  %7305 = vmatpush3.bf16.msra.mxu1 %v7663_v35  ;;  %v7669_v35 = vld [vmem:[%s10345_s7 + $0xe8] sm:$0xff]  }
 0x722   : > { %v2306_v58 = vpop.xlane.xlu1 %2305  ;;  %2369 = vadd.xlane.f32.xlu1 %v9249_v31  ;;  %7354 = vmatprep.subr.bf16.mxu1 %v7664_v1 }
 0x723   : > { %v9256_v0 = vpop.eup %7840  ;;  %7850 = vpow2.f32 %v2349_v40  ;;  %v2351_v44 = vmul.f32 1.442695, %v2325_v27  ;;  %v2326_v43 = vsub.f32 %v9096_v52, %v2306_v58  ;;  %v7666_v52 = vld [vmem:[%s10345_s7 + $0xd0] sm:$0xff]  }
 0x724   : > { %7307 = vmatmul.mubr.bf16.vlgmr.msra.gmra.mrb[128].mxu1 %v8530_v59  ;;  %2371 = vadd.xlane.f32.xlu0 %v9256_v0  ;;  %v2308_v50 = vpop.xlane.xlu0 %2307 }
 0x725   : > { %v9261_v2 = vpop.eup %7842  ;;  %7852 = vpow2.f32 %v2351_v44  ;;  %v2353_v19 = vmul.f32 1.442695, %v2326_v43  ;;  %v2327_v57 = vsub.f32 %v9105_v38, %v2308_v50  ;;  %7310 = vmatprep.mubr.bf16.mxu1 %v8544_v17  ;;  %7355 = vmatpush3.bf16.msra.mxu1 %v7664_v1 }
 0x726   : > { %2373 = vadd.xlane.f32.xlu1 %v9261_v2  ;;  %v2310_v20 = vpop.xlane.xlu1 %2309  ;;  %7356 = vmatprep.subr.bf16.mxu1 %v7665_v8 }
 0x727   : > { %v9269_v15 = vpop.eup %7844  ;;  %7854 = vpow2.f32 %v2353_v19  ;;  %v2355_v32 = vmul.f32 1.442695, %v2327_v57  ;;  %v2328_v33 = vsub.f32 %v9110_v56, %v2310_v20 }
 0x728   : > { %2375 = vadd.xlane.f32.xlu0 %v9269_v15  ;;  %v2312_v38 = vpop.xlane.xlu0 %2311 }
 0x729   : > { %v9273_v3 = vpop.eup %7846  ;;  %7856 = vpow2.f32 %v2355_v32  ;;  %v2357_v5 = vmul.f32 1.442695, %v2328_v33  ;;  %v2329_v37 = vsub.f32 %v9103_v48, %v2312_v38  ;;  %7357 = vmatpush3.bf16.msra.mxu1 %v7665_v8 }
 0x72a   : > { %2377 = vadd.xlane.f32.xlu1 %v9273_v3  ;;  %v2314_v41 = vpop.xlane.xlu1 %2313  ;;  %7358 = vmatprep.subr.bf16.mxu1 %v7666_v52 }
 0x72b   : > { %v9280_v62 = vpop.eup %7848  ;;  %7858 = vpow2.f32 %v2357_v5  ;;  %v2359_v56 = vmul.f32 1.442695, %v2329_v37  ;;  %v2330_v26 = vsub.f32 %v9108_v53, %v2314_v41 }
 0x72c   : > { %7311 = vmatmul.mubr.bf16.gmra.mrb[132].mxu1 %v8557_v14  ;;  %2379 = vadd.xlane.f32.xlu0 %v9280_v62 }
 0x72d   : > { %v9285_v48 = vpop.eup %7850  ;;  %7860 = vpow2.f32 %v2359_v56  ;;  %v2361_v16 = vmul.f32 1.442695, %v2330_v26  ;;  %7314 = vmatprep.mubr.bf16.mxu1 %v8570_v34  ;;  %7359 = vmatpush3.bf16.msra.mxu1 %v7666_v52 }
 0x72e   : > { %2381 = vadd.xlane.f32.xlu1 %v9285_v48  ;;  %7360 = vmatprep.subr.bf16.mxu1 %v7667_v60 }
 0x72f   : > { %v9292_v29 = vpop.eup %7852  ;;  %7862 = vpow2.f32 %v2361_v16 }
 0x730   : > { %2383 = vadd.xlane.f32.xlu0 %v9292_v29 }
 0x731   : > { %v9295_v53 = vpop.eup %7854  ;;  %7361 = vmatpush3.bf16.msra.mxu1 %v7667_v60 }
 0x732   : > { %2385 = vadd.xlane.f32.xlu1 %v9295_v53  ;;  %7362 = vmatprep.subr.bf16.mxu1 %v7668_v23 }
 0x733   : > { %v9301_v63 = vpop.eup %7856 }
 0x734   : > { %7315 = vmatmul.mubr.bf16.gmra.mrb[136].mxu1 %v8583_v45  ;;  %2387 = vadd.xlane.f32.xlu0 %v9301_v63 }
 0x735   : > { %v9305_v22 = vpop.eup %7858  ;;  %7318 = vmatprep.mubr.bf16.mxu1 %v8595_v13  ;;  %7363 = vmatpush3.bf16.msra.mxu1 %v7668_v23 }
 0x736   : > { %2389 = vadd.xlane.f32.xlu1 %v9305_v22  ;;  %7364 = vmatprep.subr.bf16.mxu1 %v7669_v35 }
 0x737   : > { %v9312_v11 = vpop.eup %7860 }
 0x738   : > { %2391 = vadd.xlane.f32.xlu0 %v9312_v11 }
 0x739   : > { %v9315_v18 = vpop.eup %7862  ;;  %7365 = vmatpush3.bf16.msra.mxu1 %v7669_v35 }
 0x73a   : > { %2393 = vadd.xlane.f32.xlu1 %v9315_v18  ;;  %7366 = vmatprep.subr.bf16.mxu1 %v7670_v9 }
 0x73c   : > { %7319 = vmatmul.mubr.bf16.gmra.mrb[140].mxu1 %v8605_v21 }
 0x73d   : > { %7367 = vmatpush3.bf16.msra.mxu1 %v7670_v9  ;;  %7370 = vmatprep.mubr.bf16.mxu1 %v8520_v42 }
 0x73e   : > { %7368 = vmatprep.subr.bf16.mxu1 %v7671_v24 }
 0x741   : > { %7369 = vmatpush3.bf16.msra.mxu1 %v7671_v24 }
 0x744   : > { %7371 = vmatmul.mubr.bf16.vlgmr.msra.gmra.mrb[144].mxu1 %v8530_v59 }
 0x745   : > { %7374 = vmatprep.mubr.bf16.mxu1 %v8544_v17 }
 0x74c   : > { %7375 = vmatmul.mubr.bf16.gmra.mrb[148].mxu1 %v8557_v14 }
 0x74d   : > { %7378 = vmatprep.mubr.bf16.mxu1 %v8570_v34 }
 0x754   : > { %7379 = vmatmul.mubr.bf16.gmra.mrb[152].mxu1 %v8583_v45 }
 0x755   : > { %7382 = vmatprep.mubr.bf16.mxu1 %v8595_v13 }
 0x75c   : > { %7383 = vmatmul.mubr.bf16.gmra.mrb[156].mxu1 %v8605_v21 }
 0x7a9   : > { %v2364_v39 = vpop.xlane.xlu0 %2363 }
 0x7aa   : > { %7864 = vrcp.f32 %v2364_v39 }
 0x7ab   : > { %v2366_v1 = vpop.xlane.xlu1 %2365 }
 0x7ac   : > { %7866 = vrcp.f32 %v2366_v1 }
 0x7ad   : > { %v2368_v6 = vpop.xlane.xlu0 %2367 }
 0x7ae   : > { %7868 = vrcp.f32 %v2368_v6 }
 0x7af   : > { %v2370_v7 = vpop.xlane.xlu1 %2369 }
 0x7b0   : > { %7870 = vrcp.f32 %v2370_v7 }
 0x7b1   : > { %v2372_v30 = vpop.xlane.xlu0 %2371 }
 0x7b2   : > { %7872 = vrcp.f32 %v2372_v30 }
 0x7b3   : > { %v2374_v40 = vpop.xlane.xlu1 %2373 }
 0x7b4   : > { %v7865_v27 = vpop.eup %7864  ;;  %7874 = vrcp.f32 %v2374_v40 }
 0x7b5   : > { %v2376_v58 = vpop.xlane.xlu0 %2375  ;;  %v2411_v43 = vmul.f32 %v7865_v27, %v9229_v12 }
 0x7b6   : > { %v7867_v8 = vpop.eup %7866  ;;  %7876 = vrcp.f32 %v2376_v58 }
 0x7b7   : > { %v2378_v44 = vpop.xlane.xlu1 %2377  ;;  %v2412_v50 = vmul.f32 %v7867_v8, %v9237_v49 }
 0x7b8   : > { %v7869_v19 = vpop.eup %7868  ;;  %7878 = vrcp.f32 %v2378_v44 }
 0x7b9   : > { %v2380_v57 = vpop.xlane.xlu0 %2379  ;;  %v2427_v20 = vpack.c.bf16 %v2412_v50, %v2411_v43  ;;  %v2413_v32 = vmul.f32 %v7869_v19, %v9245_v51 }
 0x7ba   : > { %v7871_v52 = vpop.eup %7870  ;;  %7880 = vrcp.f32 %v2380_v57 }
 0x7bb   : > { %v2414_v33 = vmul.f32 %v7871_v52, %v9249_v31  ;;  %7054 = vmatprep.mubr.bf16.mxu0 %v2427_v20  ;;  %v2382_v38 = vpop.xlane.xlu1 %2381 }
 0x7bc   : > { %v7873_v5 = vpop.eup %7872  ;;  %7882 = vrcp.f32 %v2382_v38 }
 0x7bd   : > { %v2384_v37 = vpop.xlane.xlu0 %2383  ;;  %v2428_v41 = vpack.c.bf16 %v2414_v33, %v2413_v32  ;;  %v2415_v49 = vmul.f32 %v7873_v5, %v9256_v0 }
 0x7be   : > { %v7875_v60 = vpop.eup %7874  ;;  %7884 = vrcp.f32 %v2384_v37 }
 0x7bf   : > { %7055 = vmatmul.mubr.bf16.vlgmr.msra.gmra.mrb[64].mxu0 %v2428_v41  ;;  %v2386_v12 = vpop.xlane.xlu1 %2385  ;;  %v2416_v56 = vmul.f32 %v7875_v60, %v9261_v2 }
 0x7c0   : > { %v7877_v26 = vpop.eup %7876  ;;  %7886 = vrcp.f32 %v2386_v12 }
 0x7c1   : > { %v2388_v16 = vpop.xlane.xlu0 %2387  ;;  %v2429_v51 = vpack.c.bf16 %v2416_v56, %v2415_v49  ;;  %v2417_v35 = vmul.f32 %v7877_v26, %v9269_v15 }
 0x7c2   : > { %v7879_v23 = vpop.eup %7878  ;;  %7888 = vrcp.f32 %v2388_v16 }
 0x7c3   : > { %7058 = vmatprep.mubr.bf16.mxu0 %v2429_v51  ;;  %v2390_v31 = vpop.xlane.xlu1 %2389  ;;  %v2418_v9 = vmul.f32 %v7879_v23, %v9273_v3 }
 0x7c4   : > { %v7881_v24 = vpop.eup %7880  ;;  %7890 = vrcp.f32 %v2390_v31 }
 0x7c5   : > { %v2392_v39 = vpop.xlane.xlu0 %2391  ;;  %v2430_v1 = vpack.c.bf16 %v2418_v9, %v2417_v35  ;;  %v2419_v2 = vmul.f32 %v7881_v24, %v9280_v62  ;;  %v7672_v9 = vld [vmem:[%s10346_s8 + $0x10] sm:$0xff]  }
 0x7c6   : > { %v7883_v6 = vpop.eup %7882  ;;  %7892 = vrcp.f32 %v2392_v39  ;;  %7070 = vmatprep.subr.bf16.mxu0 %v7672_v9 }
 0x7c7   : > { %7059 = vmatmul.mubr.bf16.gmra.mrb[68].mxu0 %v2430_v1  ;;  %v2394_v0 = vpop.xlane.xlu1 %2393  ;;  %v2420_v7 = vmul.f32 %v7883_v6, %v9285_v48 }
 0x7c8   : > { %v7885_v30 = vpop.eup %7884  ;;  %7894 = vrcp.f32 %v2394_v0  ;;  %7071 = vmatpush3.bf16.msra.mxu0 %v7672_v9 }
 0x7c9   : > { %v2431_v40 = vpack.c.bf16 %v2420_v7, %v2419_v2  ;;  %v2421_v15 = vmul.f32 %v7885_v30, %v9292_v29 }
 0x7ca   : > { %v7887_v27 = vpop.eup %7886 }
 0x7cb   : > { %7062 = vmatprep.mubr.bf16.mxu0 %v2431_v40  ;;  %v2422_v3 = vmul.f32 %v7887_v27, %v9295_v53  ;;  %v7673_v27 = vld [vmem:[%s10346_s8 + $0x18] sm:$0xff]  }
 0x7cc   : > { %v7889_v58 = vpop.eup %7888  ;;  %7072 = vmatprep.subr.bf16.mxu0 %v7673_v27 }
 0x7cd   : > { %v2432_v8 = vpack.c.bf16 %v2422_v3, %v2421_v15  ;;  %v2423_v43 = vmul.f32 %v7889_v58, %v9301_v63  ;;  %7073 = vmatpush3.bf16.msra.mxu0 %v7673_v27 }
 0x7ce   : > { %v7891_v44 = vpop.eup %7890 }
 0x7cf   : > { %7063 = vmatmul.mubr.bf16.gmra.mrb[72].mxu0 %v2432_v8  ;;  %v2424_v50 = vmul.f32 %v7891_v44, %v9305_v22 }
 0x7d0   : > { %v7893_v62 = vpop.eup %7892 }
 0x7d1   : > { %v2433_v19 = vpack.c.bf16 %v2424_v50, %v2423_v43  ;;  %v2425_v57 = vmul.f32 %v7893_v62, %v9312_v11 }
 0x7d2   : > { %v7895_v48 = vpop.eup %7894 }
 0x7d3   : > { %7066 = vmatprep.mubr.bf16.mxu0 %v2433_v19  ;;  %v2426_v20 = vmul.f32 %v7895_v48, %v9315_v18 }
 0x7d5   : > { %v2434_v52 = vpack.c.bf16 %v2426_v20, %v2425_v57 }
 0x7d7   : > { %v9346_v29 = vpop.f32.mrb[112].mxu1  ;;  %7067 = vmatmul.mubr.bf16.gmra.mrb[76].mxu0 %v2434_v52  ;;  %v9451_v52 = vld [vmem:[%s10346_s8] sm:$0xff]  }
 0x7d8   : > { %v9348_v53 = vpop.f32.mrb[113].mxu1  ;;  %7090 = vmatprep.subr.bf16.mxu0 %v9451_v52 }
 0x7d9   : > { %3466 = vmax.xlane.f32.xlu0 %v9348_v53  ;;  %v9351_v32 = vpop.f32.mrb[114].mxu1 }
 0x7da   : > { %v9353_v63 = vpop.f32.mrb[115].mxu1 }
 0x7db   : > { %3468 = vmax.xlane.f32.xlu1 %v9353_v63 }
 0x7dd   : > { %3470 = vmax.xlane.f32.xlu0 %v9346_v29 }
 0x7df   : > { %3472 = vmax.xlane.f32.xlu1 %v9351_v32  ;;  %v9358_v22 = vpop.f32.mrb[116].mxu1 }
 0x7e0   : > { %v9360_v11 = vpop.f32.mrb[117].mxu1 }
 0x7e1   : > { %3474 = vmax.xlane.f32.xlu0 %v9360_v11  ;;  %v9363_v18 = vpop.f32.mrb[118].mxu1 }
 0x7e2   : > { %v9365_v33 = vpop.f32.mrb[119].mxu1 }
 0x7e3   : > { %3476 = vmax.xlane.f32.xlu1 %v9365_v33 }
 0x7e5   : > { %3478 = vmax.xlane.f32.xlu0 %v9358_v22 }
 0x7e7   : > { %3480 = vmax.xlane.f32.xlu1 %v9363_v18  ;;  %v9370_v38 = vpop.f32.mrb[120].mxu1 }
 0x7e8   : > { %v9372_v5 = vpop.f32.mrb[121].mxu1 }
 0x7e9   : > { %3482 = vmax.xlane.f32.xlu0 %v9372_v5  ;;  %v9375_v37 = vpop.f32.mrb[122].mxu1 }
 0x7ea   : > { %v9377_v41 = vpop.f32.mrb[123].mxu1 }
 0x7eb   : > { %3484 = vmax.xlane.f32.xlu1 %v9377_v41 }
 0x7ed   : > { %3486 = vmax.xlane.f32.xlu0 %v9370_v38 }
 0x7ef   : > { %3488 = vmax.xlane.f32.xlu1 %v9375_v37  ;;  %v9382_v60 = vpop.f32.mrb[124].mxu1 }
 0x7f0   : > { %v9384_v12 = vpop.f32.mrb[125].mxu1 }
 0x7f1   : > { %3490 = vmax.xlane.f32.xlu0 %v9384_v12  ;;  %v9387_v49 = vpop.f32.mrb[126].mxu1 }
 0x7f2   : > { %v9389_v56 = vpop.f32.mrb[127].mxu1 }
 0x7f3   : > { %3492 = vmax.xlane.f32.xlu1 %v9389_v56 }
 0x7f5   : > { %3494 = vmax.xlane.f32.xlu0 %v9382_v60 }
 0x7f7   : > { %3496 = vmax.xlane.f32.xlu1 %v9387_v49  ;;  %v9394_v26 = vpop.f32.mrb[128].mxu1 }
 0x7f8   : > { %v9396_v16 = vpop.f32.mrb[129].mxu1 }
 0x7f9   : > { %v9398_v51 = vpop.f32.mrb[130].mxu1 }
 0x7fa   : > { %v9402_v31 = vpop.f32.mrb[131].mxu1 }
 0x7ff   : > { %v9409_v24 = vpop.f32.mrb[132].mxu1 }
 0x800   : > { %v9411_v39 = vpop.f32.mrb[133].mxu1 }
 0x801   : > { %v9413_v1 = vpop.f32.mrb[134].mxu1 }
 0x802   : > { %v9417_v0 = vpop.f32.mrb[135].mxu1 }
 0x807   : > { %v9421_v7 = vpop.f32.mrb[136].mxu1 }
 0x808   : > { %v9423_v30 = vpop.f32.mrb[137].mxu1 }
 0x809   : > { %v9425_v40 = vpop.f32.mrb[138].mxu1 }
 0x80a   : > { %v9432_v3 = vpop.f32.mrb[139].mxu1 }
 0x80f   : > { %v9436_v8 = vpop.f32.mrb[140].mxu1 }
 0x810   : > { %10382 = vst [vmem:[#allocation12_spill] sm:$0xff] %v9436_v8  ;;  %v9438_v44 = vpop.f32.mrb[141].mxu1 }
 0x811   : > { %10383 = vst [vmem:[#allocation13_spill] sm:$0xff] %v9438_v44  ;;  %v9440_v43 = vpop.f32.mrb[142].mxu1 }
 0x812   : > { %10384 = vst [vmem:[#allocation14_spill] sm:$0xff] %v9440_v43  ;;  %v9444_v62 = vpop.f32.mrb[143].mxu1 }
 0x817   : > { %v7372_v48 = vpop.f32.mrb[144].mxu1 }
 0x818   : > { %v4316_v57 = vpop.f32.mrb[145].mxu1 }
 0x819   : > { %v7373_v20 = vpop.f32.mrb[146].mxu1 }
 0x81a   : > { %v4380_v9 = vpack.c.bf16 %v7373_v20, %v7372_v48  ;;  %v4319_v27 = vpop.f32.mrb[147].mxu1 }
 0x81b   : > { %v4379_v15 = vpack.c.bf16 %v4319_v27, %v4316_v57 }
 0x81d   : > { %7418 = vmatprep.subr.bf16.mxu1 %v4379_v15 }
 0x81e   : > { %7419 = vmatpush3.bf16.msra.mxu1 %v4379_v15 }
 0x81f   : > { %v7376_v50 = vpop.f32.mrb[148].mxu1  ;;  %7420 = vmatprep.subr.bf16.mxu1 %v4380_v9 }
 0x820   : > { %v4332_v58 = vpop.f32.mrb[149].mxu1 }
 0x821   : > { %v7377_v6 = vpop.f32.mrb[150].mxu1 }
 0x822   : > { %v4382_v19 = vpack.c.bf16 %v7377_v6, %v7376_v50  ;;  %v4335_v2 = vpop.f32.mrb[151].mxu1  ;;  %7421 = vmatpush3.bf16.msra.mxu1 %v4380_v9 }
 0x823   : > { %v4381_v23 = vpack.c.bf16 %v4335_v2, %v4332_v58 }
 0x825   : > { %7422 = vmatprep.subr.bf16.mxu1 %v4381_v23 }
 0x826   : > { %7423 = vmatpush3.bf16.msra.mxu1 %v4381_v23 }
 0x827   : > { %v7380_v35 = vpop.f32.mrb[152].mxu1  ;;  %7424 = vmatprep.subr.bf16.mxu1 %v4382_v19 }
 0x828   : > { %v4348_v8 = vpop.f32.mrb[153].mxu1 }
 0x829   : > { %v7381_v48 = vpop.f32.mrb[154].mxu1 }
 0x82a   : > { %v4384_v20 = vpack.c.bf16 %v7381_v48, %v7380_v35  ;;  %v4351_v57 = vpop.f32.mrb[155].mxu1  ;;  %7425 = vmatpush3.bf16.msra.mxu1 %v4382_v19 }
 0x82b   : > { %v4383_v27 = vpack.c.bf16 %v4351_v57, %v4348_v8 }
 0x82d   : > { %7426 = vmatprep.subr.bf16.mxu1 %v4383_v27 }
 0x82e   : > { %7427 = vmatpush3.bf16.msra.mxu1 %v4383_v27 }
 0x82f   : > { %v7384_v15 = vpop.f32.mrb[156].mxu1  ;;  %7428 = vmatprep.subr.bf16.mxu1 %v4384_v20 }
 0x830   : > { %v4364_v43 = vpop.f32.mrb[157].mxu1 }
 0x831   : > { %v7385_v44 = vpop.f32.mrb[158].mxu1 }
 0x832   : > { %v4386_v6 = vpack.c.bf16 %v7385_v44, %v7384_v15  ;;  %v4367_v50 = vpop.f32.mrb[159].mxu1  ;;  %7429 = vmatpush3.bf16.msra.mxu1 %v4384_v20 }
 0x833   : > { %v4385_v2 = vpack.c.bf16 %v4367_v50, %v4364_v43 }
 0x835   : > { %7430 = vmatprep.subr.bf16.mxu1 %v4385_v2 }
 0x836   : > { %7431 = vmatpush3.bf16.msra.mxu1 %v4385_v2 }
 0x837   : > { %7432 = vmatprep.subr.bf16.mxu1 %v4386_v6 }
 0x83a   : > { %7433 = vmatpush3.bf16.msra.mxu1 %v4386_v6 }
 0x866   : > { %v3467_v23 = vpop.xlane.xlu0 %3466 }
 0x867   : > { %v3498_v35 = vsub.f32 %v9348_v53, %v3467_v23 }
 0x868   : > { %v3469_v58 = vpop.xlane.xlu1 %3468 }
 0x869   : > { %v3514_v19 = vmul.f32 1.442695, %v3498_v35  ;;  %v3499_v8 = vsub.f32 %v9353_v63, %v3469_v58 }
 0x86a   : > { %v3471_v9 = vpop.xlane.xlu0 %3470 }
 0x86b   : > { %7896 = vpow2.f32 %v3514_v19  ;;  %v3516_v48 = vmul.f32 1.442695, %v3499_v8  ;;  %v3500_v57 = vsub.f32 %v9346_v29, %v3471_v9 }
 0x86c   : > { %v3473_v44 = vpop.xlane.xlu1 %3472 }
 0x86d   : > { %7898 = vpow2.f32 %v3516_v48  ;;  %v3518_v20 = vmul.f32 1.442695, %v3500_v57  ;;  %v3501_v43 = vsub.f32 %v9351_v32, %v3473_v44 }
 0x86e   : > { %v3475_v27 = vpop.xlane.xlu0 %3474 }
 0x86f   : > { %7900 = vpow2.f32 %v3518_v20  ;;  %v3520_v15 = vmul.f32 1.442695, %v3501_v43  ;;  %v3502_v6 = vsub.f32 %v9360_v11, %v3475_v27 }
 0x870   : > { %v3477_v53 = vpop.xlane.xlu1 %3476 }
 0x871   : > { %7902 = vpow2.f32 %v3520_v15  ;;  %v3522_v50 = vmul.f32 1.442695, %v3502_v6  ;;  %v3503_v63 = vsub.f32 %v9365_v33, %v3477_v53 }
 0x872   : > { %v3479_v2 = vpop.xlane.xlu0 %3478 }
 0x873   : > { %7904 = vpow2.f32 %v3522_v50  ;;  %v3524_v23 = vmul.f32 1.442695, %v3503_v63  ;;  %v3504_v29 = vsub.f32 %v9358_v22, %v3479_v2 }
 0x874   : > { %v3481_v35 = vpop.xlane.xlu1 %3480 }
 0x875   : > { %v9461_v58 = vpop.eup %7896  ;;  %7906 = vpow2.f32 %v3524_v23  ;;  %v3526_v32 = vmul.f32 1.442695, %v3504_v29  ;;  %v3505_v19 = vsub.f32 %v9363_v18, %v3481_v35 }
 0x876   : > { %v3483_v8 = vpop.xlane.xlu0 %3482  ;;  %3546 = vadd.xlane.f32.xlu0 %v9461_v58 }
 0x877   : > { %v9465_v11 = vpop.eup %7898  ;;  %7908 = vpow2.f32 %v3526_v32  ;;  %v3528_v9 = vmul.f32 1.442695, %v3505_v19  ;;  %v3506_v33 = vsub.f32 %v9372_v5, %v3483_v8 }
 0x878   : > { %v3485_v48 = vpop.xlane.xlu1 %3484  ;;  %3548 = vadd.xlane.f32.xlu1 %v9465_v11 }
 0x879   : > { %v9469_v22 = vpop.eup %7900  ;;  %7910 = vpow2.f32 %v3528_v9  ;;  %v3530_v57 = vmul.f32 1.442695, %v3506_v33  ;;  %v3507_v44 = vsub.f32 %v9377_v41, %v3485_v48 }
 0x87a   : > { %v3487_v20 = vpop.xlane.xlu0 %3486  ;;  %3550 = vadd.xlane.f32.xlu0 %v9469_v22 }
 0x87b   : > { %v9473_v18 = vpop.eup %7902  ;;  %7912 = vpow2.f32 %v3530_v57  ;;  %v3532_v43 = vmul.f32 1.442695, %v3507_v44  ;;  %v3508_v27 = vsub.f32 %v9370_v38, %v3487_v20 }
 0x87c   : > { %v3489_v15 = vpop.xlane.xlu1 %3488  ;;  %3552 = vadd.xlane.f32.xlu1 %v9473_v18 }
 0x87d   : > { %v9477_v5 = vpop.eup %7904  ;;  %7914 = vpow2.f32 %v3532_v43  ;;  %v3534_v6 = vmul.f32 1.442695, %v3508_v27  ;;  %v3509_v53 = vsub.f32 %v9375_v37, %v3489_v15 }
 0x87e   : > { %3554 = vadd.xlane.f32.xlu0 %v9477_v5  ;;  %v3491_v41 = vpop.xlane.xlu0 %3490 }
 0x87f   : > { %v9481_v50 = vpop.eup %7906  ;;  %7916 = vpow2.f32 %v3534_v6  ;;  %v3536_v63 = vmul.f32 1.442695, %v3509_v53  ;;  %v3510_v2 = vsub.f32 %v9384_v12, %v3491_v41 }
 0x880   : > { %3556 = vadd.xlane.f32.xlu1 %v9481_v50  ;;  %v3493_v38 = vpop.xlane.xlu1 %3492 }
 0x881   : > { %v9485_v23 = vpop.eup %7908  ;;  %7918 = vpow2.f32 %v3536_v63  ;;  %v3538_v29 = vmul.f32 1.442695, %v3510_v2  ;;  %v3511_v35 = vsub.f32 %v9389_v56, %v3493_v38  ;;  %v7675_v38 = vld [vmem:[%s10346_s8 + $0x8] sm:$0xff]  }
 0x882   : > { %3558 = vadd.xlane.f32.xlu0 %v9485_v23  ;;  %v3495_v37 = vpop.xlane.xlu0 %3494 }
 0x883   : > { %v9489_v32 = vpop.eup %7910  ;;  %7920 = vpow2.f32 %v3538_v29  ;;  %v3540_v19 = vmul.f32 1.442695, %v3511_v35  ;;  %v3512_v8 = vsub.f32 %v9382_v60, %v3495_v37  ;;  %v7676_v37 = vld [vmem:[%s10345_s7 + $0x80] sm:$0xff]  }
 0x884   : > { %3560 = vadd.xlane.f32.xlu1 %v9489_v32  ;;  %v3497_v12 = vpop.xlane.xlu1 %3496 }
 0x885   : > { %v9493_v9 = vpop.eup %7912  ;;  %7922 = vpow2.f32 %v3540_v19  ;;  %v3542_v33 = vmul.f32 1.442695, %v3512_v8  ;;  %v3513_v48 = vsub.f32 %v9387_v49, %v3497_v12 }
 0x886   : > { %3562 = vadd.xlane.f32.xlu0 %v9493_v9 }
 0x887   : > { %v9497_v56 = vpop.eup %7914  ;;  %7924 = vpow2.f32 %v3542_v33  ;;  %v3544_v57 = vmul.f32 1.442695, %v3513_v48 }
 0x888   : > { %3564 = vadd.xlane.f32.xlu1 %v9497_v56 }
 0x889   : > { %v9500_v44 = vpop.eup %7916  ;;  %7926 = vpow2.f32 %v3544_v57 }
 0x88a   : > { %3566 = vadd.xlane.f32.xlu0 %v9500_v44 }
 0x88b   : > { %v9503_v60 = vpop.eup %7918 }
 0x88c   : > { %3568 = vadd.xlane.f32.xlu1 %v9503_v60 }
 0x88d   : > { %v9506_v20 = vpop.eup %7920 }
 0x88e   : > { %3570 = vadd.xlane.f32.xlu0 %v9506_v20 }
 0x88f   : > { %v9509_v49 = vpop.eup %7922 }
 0x890   : > { %3572 = vadd.xlane.f32.xlu1 %v9509_v49 }
 0x891   : > { %v9512_v43 = vpop.eup %7924 }
 0x892   : > { %3574 = vadd.xlane.f32.xlu0 %v9512_v43  ;;  %v7056_v27 = vpop.f32.mrb[64].mxu0 }
 0x893   : > { %v9515_v15 = vpop.eup %7926  ;;  %v2469_v6 = vpop.f32.mrb[65].mxu0 }
 0x894   : > { %3576 = vadd.xlane.f32.xlu1 %v9515_v15  ;;  %v7057_v53 = vpop.f32.mrb[66].mxu0 }
 0x895   : > { %v2533_v41 = vpack.c.bf16 %v7057_v53, %v7056_v27  ;;  %v2472_v63 = vpop.f32.mrb[67].mxu0 }
 0x896   : > { %v2532_v2 = vpack.c.bf16 %v2472_v63, %v2469_v6 }
 0x898   : > { %7074 = vmatprep.mubr.msk.bf16.mxu0 %vm1221_vm0, %v2532_v2 }
 0x899   : > { %7075 = vmatmul.mubr.msk.bf16.vlgmr.msra.gmra.mrb[80].mxu0 %vm1221_vm0, %v2533_v41 }
 0x89a   : > { %v7060_v29 = vpop.f32.mrb[68].mxu0  ;;  %7091 = vmatpush3.bf16.msra.mxu0 %v9451_v52 }
 0x89b   : > { %v2485_v35 = vpop.f32.mrb[69].mxu0  ;;  %7092 = vmatprep.subr.bf16.mxu0 %v7675_v38 }
 0x89c   : > { %v7061_v19 = vpop.f32.mrb[70].mxu0 }
 0x89d   : > { %v2535_v8 = vpack.c.bf16 %v7061_v19, %v7060_v29  ;;  %v2488_v12 = vpop.f32.mrb[71].mxu0  ;;  %v10385_v19 = vpack.c.bf16 %v8958_v10, %v8952_v4  ;;  %v7678_v4 = vld [vmem:[%s10345_s7 + $0x90] sm:$0xff]   ;;  %v7679_v10 = vld [vmem:[%s10345_s7 + $0x98] sm:$0xff]  }
 0x89e   : > { %v2534_v33 = vpack.c.bf16 %v2488_v12, %v2485_v35  ;;  %7093 = vmatpush3.bf16.msra.mxu0 %v7675_v38  ;;  %v10386_v12 = vpack.c.bf16 %v8954_v46, %v8950_v28  ;;  %v10388_v28 = vpack.c.bf16 %v8966_v47, %v8962_v61  ;;  %v10389_v46 = vpack.c.bf16 %v8982_v55, %v8976_v25  ;;  %v10390_v61 = vld [vmem:[#allocation7_spill] sm:$0xff]  ;;  %v10391_v47 = vld [vmem:[#allocation6_spill] sm:$0xff]  ;;  %v10394_v55 = vld [vmem:[#allocation9_spill] sm:$0xff] }
 0x89f   : > { %7174 = vmatprep.subr.bf16.mxu0 %v7676_v37  ;;  %v10393_v25 = vld [vmem:[#allocation11_spill] sm:$0xff] }
 0x8a0   : > { %7078 = vmatprep.mubr.msk.bf16.mxu0 %vm1221_vm0, %v2534_v33  ;;  %v10387_v33 = vpack.c.bf16 %v8970_v54, %v8964_v36  ;;  %v7680_v36 = vld [vmem:[%s10345_s7 + $0xa0] sm:$0xff]   ;;  %v7681_v54 = vld [vmem:[%s10345_s7 + $0xa8] sm:$0xff]  }
 0x8a1   : > { %7079 = vmatmul.mubr.msk.bf16.gmra.mrb[84].mxu0 %vm1221_vm0, %v2535_v8  ;;  %v7677_v8 = vld [vmem:[%s10345_s7 + $0x88] sm:$0xff]  }
 0x8a2   : > { %v7064_v48 = vpop.f32.mrb[72].mxu0 }
 0x8a3   : > { %v2501_v57 = vpop.f32.mrb[73].mxu0 }
 0x8a4   : > { %v7065_v27 = vpop.f32.mrb[74].mxu0 }
 0x8a5   : > { %v2537_v52 = vpack.c.bf16 %v7065_v27, %v7064_v48  ;;  %v2504_v6 = vpop.f32.mrb[75].mxu0  ;;  %v10395_v48 = vpack.c.bf16 %v10393_v25, %v10394_v55  ;;  %v7683_v27 = vld [vmem:[%s10345_s7 + $0xb8] sm:$0xff]  }
 0x8a6   : > { %v2536_v53 = vpack.c.bf16 %v2504_v6, %v2501_v57  ;;  %v7682_v57 = vld [vmem:[%s10345_s7 + $0xb0] sm:$0xff]  }
 0x8a7   : > { %v10397_v6 = vld [vmem:[#allocation8_spill] sm:$0xff] }
 0x8a8   : > { %7082 = vmatprep.mubr.msk.bf16.mxu0 %vm1221_vm0, %v2536_v53 }
 0x8a9   : > { %7083 = vmatmul.mubr.msk.bf16.gmra.mrb[88].mxu0 %vm1221_vm0, %v2537_v52  ;;  %v10396_v52 = vld [vmem:[#allocation10_spill] sm:$0xff] }
 0x8aa   : > { %v7068_v41 = vpop.f32.mrb[76].mxu0  ;;  %v10398_v53 = vpack.c.bf16 %v10396_v52, %v10397_v6 }
 0x8ab   : > { %v2517_v63 = vpop.f32.mrb[77].mxu0 }
 0x8ac   : > { %v7069_v2 = vpop.f32.mrb[78].mxu0 }
 0x8ad   : > { %v2539_v29 = vpack.c.bf16 %v7069_v2, %v7068_v41  ;;  %v2520_v38 = vpop.f32.mrb[79].mxu0 }
 0x8ae   : > { %v2538_v35 = vpack.c.bf16 %v2520_v38, %v2517_v63 }
 0x8b0   : > { %7086 = vmatprep.mubr.msk.bf16.mxu0 %vm1221_vm0, %v2538_v35 }
 0x8b1   : > { %7087 = vmatmul.mubr.msk.bf16.gmra.mrb[92].mxu0 %vm1221_vm0, %v2539_v29 }
 0x8b2   : > { %7094 = vmatprep.mubr.msk.bf16.mxu0 %vm1221_vm0, %v10385_v19 }
 0x8b9   : > { %7095 = vmatmul.mubr.msk.bf16.vlgmr.msra.gmra.mrb[80].mxu0 %vm1221_vm0, %v10386_v12 }
 0x8ba   : > { %7098 = vmatprep.mubr.msk.bf16.mxu0 %vm1221_vm0, %v10387_v33  ;;  %7175 = vmatpush3.bf16.msra.mxu0 %v7676_v37  ;;  %v10392_v37 = vpack.c.bf16 %v10390_v61, %v10391_v47 }
 0x8bb   : > { %7176 = vmatprep.subr.bf16.mxu0 %v7677_v8 }
 0x8be   : > { %7177 = vmatpush3.bf16.msra.mxu0 %v7677_v8 }
 0x8bf   : > { %7178 = vmatprep.subr.bf16.mxu0 %v7678_v4 }
 0x8c1   : > { %7099 = vmatmul.mubr.msk.bf16.gmra.mrb[84].mxu0 %vm1221_vm0, %v10388_v28 }
 0x8c2   : > { %7102 = vmatprep.mubr.msk.bf16.mxu0 %vm1221_vm0, %v10389_v46  ;;  %7179 = vmatpush3.bf16.msra.mxu0 %v7678_v4 }
 0x8c3   : > { %7180 = vmatprep.subr.bf16.mxu0 %v7679_v10 }
 0x8c6   : > { %7181 = vmatpush3.bf16.msra.mxu0 %v7679_v10 }
 0x8c7   : > { %7182 = vmatprep.subr.bf16.mxu0 %v7680_v36 }
 0x8c9   : > { %7103 = vmatmul.mubr.msk.bf16.gmra.mrb[88].mxu0 %vm1221_vm0, %v10392_v37 }
 0x8ca   : > { %7106 = vmatprep.mubr.msk.bf16.mxu0 %vm1221_vm0, %v10395_v48  ;;  %7183 = vmatpush3.bf16.msra.mxu0 %v7680_v36 }
 0x8cb   : > { %7184 = vmatprep.subr.bf16.mxu0 %v7681_v54 }
 0x8ce   : > { %7185 = vmatpush3.bf16.msra.mxu0 %v7681_v54 }
 0x8cf   : > { %7186 = vmatprep.subr.bf16.mxu0 %v7682_v57 }
 0x8d1   : > { %7107 = vmatmul.mubr.msk.bf16.gmra.mrb[92].mxu0 %vm1221_vm0, %v10398_v53 }
 0x8d2   : > { %7187 = vmatpush3.bf16.msra.mxu0 %v7682_v57  ;;  %7190 = vmatprep.mubr.bf16.mxu0 %v8520_v42 }
 0x8d3   : > { %7188 = vmatprep.subr.bf16.mxu0 %v7683_v27 }
 0x8d6   : > { %7189 = vmatpush3.bf16.msra.mxu0 %v7683_v27 }
 0x8d9   : > { %7191 = vmatmul.mubr.bf16.vlgmr.msra.gmra.mrb[96].mxu0 %v8530_v59 }
 0x8da   : > { %7194 = vmatprep.mubr.bf16.mxu0 %v8544_v17 }
 0x8e1   : > { %7195 = vmatmul.mubr.bf16.gmra.mrb[100].mxu0 %v8557_v14 }
 0x8e2   : > { %7198 = vmatprep.mubr.bf16.mxu0 %v8570_v34 }
 0x8e9   : > { %7199 = vmatmul.mubr.bf16.gmra.mrb[104].mxu0 %v8583_v45 }
 0x8ea   : > { %7202 = vmatprep.mubr.bf16.mxu0 %v8595_v13 }
 0x8f1   : > { %7203 = vmatmul.mubr.bf16.gmra.mrb[108].mxu0 %v8605_v21 }
 0x903   : > { %v3547_v41 = vpop.xlane.xlu0 %3546 }
 0x904   : > { %7928 = vrcp.f32 %v3547_v41 }
 0x905   : > { %v3549_v63 = vpop.xlane.xlu1 %3548 }
 0x906   : > { %7930 = vrcp.f32 %v3549_v63 }
 0x907   : > { %v3551_v36 = vpop.xlane.xlu0 %3550 }
 0x909   : > { %v3553_v4 = vpop.xlane.xlu1 %3552 }
 0x90a   : > { %7932 = vrcp.f32 %v3553_v4 }
 0x90d   : > { %v3557_v61 = vpop.xlane.xlu1 %3556 }
 0x90e   : > { %v7929_v2 = vpop.eup %7928  ;;  %7934 = vrcp.f32 %v3557_v61 }
 0x90f   : > { %v3594_v38 = vmul.f32 %v7929_v2, %v9461_v58  ;;  %v3555_v58 = vpop.xlane.xlu0 %3554  ;;  %7936 = vrcp.f32 %v3551_v36 }
 0x910   : > { %v7931_v29 = vpop.eup %7930  ;;  %7938 = vrcp.f32 %v3555_v58 }
 0x911   : > { %v3595_v35 = vmul.f32 %v7931_v29, %v9465_v11  ;;  %v3561_v48 = vpop.xlane.xlu1 %3560 }
 0x912   : > { %7940 = vrcp.f32 %v3561_v48 }
 0x913   : > { %v3610_v19 = vpack.c.bf16 %v3595_v35, %v3594_v38  ;;  %v3559_v27 = vpop.xlane.xlu0 %3558 }
 0x915   : > { %7254 = vmatprep.mubr.bf16.mxu0 %v3610_v19  ;;  %v3565_v2 = vpop.xlane.xlu1 %3564 }
 0x916   : > { %7942 = vrcp.f32 %v3565_v2 }
 0x917   : > { %v3563_v29 = vpop.xlane.xlu0 %3562  ;;  %7944 = vrcp.f32 %v3559_v27 }
 0x918   : > { %7946 = vrcp.f32 %v3563_v29 }
 0x9ac   : > { %v7192_v8 = vpop.f32.mrb[96].mxu0 }
 0x9ad   : > { %v3250_v12 = vpop.f32.mrb[97].mxu0 }
 0x9ae   : > { %v7193_v33 = vpop.f32.mrb[98].mxu0 }
 0x9af   : > { %v3314_v10 = vpack.c.bf16 %v7193_v33, %v7192_v8  ;;  %v3253_v28 = vpop.f32.mrb[99].mxu0  ;;  %v3569_v8 = vpop.xlane.xlu1 %3568 }
 0x9b0   : > { %v3313_v46 = vpack.c.bf16 %v3253_v28, %v3250_v12  ;;  %v3567_v28 = vpop.xlane.xlu0 %3566  ;;  %7948 = vrcp.f32 %v3569_v8 }
 0x9b2   : > { %7238 = vmatprep.subr.bf16.mxu0 %v3313_v46 }
 0x9b3   : > { %7239 = vmatpush3.bf16.msra.mxu0 %v3313_v46 }
 0x9b4   : > { %v7196_v54 = vpop.f32.mrb[100].mxu0  ;;  %7240 = vmatprep.subr.bf16.mxu0 %v3314_v10 }
 0x9b5   : > { %v3266_v47 = vpop.f32.mrb[101].mxu0 }
 0x9b6   : > { %v7197_v37 = vpop.f32.mrb[102].mxu0 }
 0x9b7   : > { %v3316_v25 = vpack.c.bf16 %v7197_v37, %v7196_v54  ;;  %v3269_v11 = vpop.f32.mrb[103].mxu0  ;;  %7241 = vmatpush3.bf16.msra.mxu0 %v3314_v10  ;;  %v7933_v10 = vpop.eup %7932 }
 0x9b8   : > { %v3315_v55 = vpack.c.bf16 %v3269_v11, %v3266_v47  ;;  %v7935_v46 = vpop.eup %7934  ;;  %v3597_v61 = vmul.f32 %v7933_v10, %v9473_v18  ;;  %v7684_v47 = vld [vmem:[%s10346_s8 + $0x20] sm:$0xff]   ;;  %v3573_v37 = vpop.xlane.xlu1 %3572  ;;  %v7685_v18 = vld [vmem:[%s10346_s8 + $0x28] sm:$0xff]  }
 0x9b9   : > { %v7937_v36 = vpop.eup %7936  ;;  %v3599_v58 = vmul.f32 %v7935_v46, %v9481_v50  ;;  %v3571_v11 = vpop.xlane.xlu0 %3570  ;;  %7950 = vrcp.f32 %v3573_v37 }
 0x9ba   : > { %7242 = vmatprep.subr.bf16.mxu0 %v3315_v55  ;;  %v7939_v54 = vpop.eup %7938  ;;  %7952 = vrcp.f32 %v3567_v28 }
 0x9bb   : > { %7243 = vmatpush3.bf16.msra.mxu0 %v3315_v55  ;;  %v3598_v55 = vmul.f32 %v7939_v54, %v9477_v5  ;;  %7954 = vrcp.f32 %v3571_v11 }
 0x9bc   : > { %v7200_v57 = vpop.f32.mrb[104].mxu0  ;;  %7244 = vmatprep.subr.bf16.mxu0 %v3316_v25 }
 0x9bd   : > { %v3282_v52 = vpop.f32.mrb[105].mxu0  ;;  %v3612_v27 = vpack.c.bf16 %v3599_v58, %v3598_v55  ;;  %v7687_v58 = vld [vmem:[%s10344_s6 + $0xc8] sm:$0xff]  }
 0x9be   : > { %v7201_v6 = vpop.f32.mrb[106].mxu0 }
 0x9bf   : > { %v3318_v53 = vpack.c.bf16 %v7201_v6, %v7200_v57  ;;  %v3285_v41 = vpop.f32.mrb[107].mxu0  ;;  %7245 = vmatpush3.bf16.msra.mxu0 %v3316_v25  ;;  %v3596_v25 = vmul.f32 %v7937_v36, %v9469_v22  ;;  %v7941_v57 = vpop.eup %7940 }
 0x9c0   : > { %v3317_v63 = vpack.c.bf16 %v3285_v41, %v3282_v52  ;;  %v7943_v52 = vpop.eup %7942  ;;  %v3577_v6 = vpop.xlane.xlu1 %3576  ;;  %v3601_v5 = vmul.f32 %v7941_v57, %v9489_v32  ;;  %v7689_v57 = vld [vmem:[%s10344_s6 + $0xd8] sm:$0xff]  }
 0x9c1   : > { %v3611_v48 = vpack.c.bf16 %v3597_v61, %v3596_v25  ;;  %v7945_v50 = vpop.eup %7944  ;;  %v3575_v41 = vpop.xlane.xlu0 %3574  ;;  %7956 = vrcp.f32 %v3577_v6  ;;  %v7688_v25 = vld [vmem:[%s10344_s6 + $0xd0] sm:$0xff]  }
 0x9c2   : > { %7246 = vmatprep.subr.bf16.mxu0 %v3317_v63  ;;  %v7947_v22 = vpop.eup %7946  ;;  %7958 = vrcp.f32 %v3575_v41  ;;  %v7691_v41 = vld [vmem:[%s10344_s6 + $0xe8] sm:$0xff]  }
 0x9c3   : > { %7247 = vmatpush3.bf16.msra.mxu0 %v3317_v63  ;;  %v3600_v63 = vmul.f32 %v7945_v50, %v9485_v23  ;;  %v3602_v2 = vmul.f32 %v7947_v22, %v9493_v9  ;;  %v7690_v50 = vld [vmem:[%s10344_s6 + $0xe0] sm:$0xff]  }
 0x9c4   : > { %v7204_v38 = vpop.f32.mrb[108].mxu0  ;;  %7248 = vmatprep.subr.bf16.mxu0 %v3318_v53 }
 0x9c5   : > { %v3298_v35 = vpop.f32.mrb[109].mxu0  ;;  %v3613_v29 = vpack.c.bf16 %v3601_v5, %v3600_v63 }
 0x9c6   : > { %v7205_v19 = vpop.f32.mrb[110].mxu0 }
 0x9c7   : > { %v3320_v12 = vpack.c.bf16 %v7205_v19, %v7204_v38  ;;  %v3301_v33 = vpop.f32.mrb[111].mxu0  ;;  %7249 = vmatpush3.bf16.msra.mxu0 %v3318_v53  ;;  %v3603_v53 = vmul.f32 %v7943_v52, %v9497_v56  ;;  %v7949_v38 = vpop.eup %7948 }
 0x9c8   : > { %v3319_v4 = vpack.c.bf16 %v3301_v33, %v3298_v35  ;;  %v7951_v19 = vpop.eup %7950  ;;  %v3605_v32 = vmul.f32 %v7949_v38, %v9503_v60  ;;  %v7686_v60 = vld [vmem:[%s10344_s6 + $0xc0] sm:$0xff]  }
 0x9c9   : > { %v3614_v35 = vpack.c.bf16 %v3603_v53, %v3602_v2  ;;  %v7953_v8 = vpop.eup %7952  ;;  %v3607_v56 = vmul.f32 %v7951_v19, %v9509_v49 }
 0x9ca   : > { %7250 = vmatprep.subr.bf16.mxu0 %v3319_v4  ;;  %v3604_v33 = vmul.f32 %v7953_v8, %v9500_v44 }
 0x9cb   : > { %7251 = vmatpush3.bf16.msra.mxu0 %v3319_v4 }
 0x9cc   : > { %7252 = vmatprep.subr.bf16.mxu0 %v3320_v12  ;;  %v3615_v4 = vpack.c.bf16 %v3605_v32, %v3604_v33  ;;  %v10399_v32 = vpack.c.bf16 %v9402_v31, %v9396_v16 }
 0x9cf   : > { %7253 = vmatpush3.bf16.msra.mxu0 %v3320_v12  ;;  %v7955_v12 = vpop.eup %7954 }
 0x9d0   : > { %7270 = vmatprep.subr.bf16.mxu0 %v7684_v47  ;;  %v3606_v23 = vmul.f32 %v7955_v12, %v9506_v20  ;;  %v7957_v9 = vpop.eup %7956  ;;  %v7693_v12 = vld [vmem:[%s10344_s6 + $0xf8] sm:$0xff]  }
 0x9d1   : > { %v7959_v28 = vpop.eup %7958  ;;  %v3609_v46 = vmul.f32 %v7957_v9, %v9515_v15 }
 0x9d2   : > { %7255 = vmatmul.mubr.bf16.vlgmr.msra.gmra.mrb[112].mxu0 %v3611_v48  ;;  %v3616_v10 = vpack.c.bf16 %v3607_v56, %v3606_v23  ;;  %v3608_v36 = vmul.f32 %v7959_v28, %v9512_v43 }
 0x9d3   : > { %7258 = vmatprep.mubr.bf16.mxu0 %v3612_v27  ;;  %7271 = vmatpush3.bf16.msra.mxu0 %v7684_v47 }
 0x9d4   : > { %7272 = vmatprep.subr.bf16.mxu0 %v7685_v18  ;;  %v3617_v54 = vpack.c.bf16 %v3609_v46, %v3608_v36 }
 0x9d7   : > { %7273 = vmatpush3.bf16.msra.mxu0 %v7685_v18 }
 0x9d8   : > { %7322 = vmatprep.subr.bf16.mxu0 %v7686_v60 }
 0x9da   : > { %7259 = vmatmul.mubr.bf16.gmra.mrb[116].mxu0 %v3613_v29  ;;  %v7692_v29 = vld [vmem:[%s10344_s6 + $0xf0] sm:$0xff]  }
 0x9db   : > { %7262 = vmatprep.mubr.bf16.mxu0 %v3614_v35 }
 0x9e2   : > { %7263 = vmatmul.mubr.bf16.gmra.mrb[120].mxu0 %v3615_v4 }
 0x9e3   : > { %7266 = vmatprep.mubr.bf16.mxu0 %v3616_v10 }
 0x9ea   : > { %7267 = vmatmul.mubr.bf16.gmra.mrb[124].mxu0 %v3617_v54 }
 0xaa5   : > { %v7256_v44 = vpop.f32.mrb[112].mxu0 }
 0xaa6   : > { %v3652_v49 = vpop.f32.mrb[113].mxu0 }
 0xaa7   : > { %v7257_v20 = vpop.f32.mrb[114].mxu0 }
 0xaa8   : > { %v3716_v61 = vpack.c.bf16 %v7257_v20, %v7256_v44  ;;  %v3655_v47 = vpop.f32.mrb[115].mxu0 }
 0xaa9   : > { %v3715_v37 = vpack.c.bf16 %v3655_v47, %v3652_v49 }
 0xaab   : > { %7274 = vmatprep.mubr.msk.bf16.mxu0 %vm1221_vm0, %v3715_v37 }
 0xaac   : > { %7275 = vmatmul.mubr.msk.bf16.vlgmr.msra.gmra.mrb[80].mxu0 %vm1221_vm0, %v3716_v61 }
 0xaad   : > { %v7260_v43 = vpop.f32.mrb[116].mxu0  ;;  %7323 = vmatpush3.bf16.msra.mxu0 %v7686_v60 }
 0xaae   : > { %v3668_v15 = vpop.f32.mrb[117].mxu0  ;;  %7324 = vmatprep.subr.bf16.mxu0 %v7687_v58 }
 0xaaf   : > { %v7261_v11 = vpop.f32.mrb[118].mxu0 }
 0xab0   : > { %v3718_v55 = vpack.c.bf16 %v7261_v11, %v7260_v43  ;;  %v3671_v48 = vpop.f32.mrb[119].mxu0 }
 0xab1   : > { %v3717_v18 = vpack.c.bf16 %v3671_v48, %v3668_v15  ;;  %7325 = vmatpush3.bf16.msra.mxu0 %v7687_v58  ;;  %v10401_v48 = vpack.c.bf16 %v9417_v0, %v9411_v39  ;;  %v10407_v0 = vld [vmem:[#allocation14_spill] sm:$0xff] }
 0xab2   : > { %7326 = vmatprep.subr.bf16.mxu0 %v7688_v25 }
 0xab3   : > { %7278 = vmatprep.mubr.msk.bf16.mxu0 %vm1221_vm0, %v3717_v18  ;;  %v10402_v18 = vpack.c.bf16 %v9413_v1, %v9409_v24 }
 0xab4   : > { %7279 = vmatmul.mubr.msk.bf16.gmra.mrb[84].mxu0 %vm1221_vm0, %v3718_v55  ;;  %v10400_v55 = vpack.c.bf16 %v9398_v51, %v9394_v26  ;;  %v10404_v26 = vpack.c.bf16 %v9425_v40, %v9421_v7  ;;  %v10405_v51 = vld [vmem:[#allocation13_spill] sm:$0xff] }
 0xab5   : > { %v7264_v27 = vpop.f32.mrb[120].mxu0  ;;  %7327 = vmatpush3.bf16.msra.mxu0 %v7688_v25  ;;  %v10406_v39 = vpack.c.bf16 %v9444_v62, %v10405_v51 }
 0xab6   : > { %v3684_v52 = vpop.f32.mrb[121].mxu0  ;;  %7328 = vmatprep.subr.bf16.mxu0 %v7689_v57 }
 0xab7   : > { %v7265_v22 = vpop.f32.mrb[122].mxu0 }
 0xab8   : > { %v3720_v6 = vpack.c.bf16 %v7265_v22, %v7264_v27  ;;  %v3687_v5 = vpop.f32.mrb[123].mxu0  ;;  %v10408_v27 = vld [vmem:[#allocation12_spill] sm:$0xff] }
 0xab9   : > { %v3719_v53 = vpack.c.bf16 %v3687_v5, %v3684_v52  ;;  %7329 = vmatpush3.bf16.msra.mxu0 %v7689_v57  ;;  %v10403_v57 = vpack.c.bf16 %v9432_v3, %v9423_v30  ;;  %v10409_v24 = vpack.c.bf16 %v10407_v0, %v10408_v27 }
 0xaba   : > { %7330 = vmatprep.subr.bf16.mxu0 %v7690_v50 }
 0xabb   : > { %7282 = vmatprep.mubr.msk.bf16.mxu0 %vm1221_vm0, %v3719_v53 }
 0xabc   : > { %7283 = vmatmul.mubr.msk.bf16.gmra.mrb[88].mxu0 %vm1221_vm0, %v3720_v6 }
 0xabd   : > { %v7268_v63 = vpop.f32.mrb[124].mxu0  ;;  %7331 = vmatpush3.bf16.msra.mxu0 %v7690_v50 }
 0xabe   : > { %v3700_v2 = vpop.f32.mrb[125].mxu0  ;;  %7332 = vmatprep.subr.bf16.mxu0 %v7691_v41 }
 0xabf   : > { %v7269_v38 = vpop.f32.mrb[126].mxu0 }
 0xac0   : > { %v3722_v35 = vpack.c.bf16 %v7269_v38, %v7268_v63  ;;  %v3703_v19 = vpop.f32.mrb[127].mxu0 }
 0xac1   : > { %v3721_v8 = vpack.c.bf16 %v3703_v19, %v3700_v2  ;;  %7333 = vmatpush3.bf16.msra.mxu0 %v7691_v41 }
 0xac2   : > { %7334 = vmatprep.subr.bf16.mxu0 %v7692_v29 }
 0xac3   : > { %7286 = vmatprep.mubr.msk.bf16.mxu0 %vm1221_vm0, %v3721_v8 }
 0xac4   : > { %7287 = vmatmul.mubr.msk.bf16.gmra.mrb[92].mxu0 %vm1221_vm0, %v3722_v35 }
 0xac5   : > { %7335 = vmatpush3.bf16.msra.mxu0 %v7692_v29  ;;  %7338 = vmatprep.mubr.bf16.mxu0 %v8520_v42 }
 0xac6   : > { %7336 = vmatprep.subr.bf16.mxu0 %v7693_v12 }
 0xac9   : > { %7337 = vmatpush3.bf16.msra.mxu0 %v7693_v12 }
 0xacc   : > { %7339 = vmatmul.mubr.bf16.vlgmr.msra.gmra.mrb[128].mxu0 %v8530_v59 }
 0xacd   : > { %7342 = vmatprep.mubr.bf16.mxu0 %v8544_v17 }
 0xad4   : > { %7343 = vmatmul.mubr.bf16.gmra.mrb[132].mxu0 %v8557_v14 }
 0xad5   : > { %7346 = vmatprep.mubr.bf16.mxu0 %v8570_v34 }
 0xadc   : > { %7347 = vmatmul.mubr.bf16.gmra.mrb[136].mxu0 %v8583_v45 }
 0xadd   : > { %7350 = vmatprep.mubr.bf16.mxu0 %v8595_v13 }
 0xae4   : > { %7351 = vmatmul.mubr.bf16.gmra.mrb[140].mxu0 %v8605_v21 }
 0xae5   : > { %7402 = vmatprep.mubr.msk.bf16.mxu0 %vm1221_vm0, %v10399_v32 }
 0xb9f   : > { %v7340_v42 = vpop.f32.mrb[128].mxu0 }
 0xba0   : > { %v4146_v56 = vpop.f32.mrb[129].mxu0 }
 0xba1   : > { %v7341_v59 = vpop.f32.mrb[130].mxu0 }
 0xba2   : > { %v4210_v33 = vpack.c.bf16 %v7341_v59, %v7340_v42  ;;  %v4149_v17 = vpop.f32.mrb[131].mxu0 }
 0xba3   : > { %v4209_v23 = vpack.c.bf16 %v4149_v17, %v4146_v56 }
 0xba4   : > { %v4415_v4 = vsel %vm1221_vm0, %v4210_v33, 0 }
 0xba5   : > { %v4412_v14 = vsel %vm1221_vm0, %v4209_v23, 0  ;;  %7542 = vmatprep.subr.msk.bf16.mxu0 %vm1221_vm0, %v4209_v23 }
 0xba6   : > { %7387 = vmatpush3.bf16.xpose.msra.mxu0 %v4412_v14 }
 0xba7   : > { %v7344_v34 = vpop.f32.mrb[132].mxu0  ;;  %7543 = vmatprep.subr.msk.bf16.mxu0 %vm1221_vm0, %v4210_v33 }
 0xba8   : > { %v4162_v45 = vpop.f32.mrb[133].mxu0 }
 0xba9   : > { %v7345_v13 = vpop.f32.mrb[134].mxu0 }
 0xbaa   : > { %v4212_v21 = vpack.c.bf16 %v7345_v13, %v7344_v34  ;;  %v4165_v16 = vpop.f32.mrb[135].mxu0 }
 0xbab   : > { %v4211_v31 = vpack.c.bf16 %v4165_v16, %v4162_v45 }
 0xbac   : > { %v4421_v58 = vsel %vm1221_vm0, %v4212_v21, 0 }
 0xbad   : > { %v4418_v60 = vsel %vm1221_vm0, %v4211_v31, 0 }
 0xbae   : > { %7389 = vmatpush3.bf16.xpose.msra.mxu0 %v4415_v4 }
 0xbaf   : > { %v7348_v9 = vpop.f32.mrb[136].mxu0  ;;  %7544 = vmatprep.subr.msk.bf16.mxu0 %vm1221_vm0, %v4211_v31 }
 0xbb0   : > { %v4178_v10 = vpop.f32.mrb[137].mxu0 }
 0xbb1   : > { %v7349_v28 = vpop.f32.mrb[138].mxu0 }
 0xbb2   : > { %v4214_v46 = vpack.c.bf16 %v7349_v28, %v7348_v9  ;;  %v4181_v36 = vpop.f32.mrb[139].mxu0 }
 0xbb3   : > { %v4213_v54 = vpack.c.bf16 %v4181_v36, %v4178_v10 }
 0xbb4   : > { %v4427_v15 = vsel %vm1221_vm0, %v4214_v46, 0 }
 0xbb5   : > { %v4424_v43 = vsel %vm1221_vm0, %v4213_v54, 0 }
 0xbb6   : > { %7391 = vmatpush3.bf16.xpose.msra.mxu0 %v4418_v60 }
 0xbb7   : > { %v7352_v44 = vpop.f32.mrb[140].mxu0  ;;  %7545 = vmatprep.subr.msk.bf16.mxu0 %vm1221_vm0, %v4212_v21 }
 0xbb8   : > { %v4194_v49 = vpop.f32.mrb[141].mxu0 }
 0xbb9   : > { %v7353_v20 = vpop.f32.mrb[142].mxu0 }
 0xbba   : > { %v4216_v61 = vpack.c.bf16 %v7353_v20, %v7352_v44  ;;  %v4197_v47 = vpop.f32.mrb[143].mxu0 }
 0xbbb   : > { %v4215_v37 = vpack.c.bf16 %v4197_v47, %v4194_v49 }
 0xbbc   : > { %v4433_v11 = vsel %vm1221_vm0, %v4216_v61, 0 }
 0xbbd   : > { %v4430_v25 = vsel %vm1221_vm0, %v4215_v37, 0 }
 0xbbe   : > { %7393 = vmatpush3.bf16.xpose.msra.mxu0 %v4421_v58 }
 0xbbf   : > { %7546 = vmatprep.subr.msk.bf16.mxu0 %vm1221_vm0, %v4213_v54 }
 0xbc6   : > { %7395 = vmatpush3.bf16.xpose.msra.mxu0 %v4424_v43 }
 0xbc7   : > { %7547 = vmatprep.subr.msk.bf16.mxu0 %vm1221_vm0, %v4214_v46 }
 0xbce   : > { %7397 = vmatpush3.bf16.xpose.msra.mxu0 %v4427_v15 }
 0xbcf   : > { %7548 = vmatprep.subr.msk.bf16.mxu0 %vm1221_vm0, %v4215_v37 }
 0xbd6   : > { %7399 = vmatpush3.bf16.xpose.msra.mxu0 %v4430_v25 }
 0xbd7   : > { %7549 = vmatprep.subr.msk.bf16.mxu0 %vm1221_vm0, %v4216_v61 }
 0xbde   : > { %7401 = vmatpush3.bf16.xpose.msra.mxu0 %v4433_v11 }
 0xbe5   : > { %7403 = vmatmul.mubr.msk.bf16.vlgmr.msra.gmra.mrb[144].mxu0 %vm1221_vm0, %v10400_v55 }
 0xbe6   : > { %7406 = vmatprep.mubr.msk.bf16.mxu0 %vm1221_vm0, %v10401_v48 }
 0xbed   : > { %7407 = vmatmul.mubr.msk.bf16.gmra.mrb[148].mxu0 %vm1221_vm0, %v10402_v18 }
 0xbee   : > { %7410 = vmatprep.mubr.msk.bf16.mxu0 %vm1221_vm0, %v10403_v57 }
 0xbf5   : > { %7411 = vmatmul.mubr.msk.bf16.gmra.mrb[152].mxu0 %vm1221_vm0, %v10404_v26 }
 0xbf6   : > { %7414 = vmatprep.mubr.msk.bf16.mxu0 %vm1221_vm0, %v10406_v39 }
 0xbfd   : > { %7415 = vmatmul.mubr.msk.bf16.gmra.mrb[156].mxu0 %vm1221_vm0, %v10409_v24 }
 0xcb8   : > { %v7404_v1 = vpop.f32.mrb[144].mxu0 }
 0xcb9   : > { %v4469_v52 = vpop.f32.mrb[145].mxu0 }
 0xcba   : > { %4532 = vmax.xlane.f32.xlu0 %v4469_v52  ;;  %v7405_v30 = vpop.f32.mrb[146].mxu0 }
 0xcbb   : > { %v4472_v3 = vpop.f32.mrb[147].mxu0 }
 0xcbc   : > { %4534 = vmax.xlane.f32.xlu1 %v4472_v3 }
 0xcbe   : > { %4536 = vmax.xlane.f32.xlu0 %v7404_v1 }
 0xcc0   : > { %4538 = vmax.xlane.f32.xlu1 %v7405_v30  ;;  %v7408_v7 = vpop.f32.mrb[148].mxu0 }
 0xcc1   : > { %v4485_v40 = vpop.f32.mrb[149].mxu0 }
 0xcc2   : > { %4540 = vmax.xlane.f32.xlu0 %v4485_v40  ;;  %v7409_v50 = vpop.f32.mrb[150].mxu0 }
 0xcc3   : > { %v4488_v62 = vpop.f32.mrb[151].mxu0 }
 0xcc4   : > { %4542 = vmax.xlane.f32.xlu1 %v4488_v62 }
 0xcc6   : > { %4544 = vmax.xlane.f32.xlu0 %v7408_v7 }
 0xcc8   : > { %4546 = vmax.xlane.f32.xlu1 %v7409_v50  ;;  %v9704_v22 = vpop.f32.mrb[152].mxu0 }
 0xcc9   : > { %v4501_v6 = vpop.f32.mrb[153].mxu0 }
 0xcca   : > { %4548 = vmax.xlane.f32.xlu0 %v4501_v6  ;;  %v9706_v5 = vpop.f32.mrb[154].mxu0 }
 0xccb   : > { %v4504_v53 = vpop.f32.mrb[155].mxu0 }
 0xccc   : > { %4550 = vmax.xlane.f32.xlu1 %v4504_v53 }
 0xcce   : > { %4552 = vmax.xlane.f32.xlu0 %v9704_v22 }
 0xcd0   : > { %4554 = vmax.xlane.f32.xlu1 %v9706_v5  ;;  %v9710_v41 = vpop.f32.mrb[156].mxu0 }
 0xcd1   : > { %v9712_v63 = vpop.f32.mrb[157].mxu0 }
 0xcd2   : > { %4556 = vmax.xlane.f32.xlu0 %v9712_v63  ;;  %v9715_v2 = vpop.f32.mrb[158].mxu0 }
 0xcd3   : > { %v9717_v29 = vpop.f32.mrb[159].mxu0 }
 0xcd4   : > { %4558 = vmax.xlane.f32.xlu1 %v9717_v29 }
 0xcd6   : > { %4560 = vmax.xlane.f32.xlu0 %v9710_v41 }
 0xcd8   : > { %4562 = vmax.xlane.f32.xlu1 %v9715_v2 }
 0xd47   : > { %v4533_v38 = vpop.xlane.xlu0 %4532 }
 0xd48   : > { %v4564_v35 = vsub.f32 %v4469_v52, %v4533_v38  ;;  %v7694_v38 = vld [vmem:[%s10346_s8 + $0x30] sm:$0xff]  }
 0xd49   : > { %v4535_v19 = vpop.xlane.xlu1 %4534  ;;  %7450 = vmatprep.subr.bf16.mxu0 %v7694_v38 }
 0xd4a   : > { %v4580_v8 = vmul.f32 1.442695, %v4564_v35  ;;  %v4565_v12 = vsub.f32 %v4472_v3, %v4535_v19  ;;  %v7695_v35 = vld [vmem:[%s10346_s8 + $0x38] sm:$0xff]   ;;  %7451 = vmatpush3.bf16.msra.mxu0 %v7694_v38 }
 0xd4b   : > { %v4537_v32 = vpop.xlane.xlu0 %4536  ;;  %7452 = vmatprep.subr.bf16.mxu0 %v7695_v35 }
 0xd4c   : > { %7960 = vpow2.f32 %v4580_v8  ;;  %v4582_v42 = vmul.f32 1.442695, %v4565_v12  ;;  %v4566_v56 = vsub.f32 %v7404_v1, %v4537_v32 }
 0xd4d   : > { %v4539_v59 = vpop.xlane.xlu1 %4538 }
 0xd4e   : > { %7962 = vpow2.f32 %v4582_v42  ;;  %v4584_v33 = vmul.f32 1.442695, %v4566_v56  ;;  %v4567_v17 = vsub.f32 %v7405_v30, %v4539_v59  ;;  %7453 = vmatpush3.bf16.msra.mxu0 %v7695_v35 }
 0xd4f   : > { %v4541_v23 = vpop.xlane.xlu0 %4540 }
 0xd50   : > { %7964 = vpow2.f32 %v4584_v33  ;;  %v4586_v14 = vmul.f32 1.442695, %v4567_v17  ;;  %v4568_v34 = vsub.f32 %v4485_v40, %v4541_v23 }
 0xd51   : > { %v4543_v45 = vpop.xlane.xlu1 %4542 }
 0xd52   : > { %7966 = vpow2.f32 %v4586_v14  ;;  %v4588_v13 = vmul.f32 1.442695, %v4568_v34  ;;  %v4569_v21 = vsub.f32 %v4488_v62, %v4543_v45 }
 0xd53   : > { %v4545_v16 = vpop.xlane.xlu0 %4544 }
 0xd54   : > { %7968 = vpow2.f32 %v4588_v13  ;;  %v4590_v31 = vmul.f32 1.442695, %v4569_v21  ;;  %v4570_v4 = vsub.f32 %v7408_v7, %v4545_v16 }
 0xd55   : > { %v4547_v9 = vpop.xlane.xlu1 %4546 }
 0xd56   : > { %v9722_v10 = vpop.eup %7960  ;;  %7970 = vpow2.f32 %v4590_v31  ;;  %v4592_v28 = vmul.f32 1.442695, %v4570_v4  ;;  %v4571_v46 = vsub.f32 %v7409_v50, %v4547_v9 }
 0xd57   : > { %v4549_v36 = vpop.xlane.xlu0 %4548  ;;  %4612 = vadd.xlane.f32.xlu0 %v9722_v10 }
 0xd58   : > { %v9725_v54 = vpop.eup %7962  ;;  %7972 = vpow2.f32 %v4592_v28  ;;  %v4594_v60 = vmul.f32 1.442695, %v4571_v46  ;;  %v4572_v44 = vsub.f32 %v4501_v6, %v4549_v36 }
 0xd59   : > { %v4551_v49 = vpop.xlane.xlu1 %4550  ;;  %4614 = vadd.xlane.f32.xlu1 %v9725_v54 }
 0xd5a   : > { %v9728_v20 = vpop.eup %7964  ;;  %7974 = vpow2.f32 %v4594_v60  ;;  %v4596_v61 = vmul.f32 1.442695, %v4572_v44  ;;  %v4573_v47 = vsub.f32 %v4504_v53, %v4551_v49 }
 0xd5b   : > { %v4553_v37 = vpop.xlane.xlu0 %4552  ;;  %4616 = vadd.xlane.f32.xlu0 %v9728_v20 }
 0xd5c   : > { %v9731_v58 = vpop.eup %7966  ;;  %7976 = vpow2.f32 %v4596_v61  ;;  %v4598_v43 = vmul.f32 1.442695, %v4573_v47  ;;  %v4574_v15 = vsub.f32 %v9704_v22, %v4553_v37 }
 0xd5d   : > { %v4555_v25 = vpop.xlane.xlu1 %4554  ;;  %4618 = vadd.xlane.f32.xlu1 %v9731_v58 }
 0xd5e   : > { %v9735_v11 = vpop.eup %7968  ;;  %7978 = vpow2.f32 %v4598_v43  ;;  %v4600_v55 = vmul.f32 1.442695, %v4574_v15  ;;  %v4575_v48 = vsub.f32 %v9706_v5, %v4555_v25 }
 0xd5f   : > { %4620 = vadd.xlane.f32.xlu0 %v9735_v11  ;;  %v4557_v18 = vpop.xlane.xlu0 %4556 }
 0xd60   : > { %v9739_v57 = vpop.eup %7970  ;;  %7980 = vpow2.f32 %v4600_v55  ;;  %v4602_v26 = vmul.f32 1.442695, %v4575_v48  ;;  %v4576_v51 = vsub.f32 %v9712_v63, %v4557_v18 }
 0xd61   : > { %4622 = vadd.xlane.f32.xlu1 %v9739_v57  ;;  %v4559_v39 = vpop.xlane.xlu1 %4558 }
 0xd62   : > { %v9743_v0 = vpop.eup %7972  ;;  %7982 = vpow2.f32 %v4602_v26  ;;  %v4604_v27 = vmul.f32 1.442695, %v4576_v51  ;;  %v4577_v24 = vsub.f32 %v9717_v29, %v4559_v39 }
 0xd63   : > { %4624 = vadd.xlane.f32.xlu0 %v9743_v0  ;;  %v4561_v1 = vpop.xlane.xlu0 %4560 }
 0xd64   : > { %v9747_v52 = vpop.eup %7974  ;;  %7984 = vpow2.f32 %v4604_v27  ;;  %v4606_v30 = vmul.f32 1.442695, %v4577_v24  ;;  %v4578_v3 = vsub.f32 %v9710_v41, %v4561_v1 }
 0xd65   : > { %4626 = vadd.xlane.f32.xlu1 %v9747_v52  ;;  %v4563_v7 = vpop.xlane.xlu1 %4562 }
 0xd66   : > { %v9751_v40 = vpop.eup %7976  ;;  %7986 = vpow2.f32 %v4606_v30  ;;  %v4608_v50 = vmul.f32 1.442695, %v4578_v3  ;;  %v4579_v62 = vsub.f32 %v9715_v2, %v4563_v7 }
 0xd67   : > { %4628 = vadd.xlane.f32.xlu0 %v9751_v40 }
 0xd68   : > { %v9755_v22 = vpop.eup %7978  ;;  %7988 = vpow2.f32 %v4608_v50  ;;  %v4610_v6 = vmul.f32 1.442695, %v4579_v62 }
 0xd69   : > { %4630 = vadd.xlane.f32.xlu1 %v9755_v22 }
 0xd6a   : > { %v9758_v5 = vpop.eup %7980  ;;  %7990 = vpow2.f32 %v4610_v6 }
 0xd6b   : > { %4632 = vadd.xlane.f32.xlu0 %v9758_v5 }
 0xd6c   : > { %v9761_v53 = vpop.eup %7982 }
 0xd6d   : > { %4634 = vadd.xlane.f32.xlu1 %v9761_v53 }
 0xd6e   : > { %v9764_v41 = vpop.eup %7984 }
 0xd6f   : > { %4636 = vadd.xlane.f32.xlu0 %v9764_v41 }
 0xd70   : > { %v9767_v63 = vpop.eup %7986 }
 0xd71   : > { %4638 = vadd.xlane.f32.xlu1 %v9767_v63 }
 0xd72   : > { %v9770_v2 = vpop.eup %7988 }
 0xd73   : > { %4640 = vadd.xlane.f32.xlu0 %v9770_v2 }
 0xd74   : > { %v9773_v29 = vpop.eup %7990 }
 0xd75   : > { %4642 = vadd.xlane.f32.xlu1 %v9773_v29 }
 0xde4   : > { %v4613_v19 = vpop.xlane.xlu0 %4612 }
 0xde5   : > { %7992 = vrcp.f32 %v4613_v19 }
 0xde6   : > { %v4615_v8 = vpop.xlane.xlu1 %4614 }
 0xde7   : > { %7994 = vrcp.f32 %v4615_v8 }
 0xde8   : > { %v4617_v12 = vpop.xlane.xlu0 %4616 }
 0xde9   : > { %7996 = vrcp.f32 %v4617_v12 }
 0xdea   : > { %v4619_v32 = vpop.xlane.xlu1 %4618 }
 0xdeb   : > { %7998 = vrcp.f32 %v4619_v32 }
 0xdec   : > { %v4621_v42 = vpop.xlane.xlu0 %4620 }
 0xded   : > { %8000 = vrcp.f32 %v4621_v42 }
 0xdee   : > { %v4623_v56 = vpop.xlane.xlu1 %4622 }
 0xdef   : > { %v7993_v59 = vpop.eup %7992  ;;  %8002 = vrcp.f32 %v4623_v56 }
 0xdf0   : > { %v4625_v33 = vpop.xlane.xlu0 %4624  ;;  %v4660_v14 = vmul.f32 %v7993_v59, %v9722_v10 }
 0xdf1   : > { %v7995_v17 = vpop.eup %7994  ;;  %8004 = vrcp.f32 %v4625_v33 }
 0xdf2   : > { %v4627_v23 = vpop.xlane.xlu1 %4626  ;;  %v4661_v34 = vmul.f32 %v7995_v17, %v9725_v54 }
 0xdf3   : > { %v7997_v45 = vpop.eup %7996  ;;  %8006 = vrcp.f32 %v4627_v23 }
 0xdf4   : > { %v4629_v13 = vpop.xlane.xlu0 %4628  ;;  %v4676_v21 = vpack.c.bf16 %v4661_v34, %v4660_v14  ;;  %v4662_v31 = vmul.f32 %v7997_v45, %v9728_v20 }
 0xdf5   : > { %v7999_v16 = vpop.eup %7998  ;;  %8008 = vrcp.f32 %v4629_v13 }
 0xdf6   : > { %v4663_v4 = vmul.f32 %v7999_v16, %v9731_v58  ;;  %7434 = vmatprep.mubr.bf16.mxu1 %v4676_v21  ;;  %v4631_v9 = vpop.xlane.xlu1 %4630 }
 0xdf7   : > { %v8001_v28 = vpop.eup %8000  ;;  %8010 = vrcp.f32 %v4631_v9 }
 0xdf8   : > { %v4633_v46 = vpop.xlane.xlu0 %4632  ;;  %v4677_v36 = vpack.c.bf16 %v4663_v4, %v4662_v31  ;;  %v4664_v54 = vmul.f32 %v8001_v28, %v9735_v11  ;;  %v9809_v4 = vld [vmem:[%s10347_s9] ss:$0 sm:$0xff] }
 0xdf9   : > { %v8003_v60 = vpop.eup %8002  ;;  %8012 = vrcp.f32 %v4633_v46  ;;  %v8120_v28 = vld [vmem:[%s8332_s18] sm:$0xff] }
 0xdfa   : > { %7435 = vmatmul.mubr.bf16.vlgmr.msra.gmra.mrb[160].mxu1 %v4677_v36  ;;  %v4635_v10 = vpop.xlane.xlu1 %4634  ;;  %v4665_v44 = vmul.f32 %v8003_v60, %v9739_v57 }
 0xdfb   : > { %v8005_v49 = vpop.eup %8004  ;;  %8014 = vrcp.f32 %v4635_v10  ;;  %v8121_v10 = vld [vmem:[%s8332_s18 + $0x10] sm:$0xff] }
 0xdfc   : > { %v4637_v61 = vpop.xlane.xlu0 %4636  ;;  %v4678_v20 = vpack.c.bf16 %v4665_v44, %v4664_v54  ;;  %v4666_v58 = vmul.f32 %v8005_v49, %v9743_v0  ;;  %v8122_v49 = vld [vmem:[%s8332_s18 + $0x8] sm:$0xff] }
 0xdfd   : > { %v8007_v47 = vpop.eup %8006  ;;  %8016 = vrcp.f32 %v4637_v61 }
 0xdfe   : > { %7438 = vmatprep.mubr.bf16.mxu1 %v4678_v20  ;;  %v4639_v37 = vpop.xlane.xlu1 %4638  ;;  %v4667_v43 = vmul.f32 %v8007_v47, %v9747_v52  ;;  %v8123_v20 = vld [vmem:[%s8332_s18 + $0x18] sm:$0xff] }
 0xdff   : > { %v8009_v15 = vpop.eup %8008  ;;  %8018 = vrcp.f32 %v4639_v37 }
 0xe00   : > { %v4641_v25 = vpop.xlane.xlu0 %4640  ;;  %v4679_v55 = vpack.c.bf16 %v4667_v43, %v4666_v58  ;;  %v4668_v18 = vmul.f32 %v8009_v15, %v9751_v40 }
 0xe01   : > { %v8011_v48 = vpop.eup %8010  ;;  %8020 = vrcp.f32 %v4641_v25 }
 0xe02   : > { %7439 = vmatmul.mubr.bf16.gmra.mrb[164].mxu1 %v4679_v55  ;;  %v4643_v11 = vpop.xlane.xlu1 %4642  ;;  %v4669_v57 = vmul.f32 %v8011_v48, %v9755_v22  ;;  %v8124_v55 = vld [vmem:[%s8332_s18 + $0x20] sm:$0xff] }
 0xe03   : > { %v8013_v26 = vpop.eup %8012  ;;  %8022 = vrcp.f32 %v4643_v11 }
 0xe04   : > { %v4680_v51 = vpack.c.bf16 %v4669_v57, %v4668_v18  ;;  %v4670_v0 = vmul.f32 %v8013_v26, %v9758_v5  ;;  %v8125_v57 = vld [vmem:[%s8332_s18 + $0x30] sm:$0xff] }
 0xe05   : > { %v8015_v39 = vpop.eup %8014 }
 0xe06   : > { %7442 = vmatprep.mubr.bf16.mxu1 %v4680_v51  ;;  %v4671_v27 = vmul.f32 %v8015_v39, %v9761_v53  ;;  %v8126_v39 = vld [vmem:[%s8332_s18 + $0x28] sm:$0xff] }
 0xe07   : > { %v8017_v24 = vpop.eup %8016 }
 0xe08   : > { %v4681_v1 = vpack.c.bf16 %v4671_v27, %v4670_v0  ;;  %v4672_v30 = vmul.f32 %v8017_v24, %v9764_v41  ;;  %v8127_v27 = vld [vmem:[%s8332_s18 + $0x38] sm:$0xff] }
 0xe09   : > { %v8019_v52 = vpop.eup %8018 }
 0xe0a   : > { %7443 = vmatmul.mubr.bf16.gmra.mrb[168].mxu1 %v4681_v1  ;;  %v4673_v3 = vmul.f32 %v8019_v52, %v9767_v63 }
 0xe0b   : > { %v8021_v7 = vpop.eup %8020 }
 0xe0c   : > { %v4682_v40 = vpack.c.bf16 %v4673_v3, %v4672_v30  ;;  %v4674_v62 = vmul.f32 %v8021_v7, %v9770_v2 }
 0xe0d   : > { %v8023_v50 = vpop.eup %8022 }
 0xe0e   : > { %7446 = vmatprep.mubr.bf16.mxu1 %v4682_v40  ;;  %v4675_v22 = vmul.f32 %v8023_v50, %v9773_v29  ;;  %v8128_v40 = vld [vmem:[%s8332_s18 + $0x40] sm:$0xff] }
 0xe10   : > { %v4683_v6 = vpack.c.bf16 %v4675_v22, %v4674_v62 }
 0xe12   : > { %7447 = vmatmul.mubr.bf16.gmra.mrb[172].mxu1 %v4683_v6  ;;  %v8129_v6 = vld [vmem:[%s8332_s18 + $0x50] sm:$0xff] }
 0xecd   : > { %v7436_v5 = vpop.f32.mrb[160].mxu1 }
 0xece   : > { %v4718_v53 = vpop.f32.mrb[161].mxu1 }
 0xecf   : > { %v7437_v38 = vpop.f32.mrb[162].mxu1 }
 0xed0   : > { %v4782_v35 = vpack.c.bf16 %v7437_v38, %v7436_v5  ;;  %v4721_v19 = vpop.f32.mrb[163].mxu1  ;;  %v8130_v38 = vld [vmem:[%s8332_s18 + $0x48] sm:$0xff] }
 0xed1   : > { %v4781_v8 = vpack.c.bf16 %v4721_v19, %v4718_v53  ;;  %v8131_v19 = vld [vmem:[%s8332_s18 + $0x58] sm:$0xff] }
 0xed3   : > { %7454 = vmatprep.mubr.msk.bf16.mxu0 %vm1221_vm0, %v4781_v8 }
 0xed4   : > { %7455 = vmatmul.mubr.msk.bf16.vlgmr.msra.gmra.mrb[80].mxu0 %vm1221_vm0, %v4782_v35 }
 0xed5   : > { %v7440_v41 = vpop.f32.mrb[164].mxu1 }
 0xed6   : > { %v4734_v63 = vpop.f32.mrb[165].mxu1 }
 0xed7   : > { %v7441_v12 = vpop.f32.mrb[166].mxu1 }
 0xed8   : > { %v4784_v32 = vpack.c.bf16 %v7441_v12, %v7440_v41  ;;  %v4737_v42 = vpop.f32.mrb[167].mxu1 }
 0xed9   : > { %v4783_v2 = vpack.c.bf16 %v4737_v42, %v4734_v63 }
 0xedb   : > { %7458 = vmatprep.mubr.msk.bf16.mxu0 %vm1221_vm0, %v4783_v2  ;;  %v8132_v2 = vld [vmem:[%s8332_s18 + $0x60] sm:$0xff] }
 0xedc   : > { %7459 = vmatmul.mubr.msk.bf16.gmra.mrb[84].mxu0 %vm1221_vm0, %v4784_v32 }
 0xedd   : > { %v7444_v29 = vpop.f32.mrb[168].mxu1 }
 0xede   : > { %v4750_v56 = vpop.f32.mrb[169].mxu1 }
 0xedf   : > { %v7445_v59 = vpop.f32.mrb[170].mxu1 }
 0xee0   : > { %v4786_v33 = vpack.c.bf16 %v7445_v59, %v7444_v29  ;;  %v4753_v17 = vpop.f32.mrb[171].mxu1 }
 0xee1   : > { %v4785_v23 = vpack.c.bf16 %v4753_v17, %v4750_v56 }
 0xee3   : > { %7462 = vmatprep.mubr.msk.bf16.mxu0 %vm1221_vm0, %v4785_v23 }
 0xee4   : > { %7463 = vmatmul.mubr.msk.bf16.gmra.mrb[88].mxu0 %vm1221_vm0, %v4786_v33  ;;  %v8133_v33 = vld [vmem:[%s8332_s18 + $0x70] sm:$0xff] }
 0xee5   : > { %v7448_v14 = vpop.f32.mrb[172].mxu1 }
 0xee6   : > { %v4766_v34 = vpop.f32.mrb[173].mxu1 }
 0xee7   : > { %v7449_v45 = vpop.f32.mrb[174].mxu1 }
 0xee8   : > { %v4788_v13 = vpack.c.bf16 %v7449_v45, %v7448_v14  ;;  %v4769_v21 = vpop.f32.mrb[175].mxu1  ;;  %v8134_v14 = vld [vmem:[%s8332_s18 + $0x68] sm:$0xff]  ;;  %v8135_v45 = vld [vmem:[%s8332_s18 + $0x78] sm:$0xff]  ;;  %s5888_s18 = sshll.u32 %s10239_s26, 4  ;;  %s10290_s18 = int_to_ptr.vmem [resolvable:$true] %s5888_s18 }
 0xee9   : > { %v4787_v16 = vpack.c.bf16 %v4769_v21, %v4766_v34  ;;  %s8136_s21 = scalar_lea.vmem %s10290_s18, 2048  ;;  %p8143_p0 = scmp.lt.s32.totalorder %s10290_s18, %s8141_s25 }
 0xeea   : > { %p8137_p11 = scmp.ne.s32.totalorder %s10290_s18, %s8136_s21  ;;  %p8144_p1 = scmp.lt.s32.totalorder %s8142_s0, %s8136_s21 }
 0xeeb   : > { %7466 = vmatprep.mubr.msk.bf16.mxu0 %vm1221_vm0, %v4787_v16 }
 0xeec   : > { %7467 = vmatmul.mubr.msk.bf16.gmra.mrb[92].mxu0 %vm1221_vm0, %v4788_v13  ;;  %p8138_p12 = pnand %p8137_p11, %p8317_p5  ;;  %p8145_p2 = por %p8144_p1, %p8143_p0 }
 0xeee   : > { %p8139_p13 = pneg %p8138_p12 }
 0xef0   : > { %p8146_p3 = pnand %p8145_p2, %p8139_p13 }
 0xfa7   : > { %v7456_v31 = vpop.f32.mrb[80].mxu0 }
 0xfa8   : > { %v4864_v9 = vpop.f32.mrb[81].mxu0  ;;  %v4945_v54 = vadd.f32 %v8121_v10, %v7456_v31 }
 0xfa9   : > { %v4943_v46 = vadd.f32 %v8120_v28, %v4864_v9  ;;  %v7457_v36 = vpop.f32.mrb[82].mxu0  ;;  %v7696_v9 = vld [vmem:[%s10348_s10] ss:$8 sps:$4 sm:$0xff]   ;;  %v7698_v28 = vld [vmem:[%s10348_s10 + $0x4] ss:$8 sps:$4 sm:$0xff]  }
 0xfaa   : > { %v4867_v60 = vpop.f32.mrb[83].mxu0  ;;  %v4946_v47 = vadd.f32 %v8123_v20, %v7457_v36  ;;  %v9823_v58 = vadd.f32 %v9809_v4, %v4945_v54  ;;  %5320 = vmatprep.subr.bf16.mxu1 %v7698_v28 }
 0xfab   : > { %v9814_v44 = vadd.f32 %v9809_v4, %v4943_v46  ;;  %v4944_v61 = vadd.f32 %v8122_v49, %v4867_v60  ;;  %v7701_v46 = vld [vmem:[%s10348_s10 + $0x14] ss:$8 sps:$4 sm:$0xff]   ;;  %5321 = vmatpush1.bf16.msra.mxu1 %v7696_v9 }
 0xfac   : > { %v9827_v25 = vadd.f32 %v9809_v4, %v4946_v47  ;;  %5322 = vmatprep.subr.bf16.mxu1 %v7701_v46 }
 0xfad   : > { %v9819_v37 = vadd.f32 %v9809_v4, %v4944_v61  ;;  %4984 = vadd.xlane.f32.xlu0 %v9814_v44 }
 0xfaf   : > { %4986 = vadd.xlane.f32.xlu1 %v9819_v37  ;;  %v7460_v43 = vpop.f32.mrb[84].mxu0 }
 0xfb0   : > { %v4880_v15 = vpop.f32.mrb[85].mxu0  ;;  %v4949_v26 = vadd.f32 %v8125_v57, %v7460_v43 }
 0xfb1   : > { %v4947_v48 = vadd.f32 %v8124_v55, %v4880_v15  ;;  %4988 = vadd.xlane.f32.xlu0 %v9823_v58  ;;  %v7461_v11 = vpop.f32.mrb[86].mxu0 }
 0xfb2   : > { %v4883_v18 = vpop.f32.mrb[87].mxu0  ;;  %v4950_v24 = vadd.f32 %v8127_v27, %v7461_v11  ;;  %v9843_v52 = vadd.f32 %v9809_v4, %v4949_v26 }
 0xfb3   : > { %v9833_v51 = vadd.f32 %v9809_v4, %v4947_v48  ;;  %v4948_v0 = vadd.f32 %v8126_v39, %v4883_v18  ;;  %4990 = vadd.xlane.f32.xlu1 %v9827_v25 }
 0xfb4   : > { %v9847_v7 = vadd.f32 %v9809_v4, %v4950_v24 }
 0xfb5   : > { %v9839_v1 = vadd.f32 %v9809_v4, %v4948_v0  ;;  %4992 = vadd.xlane.f32.xlu0 %v9833_v51 }
 0xfb7   : > { %4994 = vadd.xlane.f32.xlu1 %v9839_v1  ;;  %v7464_v30 = vpop.f32.mrb[88].mxu0 }
 0xfb8   : > { %v4896_v3 = vpop.f32.mrb[89].mxu0  ;;  %v4953_v5 = vadd.f32 %v8129_v6, %v7464_v30 }
 0xfb9   : > { %v4951_v50 = vadd.f32 %v8128_v40, %v4896_v3  ;;  %4996 = vadd.xlane.f32.xlu0 %v9843_v52  ;;  %v7465_v62 = vpop.f32.mrb[90].mxu0 }
 0xfba   : > { %v4899_v22 = vpop.f32.mrb[91].mxu0  ;;  %v4954_v8 = vadd.f32 %v8131_v19, %v7465_v62  ;;  %v9863_v63 = vadd.f32 %v9809_v4, %v4953_v5 }
 0xfbb   : > { %v9853_v53 = vadd.f32 %v9809_v4, %v4951_v50  ;;  %v4952_v35 = vadd.f32 %v8130_v38, %v4899_v22  ;;  %4998 = vadd.xlane.f32.xlu1 %v9847_v7 }
 0xfbc   : > { %v9867_v42 = vadd.f32 %v9809_v4, %v4954_v8 }
 0xfbd   : > { %v9859_v41 = vadd.f32 %v9809_v4, %v4952_v35  ;;  %5000 = vadd.xlane.f32.xlu0 %v9853_v53 }
 0xfbf   : > { %5002 = vadd.xlane.f32.xlu1 %v9859_v41  ;;  %v7468_v12 = vpop.f32.mrb[92].mxu0 }
 0xfc0   : > { %v4912_v32 = vpop.f32.mrb[93].mxu0  ;;  %v4957_v17 = vadd.f32 %v8133_v33, %v7468_v12 }
 0xfc1   : > { %v4955_v29 = vadd.f32 %v8132_v2, %v4912_v32  ;;  %5004 = vadd.xlane.f32.xlu0 %v9863_v63  ;;  %v7469_v56 = vpop.f32.mrb[94].mxu0 }
 0xfc2   : > { %v4915_v59 = vpop.f32.mrb[95].mxu0  ;;  %v4958_v13 = vadd.f32 %v8135_v45, %v7469_v56  ;;  %v9883_v16 = vadd.f32 %v9809_v4, %v4957_v17 }
 0xfc3   : > { %v9873_v23 = vadd.f32 %v9809_v4, %v4955_v29  ;;  %v4956_v34 = vadd.f32 %v8134_v14, %v4915_v59  ;;  %5006 = vadd.xlane.f32.xlu1 %v9867_v42 }
 0xfc4   : > { %v9887_v31 = vadd.f32 %v9809_v4, %v4958_v13  ;;  %v7702_v13 = vld [vmem:[%s10348_s10 + $0x20] ss:$8 sps:$4 sm:$0xff]  }
 0xfc5   : > { %v9879_v21 = vadd.f32 %v9809_v4, %v4956_v34  ;;  %5008 = vadd.xlane.f32.xlu0 %v9873_v23  ;;  %v7699_v4 = vld [vmem:[%s10348_s10 + $0x10] ss:$8 sps:$4 sm:$0xff]   ;;  %v7704_v34 = vld [vmem:[%s10348_s10 + $0x24] ss:$8 sps:$4 sm:$0xff]  }
 0xfc6   : > { %5323 = vmatpush1.bf16.msra.mxu1 %v7699_v4 }
 0xfc7   : > { %5010 = vadd.xlane.f32.xlu1 %v9879_v21  ;;  %5324 = vmatprep.subr.bf16.mxu1 %v7704_v34  ;;  %v7722_v34 = vld [vmem:[%s10350_s12 + $0x48] sm:$0xff]  }
 0xfc9   : > { %5012 = vadd.xlane.f32.xlu0 %v9883_v16 }
 0xfca   : > { %5325 = vmatpush1.bf16.msra.mxu1 %v7702_v13 }
 0xfcb   : > { %5014 = vadd.xlane.f32.xlu1 %v9887_v31 }
0x103a   : > { %v4985_v36 = vpop.xlane.xlu0 %4984 }
0x103b   : > { %v5016_v60 = vmul.f32 0.0078125, %v4985_v36 }
0x103c   : > { %v4987_v10 = vpop.xlane.xlu1 %4986 }
0x103d   : > { %v9904_v54 = vsub.f32 %v9814_v44, %v5016_v60  ;;  %v5017_v49 = vmul.f32 0.0078125, %v4987_v10 }
0x103e   : > { %v4989_v61 = vpop.xlane.xlu0 %4988 }
0x103f   : > { %v9907_v20 = vsub.f32 %v9819_v37, %v5017_v49  ;;  %v5018_v47 = vmul.f32 0.0078125, %v4989_v61  ;;  %v5048_v43 = vmul.f32 %v9904_v54, %v9904_v54  ;;  %v7707_v49 = vld [vmem:[%s10348_s10 + $0x34] ss:$8 sps:$4 sm:$0xff]  }
0x1040   : > { %v4991_v15 = vpop.xlane.xlu1 %4990  ;;  %5326 = vmatprep.subr.bf16.mxu1 %v7707_v49 }
0x1041   : > { %v9912_v55 = vsub.f32 %v9823_v58, %v5018_v47  ;;  %v5019_v48 = vmul.f32 0.0078125, %v4991_v15  ;;  %5064 = vadd.xlane.f32.xlu0 %v5048_v43  ;;  %v5049_v11 = vmul.f32 %v9907_v20, %v9907_v20  ;;  %v7705_v47 = vld [vmem:[%s10348_s10 + $0x30] ss:$8 sps:$4 sm:$0xff]  }
0x1042   : > { %v4993_v18 = vpop.xlane.xlu0 %4992  ;;  %5327 = vmatpush1.bf16.msra.mxu1 %v7705_v47 }
0x1043   : > { %v9917_v57 = vsub.f32 %v9827_v25, %v5019_v48  ;;  %v5020_v26 = vmul.f32 0.0078125, %v4993_v18  ;;  %5066 = vadd.xlane.f32.xlu1 %v5049_v11  ;;  %v5050_v39 = vmul.f32 %v9912_v55, %v9912_v55 }
0x1044   : > { %v4995_v0 = vpop.xlane.xlu1 %4994 }
0x1045   : > { %v9922_v27 = vsub.f32 %v9833_v51, %v5020_v26  ;;  %v5021_v24 = vmul.f32 0.0078125, %v4995_v0  ;;  %5068 = vadd.xlane.f32.xlu0 %v5050_v39  ;;  %v5051_v30 = vmul.f32 %v9917_v57, %v9917_v57  ;;  %v7710_v0 = vld [vmem:[%s10348_s10 + $0x44] ss:$8 sps:$4 sm:$0xff]  }
0x1046   : > { %v4997_v3 = vpop.xlane.xlu0 %4996  ;;  %5328 = vmatprep.subr.bf16.mxu1 %v7710_v0 }
0x1047   : > { %v9927_v40 = vsub.f32 %v9839_v1, %v5021_v24  ;;  %v5022_v50 = vmul.f32 0.0078125, %v4997_v3  ;;  %5070 = vadd.xlane.f32.xlu1 %v5051_v30  ;;  %v5052_v62 = vmul.f32 %v9922_v27, %v9922_v27  ;;  %v7708_v30 = vld [vmem:[%s10348_s10 + $0x40] ss:$8 sps:$4 sm:$0xff]  }
0x1048   : > { %v4999_v22 = vpop.xlane.xlu1 %4998  ;;  %5329 = vmatpush1.bf16.msra.mxu1 %v7708_v30 }
0x1049   : > { %v9932_v6 = vsub.f32 %v9843_v52, %v5022_v50  ;;  %v5023_v5 = vmul.f32 0.0078125, %v4999_v22  ;;  %5072 = vadd.xlane.f32.xlu0 %v5052_v62  ;;  %v5053_v38 = vmul.f32 %v9927_v40, %v9927_v40 }
0x104a   : > { %v5001_v35 = vpop.xlane.xlu0 %5000 }
0x104b   : > { %v9937_v19 = vsub.f32 %v9847_v7, %v5023_v5  ;;  %v5024_v8 = vmul.f32 0.0078125, %v5001_v35  ;;  %5074 = vadd.xlane.f32.xlu1 %v5053_v38  ;;  %v5054_v12 = vmul.f32 %v9932_v6, %v9932_v6  ;;  %v7713_v38 = vld [vmem:[%s10348_s10 + $0x54] ss:$8 sps:$4 sm:$0xff]   ;;  %v7711_v35 = vld [vmem:[%s10348_s10 + $0x50] ss:$8 sps:$4 sm:$0xff]  }
0x104c   : > { %v5003_v32 = vpop.xlane.xlu1 %5002  ;;  %5330 = vmatprep.subr.bf16.mxu1 %v7713_v38 }
0x104d   : > { %v9942_v2 = vsub.f32 %v9853_v53, %v5024_v8  ;;  %v5025_v29 = vmul.f32 0.0078125, %v5003_v32  ;;  %5076 = vadd.xlane.f32.xlu0 %v5054_v12  ;;  %v5055_v56 = vmul.f32 %v9937_v19, %v9937_v19  ;;  %5331 = vmatpush1.bf16.msra.mxu1 %v7711_v35  ;;  %v7716_v12 = vld [vmem:[%s10348_s10 + $0x64] ss:$8 sps:$4 sm:$0xff]   ;;  %v7714_v32 = vld [vmem:[%s10348_s10 + $0x60] ss:$8 sps:$4 sm:$0xff]  }
0x104e   : > { %v5005_v59 = vpop.xlane.xlu0 %5004  ;;  %5332 = vmatprep.subr.bf16.mxu1 %v7716_v12  ;;  %v10035_v35 = vld [vmem:[%s10341_s3] ss:$0 sm:$0xff] }
0x104f   : > { %v9947_v33 = vsub.f32 %v9859_v41, %v5025_v29  ;;  %v5026_v17 = vmul.f32 0.0078125, %v5005_v59  ;;  %5078 = vadd.xlane.f32.xlu1 %v5055_v56  ;;  %v5056_v14 = vmul.f32 %v9942_v2, %v9942_v2  ;;  %v7719_v29 = vld [vmem:[%s10348_s10 + $0x74] ss:$8 sps:$4 sm:$0xff]   ;;  %v7717_v56 = vld [vmem:[%s10348_s10 + $0x70] ss:$8 sps:$4 sm:$0xff]   ;;  %v8200_v59 = vmov 0  }
0x1050   : > { %v5007_v45 = vpop.xlane.xlu1 %5006  ;;  %5352 = vmatprep.mubr.bf16.mxu1 %v8200_v59 }
0x1051   : > { %v9958_v9 = vsub.f32 %v9863_v63, %v5026_v17  ;;  %v5027_v28 = vmul.f32 0.0078125, %v5007_v45  ;;  %5080 = vadd.xlane.f32.xlu0 %v5056_v14  ;;  %v5057_v46 = vmul.f32 %v9947_v33, %v9947_v33  ;;  %5333 = vmatpush1.bf16.msra.mxu1 %v7714_v32  ;;  %v7720_v17 = vld [vmem:[%s10350_s12 + $0x40] sm:$0xff]   ;;  %v7723_v45 = vld [vmem:[%s10350_s12 + $0x8] sm:$0xff]  }
0x1052   : > { %v5009_v4 = vpop.xlane.xlu0 %5008  ;;  %5334 = vmatprep.subr.bf16.mxu1 %v7719_v29  ;;  %v7721_v14 = vld [vmem:[%s10350_s12] sm:$0xff]   ;;  %6686 = vmatprep.subr.bf16.mxu0 %v7720_v17 }
0x1053   : > { %v9963_v36 = vsub.f32 %v9867_v42, %v5027_v28  ;;  %v5028_v60 = vmul.f32 0.0078125, %v5009_v4  ;;  %5082 = vadd.xlane.f32.xlu1 %v5057_v46  ;;  %v5058_v10 = vmul.f32 %v9958_v9, %v9958_v9  ;;  %6687 = vmatpush3.bf16.msra.mxu0 %v7721_v14 }
0x1054   : > { %v5011_v61 = vpop.xlane.xlu1 %5010  ;;  %6688 = vmatprep.subr.bf16.mxu0 %v7722_v34 }
0x1055   : > { %v9974_v43 = vsub.f32 %v9873_v23, %v5028_v60  ;;  %v5029_v15 = vmul.f32 0.0078125, %v5011_v61  ;;  %5084 = vadd.xlane.f32.xlu0 %v5058_v10  ;;  %v5059_v48 = vmul.f32 %v9963_v36, %v9963_v36  ;;  %5335 = vmatpush1.bf16.msra.mxu1 %v7717_v56 }
0x1056   : > { %v5013_v11 = vpop.xlane.xlu0 %5012 }
0x1057   : > { %v9979_v18 = vsub.f32 %v9879_v21, %v5029_v15  ;;  %v5030_v26 = vmul.f32 0.0078125, %v5013_v11  ;;  %5086 = vadd.xlane.f32.xlu1 %v5059_v48  ;;  %v5060_v39 = vmul.f32 %v9974_v43, %v9974_v43  ;;  %6689 = vmatpush3.bf16.msra.mxu0 %v7723_v45  ;;  %v10043_v45 = vld [vmem:[%s10342_s4] ss:$0 sm:$0xff] }
0x1058   : > { %v5015_v24 = vpop.xlane.xlu1 %5014 }
0x1059   : > { %v9990_v3 = vsub.f32 %v9883_v16, %v5030_v26  ;;  %v5031_v50 = vmul.f32 0.0078125, %v5015_v24  ;;  %5088 = vadd.xlane.f32.xlu0 %v5060_v39  ;;  %v5061_v62 = vmul.f32 %v9979_v18, %v9979_v18 }
0x105b   : > { %v9995_v22 = vsub.f32 %v9887_v31, %v5031_v50  ;;  %5090 = vadd.xlane.f32.xlu1 %v5061_v62  ;;  %v5062_v5 = vmul.f32 %v9990_v3, %v9990_v3 }
0x105d   : > { %5092 = vadd.xlane.f32.xlu0 %v5062_v5  ;;  %v5063_v8 = vmul.f32 %v9995_v22, %v9995_v22 }
0x105f   : > { %5094 = vadd.xlane.f32.xlu1 %v5063_v8 }
0x10ce   : > { %v5065_v13 = vpop.xlane.xlu0 %5064 }
0x10cf   : > { %v5096_v28 = vmul.f32 0.0078125, %v5065_v13 }
0x10d0   : > { %v5067_v46 = vpop.xlane.xlu1 %5066 }
0x10d1   : > { %v5112_v4 = vadd.f32 1e-05, %v5096_v28  ;;  %v5097_v60 = vmul.f32 0.0078125, %v5067_v46 }
0x10d2   : > { %v5069_v10 = vpop.xlane.xlu0 %5068 }
0x10d3   : > { %8024 = vrsqrt.f32 %v5112_v4  ;;  %v5113_v49 = vadd.f32 1e-05, %v5097_v60  ;;  %v5098_v61 = vmul.f32 0.0078125, %v5069_v10 }
0x10d4   : > { %v5071_v47 = vpop.xlane.xlu1 %5070 }
0x10d5   : > { %8026 = vrsqrt.f32 %v5113_v49  ;;  %v5114_v15 = vadd.f32 1e-05, %v5098_v61  ;;  %v5099_v48 = vmul.f32 0.0078125, %v5071_v47 }
0x10d6   : > { %v5073_v11 = vpop.xlane.xlu0 %5072 }
0x10d7   : > { %8028 = vrsqrt.f32 %v5114_v15  ;;  %v5115_v26 = vadd.f32 1e-05, %v5099_v48  ;;  %v5100_v39 = vmul.f32 0.0078125, %v5073_v11 }
0x10d8   : > { %v5075_v0 = vpop.xlane.xlu1 %5074 }
0x10d9   : > { %8030 = vrsqrt.f32 %v5115_v26  ;;  %v5101_v24 = vmul.f32 0.0078125, %v5075_v0  ;;  %v5116_v30 = vadd.f32 1e-05, %v5100_v39 }
0x10da   : > { %v5077_v62 = vpop.xlane.xlu0 %5076 }
0x10db   : > { %v5117_v50 = vadd.f32 1e-05, %v5101_v24  ;;  %v5102_v29 = vmul.f32 0.0078125, %v5077_v62 }
0x10dc   : > { %v5079_v5 = vpop.xlane.xlu1 %5078 }
0x10dd   : > { %v8025_v38 = vpop.eup %8024  ;;  %8032 = vrsqrt.f32 %v5117_v50  ;;  %v5103_v8 = vmul.f32 0.0078125, %v5079_v5  ;;  %v5118_v4 = vadd.f32 1e-05, %v5102_v29 }
0x10de   : > { %v5144_v12 = vmul.f32 %v8025_v38, %v9904_v54  ;;  %8034 = vrsqrt.f32 %v5116_v30  ;;  %v5081_v54 = vpop.xlane.xlu0 %5080 }
0x10df   : > { %v8027_v32 = vpop.eup %8026  ;;  %v5119_v34 = vadd.f32 1e-05, %v5103_v8  ;;  %v5104_v11 = vmul.f32 0.0078125, %v5081_v54 }
0x10e0   : > { %v5166_v56 = vmul.f32 %v10035_v35, %v5144_v12  ;;  %v5145_v17 = vmul.f32 %v8027_v32, %v9907_v20  ;;  %v5083_v28 = vpop.xlane.xlu1 %5082 }
0x10e1   : > { %v8029_v14 = vpop.eup %8028  ;;  %8036 = vrsqrt.f32 %v5119_v34  ;;  %v5105_v61 = vmul.f32 0.0078125, %v5083_v28  ;;  %v5120_v30 = vadd.f32 1e-05, %v5104_v11 }
0x10e2   : > { %v5167_v13 = vmul.f32 %v10035_v35, %v5145_v17  ;;  %v5188_v60 = vadd.f32 %v10043_v45, %v5166_v56  ;;  %v5146_v49 = vmul.f32 %v8029_v14, %v9912_v55  ;;  %8038 = vrsqrt.f32 %v5118_v4  ;;  %v5085_v50 = vpop.xlane.xlu0 %5084 }
0x10e3   : > { %v8031_v46 = vpop.eup %8030  ;;  %v5121_v0 = vadd.f32 1e-05, %v5105_v61  ;;  %v5106_v29 = vmul.f32 0.0078125, %v5085_v50 }
0x10e4   : > { %v5189_v10 = vadd.f32 %v10043_v45, %v5167_v13  ;;  %v5147_v20 = vmul.f32 %v8031_v46, %v9917_v57  ;;  %v5168_v26 = vmul.f32 %v10035_v35, %v5146_v49  ;;  %v5087_v24 = vpop.xlane.xlu1 %5086 }
0x10e5   : > { %8040 = vrsqrt.f32 %v5121_v0  ;;  %v5107_v38 = vmul.f32 0.0078125, %v5087_v24  ;;  %v5122_v13 = vadd.f32 1e-05, %v5106_v29 }
0x10e6   : > { %v5204_v47 = vpack.c.bf16 %v5189_v10, %v5188_v60  ;;  %v5169_v15 = vmul.f32 %v10035_v35, %v5147_v20  ;;  %v5190_v62 = vadd.f32 %v10043_v45, %v5168_v26  ;;  %8042 = vrsqrt.f32 %v5120_v30  ;;  %v5089_v28 = vpop.xlane.xlu0 %5088 }
0x10e7   : > { %v8033_v48 = vpop.eup %8032  ;;  %v5123_v14 = vadd.f32 1e-05, %v5107_v38  ;;  %v5108_v20 = vmul.f32 0.0078125, %v5089_v28 }
0x10e8   : > { %5353 = vmatmul.mubr.bf16.vlgmr.msra.gmra.mrb[176].mxu1 %v5204_v47  ;;  %v8035_v39 = vpop.eup %8034  ;;  %v5191_v55 = vadd.f32 %v10043_v45, %v5169_v15  ;;  %v5149_v57 = vmul.f32 %v8033_v48, %v9927_v40  ;;  %v5091_v40 = vpop.xlane.xlu1 %5090 }
0x10e9   : > { %5362 = vmatprep.mubr.bf16.mxu1 %v8200_v59  ;;  %v5148_v5 = vmul.f32 %v8035_v39, %v9922_v27  ;;  %8044 = vrsqrt.f32 %v5123_v14  ;;  %v5109_v54 = vmul.f32 0.0078125, %v5091_v40  ;;  %v5124_v11 = vadd.f32 1e-05, %v5108_v20 }
0x10ea   : > { %v5205_v8 = vpack.c.bf16 %v5191_v55, %v5190_v62  ;;  %v5171_v12 = vmul.f32 %v10035_v35, %v5149_v57  ;;  %8046 = vrsqrt.f32 %v5122_v13  ;;  %v5093_v26 = vpop.xlane.xlu0 %5092 }
0x10eb   : > { %v8037_v32 = vpop.eup %8036  ;;  %v5170_v56 = vmul.f32 %v10035_v35, %v5148_v5  ;;  %v5125_v15 = vadd.f32 1e-05, %v5109_v54  ;;  %v5110_v50 = vmul.f32 0.0078125, %v5093_v26  ;;  %v7732_v26 = vld [vmem:[%s10350_s12 + $0x70] sm:$0xff]  }
0x10ec   : > { %v8039_v17 = vpop.eup %8038  ;;  %v5193_v34 = vadd.f32 %v10043_v45, %v5171_v12  ;;  %v5151_v27 = vmul.f32 %v8037_v32, %v9937_v19  ;;  %v5095_v19 = vpop.xlane.xlu1 %5094 }
0x10ed   : > { %v5192_v46 = vadd.f32 %v10043_v45, %v5170_v56  ;;  %v5150_v4 = vmul.f32 %v8039_v17, %v9932_v6  ;;  %8048 = vrsqrt.f32 %v5125_v15  ;;  %v5111_v24 = vmul.f32 0.0078125, %v5095_v19 }
0x10ee   : > { %v5173_v10 = vmul.f32 %v10035_v35, %v5151_v27  ;;  %8050 = vrsqrt.f32 %v5124_v11  ;;  %v7731_v11 = vld [vmem:[%s10350_s12 + $0x28] sm:$0xff]  }
0x10ef   : > { %v5206_v60 = vpack.c.bf16 %v5193_v34, %v5192_v46  ;;  %v8041_v49 = vpop.eup %8040  ;;  %v5172_v61 = vmul.f32 %v10035_v35, %v5150_v4  ;;  %v5127_v38 = vadd.f32 1e-05, %v5111_v24  ;;  %v7735_v24 = vld [vmem:[%s10350_s12 + $0x38] sm:$0xff]  }
0x10f0   : > { %5363 = vmatmul.mubr.bf16.gmra.mrb[180].mxu1 %v5205_v8  ;;  %v8043_v47 = vpop.eup %8042  ;;  %v5195_v48 = vadd.f32 %v10043_v45, %v5173_v10  ;;  %v5153_v6 = vmul.f32 %v8041_v49, %v9947_v33 }
0x10f1   : > { %5372 = vmatprep.mubr.bf16.mxu1 %v8200_v59  ;;  %v5194_v39 = vadd.f32 %v10043_v45, %v5172_v61  ;;  %v5152_v0 = vmul.f32 %v8043_v47, %v9942_v2  ;;  %v5126_v2 = vadd.f32 1e-05, %v5110_v50  ;;  %8052 = vrsqrt.f32 %v5127_v38  ;;  %v5228_v50 = vld [vmem:[%s10349_s11] sm:$0x3] }
0x10f2   : > { %v5175_v57 = vmul.f32 %v10035_v35, %v5153_v6  ;;  %v7730_v6 = vld [vmem:[%s10350_s12 + $0x68] sm:$0xff]  }
0x10f3   : > { %v5207_v55 = vpack.c.bf16 %v5195_v48, %v5194_v39  ;;  %v8045_v30 = vpop.eup %8044  ;;  %v5174_v62 = vmul.f32 %v10035_v35, %v5152_v0  ;;  %8054 = vrsqrt.f32 %v5126_v2  ;;  %v7729_v48 = vld [vmem:[%s10350_s12 + $0x20] sm:$0xff]   ;;  %v7733_v39 = vld [vmem:[%s10350_s12 + $0x30] sm:$0xff]   ;;  %v7734_v0 = vld [vmem:[%s10350_s12 + $0x78] sm:$0xff]  }
0x10f4   : > { %v8047_v5 = vpop.eup %8046  ;;  %v5197_v33 = vadd.f32 %v10043_v45, %v5175_v57  ;;  %v5155_v8 = vmul.f32 %v8045_v30, %v9963_v36 }
0x10f5   : > { %v5196_v12 = vadd.f32 %v10043_v45, %v5174_v62  ;;  %v5154_v32 = vmul.f32 %v8047_v5, %v9958_v9 }
0x10f6   : > { %v5177_v56 = vmul.f32 %v10035_v35, %v5155_v8 }
0x10f7   : > { %v5208_v29 = vpack.c.bf16 %v5197_v33, %v5196_v12  ;;  %v8049_v17 = vpop.eup %8048  ;;  %v5176_v14 = vmul.f32 %v10035_v35, %v5154_v32 }
0x10f8   : > { %5373 = vmatmul.mubr.bf16.gmra.mrb[184].mxu1 %v5206_v60  ;;  %v8051_v40 = vpop.eup %8050  ;;  %v5199_v34 = vadd.f32 %v10043_v45, %v5177_v56  ;;  %v5157_v36 = vmul.f32 %v8049_v17, %v9979_v18 }
0x10f9   : > { %5382 = vmatprep.mubr.bf16.mxu1 %v8200_v59  ;;  %v5198_v27 = vadd.f32 %v10043_v45, %v5176_v14  ;;  %v5156_v9 = vmul.f32 %v8051_v40, %v9974_v43 }
0x10fa   : > { %v5179_v28 = vmul.f32 %v10035_v35, %v5157_v36 }
0x10fb   : > { %v5209_v13 = vpack.c.bf16 %v5199_v34, %v5198_v27  ;;  %v8053_v46 = vpop.eup %8052  ;;  %v5178_v4 = vmul.f32 %v10035_v35, %v5156_v9 }
0x10fc   : > { %v5201_v60 = vadd.f32 %v10043_v45, %v5179_v28  ;;  %v5159_v10 = vmul.f32 %v8053_v46, %v9995_v22  ;;  %v7724_v22 = vld [vmem:[%s10350_s12 + $0x50] sm:$0xff]  }
0x10fd   : > { %v8055_v54 = vpop.eup %8054  ;;  %v5200_v18 = vadd.f32 %v10043_v45, %v5178_v4  ;;  %6690 = vmatprep.subr.bf16.mxu0 %v7724_v22 }
0x10fe   : > { %v5158_v49 = vmul.f32 %v8055_v54, %v9990_v3  ;;  %v5181_v43 = vmul.f32 %v10035_v35, %v5159_v10  ;;  %v7725_v3 = vld [vmem:[%s10350_s12 + $0x10] sm:$0xff]  }
0x10ff   : > { %v5210_v20 = vpack.c.bf16 %v5201_v60, %v5200_v18  ;;  %6691 = vmatpush3.bf16.msra.mxu0 %v7725_v3 }
0x1100   : > { %5383 = vmatmul.mubr.bf16.gmra.mrb[188].mxu1 %v5207_v55  ;;  %v5180_v61 = vmul.f32 %v10035_v35, %v5158_v49  ;;  %v5203_v47 = vadd.f32 %v10043_v45, %v5181_v43  ;;  %v7727_v35 = vld [vmem:[%s10350_s12 + $0x18] sm:$0xff]   ;;  %v5230_v55 = vlaneseq }
0x1101   : > { %5392 = vmatprep.mubr.bf16.mxu1 %v8200_v59 }
0x1102   : > { %v5202_v15 = vadd.f32 %v10043_v45, %v5180_v61  ;;  %v7728_v45 = vld [vmem:[%s10350_s12 + $0x60] sm:$0xff]   ;;  %v5231_v57 = vshrl.u32 %v5230_v55, 7 }
0x1104   : > { %v5211_v19 = vpack.c.bf16 %v5203_v47, %v5202_v15  ;;  %v5232_v30 = vsub.s32 0, %v5231_v57  ;;  %v5236_v62 = vsub.s32 1, %v5231_v57 }
0x1106   : > { %v10136_v5 = vrot.slane %v5228_v50, %v5232_v30  ;;  %v10138_v38 = vrot.slane %v5228_v50, %v5236_v62 }
0x1108   : > { %5393 = vmatmul.mubr.bf16.gmra.mrb[192].mxu1 %v5208_v29 }
0x1109   : > { %5402 = vmatprep.mubr.bf16.mxu1 %v8200_v59 }
0x1110   : > { %5403 = vmatmul.mubr.bf16.gmra.mrb[196].mxu1 %v5209_v13 }
0x1111   : > { %5412 = vmatprep.mubr.bf16.mxu1 %v8200_v59 }
0x1118   : > { %5413 = vmatmul.mubr.bf16.gmra.mrb[200].mxu1 %v5210_v20 }
0x1119   : > { %5422 = vmatprep.mubr.bf16.mxu1 %v8200_v59  ;;  %v7726_v59 = vld [vmem:[%s10350_s12 + $0x58] sm:$0xff]  }
0x111a   : > { %6692 = vmatprep.subr.bf16.mxu0 %v7726_v59 }
0x111b   : > { %6693 = vmatpush3.bf16.msra.mxu0 %v7727_v35 }
0x111c   : > { %6694 = vmatprep.subr.bf16.mxu0 %v7728_v45 }
0x111f   : > { %6695 = vmatpush3.bf16.msra.mxu0 %v7729_v48 }
0x1120   : > { %5423 = vmatmul.mubr.bf16.gmra.mrb[204].mxu1 %v5211_v19  ;;  %6696 = vmatprep.subr.bf16.mxu0 %v7730_v6 }
0x1123   : > { %6697 = vmatpush3.bf16.msra.mxu0 %v7731_v11 }
0x1124   : > { %6698 = vmatprep.subr.bf16.mxu0 %v7732_v26 }
0x1127   : > { %6699 = vmatpush3.bf16.msra.mxu0 %v7733_v39 }
0x1128   : > { %6700 = vmatprep.subr.bf16.mxu0 %v7734_v0 }
0x112b   : > { %6701 = vmatpush3.bf16.msra.mxu0 %v7735_v24 }
0x11bb   : > { %v5354_v33 = vpop.f32.mrb[176].mxu1 }
0x11bc   : > { %v5355_v8 = vadd.f32 %v5354_v33, %v10136_v5  ;;  %v5356_v2 = vpop.f32.mrb[177].mxu1 }
0x11bd   : > { %v5357_v12 = vadd.f32 %v5356_v2, %v10138_v38  ;;  %v5358_v32 = vpop.f32.mrb[178].mxu1 }
0x11be   : > { %v5466_v29 = vmul.f32 0.70710677, %v5355_v8  ;;  %v5359_v56 = vadd.f32 %v5358_v32, %v10136_v5  ;;  %v5360_v17 = vpop.f32.mrb[179].mxu1  ;;  %v5433_v45 = vmul.f32 0.5, %v5355_v8 }
0x11bf   : > { %v5467_v14 = vmul.f32 0.70710677, %v5357_v12  ;;  %v5361_v40 = vadd.f32 %v5360_v17, %v10138_v38  ;;  %v5434_v39 = vmul.f32 0.5, %v5357_v12 }
0x11c0   : > { %8056 = verf.f32 %v5466_v29  ;;  %v5468_v34 = vmul.f32 0.70710677, %v5359_v56  ;;  %v5435_v48 = vmul.f32 0.5, %v5359_v56 }
0x11c1   : > { %8058 = verf.f32 %v5467_v14  ;;  %v5469_v36 = vmul.f32 0.70710677, %v5361_v40  ;;  %v5436_v0 = vmul.f32 0.5, %v5361_v40 }
0x11c2   : > { %8060 = verf.f32 %v5468_v34 }
0x11c3   : > { %8062 = verf.f32 %v5469_v36  ;;  %v5364_v27 = vpop.f32.mrb[180].mxu1 }
0x11c4   : > { %v5365_v9 = vadd.f32 %v5364_v27, %v10136_v5  ;;  %v5366_v13 = vpop.f32.mrb[181].mxu1 }
0x11c5   : > { %v5367_v28 = vadd.f32 %v5366_v13, %v10138_v38  ;;  %v5368_v46 = vpop.f32.mrb[182].mxu1 }
0x11c6   : > { %v5470_v4 = vmul.f32 0.70710677, %v5365_v9  ;;  %v5369_v54 = vadd.f32 %v5368_v46, %v10136_v5  ;;  %v5370_v60 = vpop.f32.mrb[183].mxu1 }
0x11c7   : > { %v5471_v10 = vmul.f32 0.70710677, %v5367_v28  ;;  %v5371_v18 = vadd.f32 %v5370_v60, %v10138_v38 }
0x11c8   : > { %8064 = verf.f32 %v5470_v4  ;;  %v5472_v49 = vmul.f32 0.70710677, %v5369_v54 }
0x11c9   : > { %8066 = verf.f32 %v5471_v10  ;;  %v5473_v20 = vmul.f32 0.70710677, %v5371_v18  ;;  %v5437_v10 = vmul.f32 0.5, %v5365_v9 }
0x11ca   : > { %v8057_v43 = vpop.eup %8056  ;;  %8068 = verf.f32 %v5472_v49  ;;  %v5439_v49 = vmul.f32 0.5, %v5369_v54 }
0x11cb   : > { %v8059_v61 = vpop.eup %8058  ;;  %v5530_v47 = vadd.f32 1.0, %v8057_v43  ;;  %8070 = verf.f32 %v5473_v20  ;;  %v5374_v15 = vpop.f32.mrb[184].mxu1 }
0x11cc   : > { %v8061_v19 = vpop.eup %8060  ;;  %v5531_v22 = vadd.f32 1.0, %v8059_v61  ;;  %v10149_v3 = vadd.f32 %v5374_v15, %v10136_v5  ;;  %v5376_v59 = vpop.f32.mrb[185].mxu1  ;;  %v5440_v15 = vmul.f32 0.5, %v5371_v18 }
0x11cd   : > { %v8063_v35 = vpop.eup %8062  ;;  %v5532_v6 = vadd.f32 1.0, %v8061_v19  ;;  %v10152_v11 = vadd.f32 %v5376_v59, %v10138_v38  ;;  %v5378_v26 = vpop.f32.mrb[186].mxu1  ;;  %v5562_v30 = vmul.f32 %v5530_v47, %v5433_v45  ;;  %v5438_v47 = vmul.f32 0.5, %v5367_v28 }
0x11ce   : > { %v5533_v24 = vadd.f32 1.0, %v8063_v35  ;;  %v5474_v55 = vmul.f32 0.70710677, %v10149_v3  ;;  %v5380_v57 = vpop.f32.mrb[187].mxu1  ;;  %v5379_v33 = vadd.f32 %v5378_v26, %v10136_v5  ;;  %v5563_v2 = vmul.f32 %v5531_v22, %v5434_v39 }
0x11cf   : > { %v5564_v50 = vmul.f32 %v5532_v6, %v5435_v48  ;;  %v5475_v62 = vmul.f32 0.70710677, %v10152_v11  ;;  %v5381_v32 = vadd.f32 %v5380_v57, %v10138_v38 }
0x11d0   : > { %v5565_v8 = vmul.f32 %v5533_v24, %v5436_v0  ;;  %8072 = verf.f32 %v5474_v55  ;;  %v5476_v56 = vmul.f32 0.70710677, %v5379_v33 }
0x11d1   : > { %v5594_v29 = vpack.c.bf16 %v5564_v50, %v5562_v30  ;;  %8074 = verf.f32 %v5475_v62  ;;  %v5477_v17 = vmul.f32 0.70710677, %v5381_v32 }
0x11d2   : > { %v8065_v12 = vpop.eup %8064  ;;  %v5595_v14 = vpack.c.bf16 %v5565_v8, %v5563_v2  ;;  %8076 = verf.f32 %v5476_v56  ;;  %v5441_v8 = vmul.f32 0.5, %v10149_v3 }
0x11d3   : > { %v8067_v40 = vpop.eup %8066  ;;  %v5534_v34 = vadd.f32 1.0, %v8065_v12  ;;  %v5384_v36 = vpop.f32.mrb[188].mxu1  ;;  %8078 = verf.f32 %v5477_v17 }
0x11d4   : > { %v8069_v27 = vpop.eup %8068  ;;  %v5535_v13 = vadd.f32 1.0, %v8067_v40  ;;  %v10159_v46 = vadd.f32 %v5384_v36, %v10136_v5  ;;  %v5386_v4 = vpop.f32.mrb[189].mxu1  ;;  %5777 = vmatprep.mubr.bf16.mxu0 %v5595_v14  ;;  %v5442_v14 = vmul.f32 0.5, %v10152_v11  ;;  %v5443_v40 = vmul.f32 0.5, %v5379_v33 }
0x11d5   : > { %v8071_v60 = vpop.eup %8070  ;;  %v5536_v20 = vadd.f32 1.0, %v8069_v27  ;;  %v10162_v43 = vadd.f32 %v5386_v4, %v10138_v38  ;;  %v5388_v61 = vpop.f32.mrb[190].mxu1  ;;  %5778 = vmatmul.mubr.bf16.vlgmr.msra.gmra.mrb[160].mxu0 %v5594_v29  ;;  %v5566_v35 = vmul.f32 %v5534_v34, %v5437_v10 }
0x11d6   : > { %v5537_v19 = vadd.f32 1.0, %v8071_v60  ;;  %v5478_v22 = vmul.f32 0.70710677, %v10159_v46  ;;  %v5390_v59 = vpop.f32.mrb[191].mxu1  ;;  %v5389_v6 = vadd.f32 %v5388_v61, %v10136_v5  ;;  %v5567_v9 = vmul.f32 %v5535_v13, %v5438_v47 }
0x11d7   : > { %v5568_v45 = vmul.f32 %v5536_v20, %v5439_v49  ;;  %v5479_v48 = vmul.f32 0.70710677, %v10162_v43  ;;  %v5391_v26 = vadd.f32 %v5390_v59, %v10138_v38  ;;  %v5444_v13 = vmul.f32 0.5, %v5381_v32 }
0x11d8   : > { %v5569_v54 = vmul.f32 %v5537_v19, %v5440_v15  ;;  %8080 = verf.f32 %v5478_v22  ;;  %v5480_v39 = vmul.f32 0.70710677, %v5389_v6 }
0x11d9   : > { %8082 = verf.f32 %v5479_v48  ;;  %v5596_v0 = vpack.c.bf16 %v5568_v45, %v5566_v35  ;;  %v5481_v18 = vmul.f32 0.70710677, %v5391_v26 }
0x11da   : > { %v8073_v28 = vpop.eup %8072  ;;  %v5597_v24 = vpack.c.bf16 %v5569_v54, %v5567_v9  ;;  %8084 = verf.f32 %v5480_v39  ;;  %v5445_v54 = vmul.f32 0.5, %v10159_v46 }
0x11db   : > { %v8075_v55 = vpop.eup %8074  ;;  %v5394_v57 = vpop.f32.mrb[192].mxu1  ;;  %v5538_v30 = vadd.f32 1.0, %v8073_v28  ;;  %8086 = verf.f32 %v5481_v18 }
0x11dc   : > { %v10169_v50 = vadd.f32 %v5394_v57, %v10136_v5  ;;  %v5396_v62 = vpop.f32.mrb[193].mxu1  ;;  %5785 = vmatprep.mubr.bf16.mxu0 %v5597_v24  ;;  %v8077_v2 = vpop.eup %8076  ;;  %v5539_v29 = vadd.f32 1.0, %v8075_v55  ;;  %v5446_v24 = vmul.f32 0.5, %v10162_v43  ;;  %v5447_v55 = vmul.f32 0.5, %v5389_v6 }
0x11dd   : > { %v10173_v56 = vadd.f32 %v5396_v62, %v10138_v38  ;;  %v5398_v12 = vpop.f32.mrb[194].mxu1  ;;  %5786 = vmatmul.mubr.bf16.gmra.mrb[164].mxu0 %v5596_v0  ;;  %v8079_v17 = vpop.eup %8078  ;;  %v5540_v34 = vadd.f32 1.0, %v8077_v2  ;;  %v5570_v10 = vmul.f32 %v5538_v30, %v5441_v8  ;;  %v5448_v2 = vmul.f32 0.5, %v5391_v26 }
0x11de   : > { %v5482_v36 = vmul.f32 0.70710677, %v10169_v50  ;;  %v5400_v27 = vpop.f32.mrb[195].mxu1  ;;  %v5541_v4 = vadd.f32 1.0, %v8079_v17  ;;  %v10179_v3 = vadd.f32 %v5398_v12, %v10136_v5  ;;  %v5571_v61 = vmul.f32 %v5539_v29, %v5442_v14 }
0x11df   : > { %v5483_v60 = vmul.f32 0.70710677, %v10173_v56  ;;  %v5572_v49 = vmul.f32 %v5540_v34, %v5443_v40  ;;  %v10182_v20 = vadd.f32 %v5400_v27, %v10138_v38 }
0x11e0   : > { %8088 = verf.f32 %v5482_v36  ;;  %v5573_v11 = vmul.f32 %v5541_v4, %v5444_v13  ;;  %v5484_v33 = vmul.f32 0.70710677, %v10179_v3 }
0x11e1   : > { %8090 = verf.f32 %v5483_v60  ;;  %v5485_v32 = vmul.f32 0.70710677, %v10182_v20  ;;  %v5598_v15 = vpack.c.bf16 %v5572_v49, %v5570_v10 }
0x11e2   : > { %v8081_v47 = vpop.eup %8080  ;;  %8092 = verf.f32 %v5484_v33  ;;  %v5599_v59 = vpack.c.bf16 %v5573_v11, %v5571_v61  ;;  %v5449_v11 = vmul.f32 0.5, %v10169_v50 }
0x11e3   : > { %v8083_v19 = vpop.eup %8082  ;;  %v5404_v22 = vpop.f32.mrb[196].mxu1  ;;  %v5542_v35 = vadd.f32 1.0, %v8081_v47  ;;  %8094 = verf.f32 %v5485_v32 }
0x11e4   : > { %v10187_v45 = vadd.f32 %v5404_v22, %v10136_v5  ;;  %v5406_v48 = vpop.f32.mrb[197].mxu1  ;;  %v8085_v9 = vpop.eup %8084  ;;  %v5543_v39 = vadd.f32 1.0, %v8083_v19  ;;  %5793 = vmatprep.mubr.bf16.mxu0 %v5599_v59  ;;  %v5450_v19 = vmul.f32 0.5, %v10173_v56  ;;  %v5451_v22 = vmul.f32 0.5, %v10179_v3 }
0x11e5   : > { %v10191_v0 = vadd.f32 %v5406_v48, %v10138_v38  ;;  %v5408_v28 = vpop.f32.mrb[198].mxu1  ;;  %v8087_v18 = vpop.eup %8086  ;;  %v5544_v57 = vadd.f32 1.0, %v8085_v9  ;;  %5794 = vmatmul.mubr.bf16.gmra.mrb[168].mxu0 %v5598_v15  ;;  %v5574_v12 = vmul.f32 %v5542_v35, %v5445_v54  ;;  %v5452_v9 = vmul.f32 0.5, %v10182_v20 }
0x11e6   : > { %v5486_v30 = vmul.f32 0.70710677, %v10187_v45  ;;  %v5410_v62 = vpop.f32.mrb[199].mxu1  ;;  %v5545_v8 = vadd.f32 1.0, %v8087_v18  ;;  %v10197_v46 = vadd.f32 %v5408_v28, %v10136_v5  ;;  %v5575_v43 = vmul.f32 %v5543_v39, %v5446_v24 }
0x11e7   : > { %v5487_v29 = vmul.f32 0.70710677, %v10191_v0  ;;  %v5576_v17 = vmul.f32 %v5544_v57, %v5447_v55  ;;  %v10200_v14 = vadd.f32 %v5410_v62, %v10138_v38 }
0x11e8   : > { %8096 = verf.f32 %v5486_v30  ;;  %v5577_v6 = vmul.f32 %v5545_v8, %v5448_v2  ;;  %v5488_v40 = vmul.f32 0.70710677, %v10197_v46 }
0x11e9   : > { %8098 = verf.f32 %v5487_v29  ;;  %v5489_v26 = vmul.f32 0.70710677, %v10200_v14  ;;  %v5600_v36 = vpack.c.bf16 %v5576_v17, %v5574_v12 }
0x11ea   : > { %v8089_v34 = vpop.eup %8088  ;;  %8100 = verf.f32 %v5488_v40  ;;  %v5601_v4 = vpack.c.bf16 %v5577_v6, %v5575_v43  ;;  %v5453_v6 = vmul.f32 0.5, %v10187_v45 }
0x11eb   : > { %v8091_v27 = vpop.eup %8090  ;;  %v5414_v13 = vpop.f32.mrb[200].mxu1  ;;  %v5546_v60 = vadd.f32 1.0, %v8089_v34  ;;  %8102 = verf.f32 %v5489_v26 }
0x11ec   : > { %v10205_v10 = vadd.f32 %v5414_v13, %v10136_v5  ;;  %v5416_v49 = vpop.f32.mrb[201].mxu1  ;;  %v8093_v61 = vpop.eup %8092  ;;  %v5547_v33 = vadd.f32 1.0, %v8091_v27  ;;  %5801 = vmatprep.mubr.bf16.mxu0 %v5601_v4  ;;  %v5454_v27 = vmul.f32 0.5, %v10191_v0  ;;  %v5455_v13 = vmul.f32 0.5, %v10197_v46 }
0x11ed   : > { %v10209_v47 = vadd.f32 %v5416_v49, %v10138_v38  ;;  %v5418_v32 = vpop.f32.mrb[202].mxu1  ;;  %v8095_v15 = vpop.eup %8094  ;;  %v5548_v59 = vadd.f32 1.0, %v8093_v61  ;;  %5802 = vmatmul.mubr.bf16.gmra.mrb[172].mxu0 %v5600_v36  ;;  %v5578_v28 = vmul.f32 %v5546_v60, %v5449_v11  ;;  %v5456_v61 = vmul.f32 0.5, %v10200_v14 }
0x11ee   : > { %v5490_v35 = vmul.f32 0.70710677, %v10205_v10  ;;  %v5420_v48 = vpop.f32.mrb[203].mxu1  ;;  %v5549_v54 = vadd.f32 1.0, %v8095_v15  ;;  %v5419_v39 = vadd.f32 %v5418_v32, %v10136_v5  ;;  %v5579_v56 = vmul.f32 %v5547_v33, %v5450_v19 }
0x11ef   : > { %v5491_v50 = vmul.f32 0.70710677, %v10209_v47  ;;  %v5580_v18 = vmul.f32 %v5548_v59, %v5451_v22  ;;  %v5421_v24 = vadd.f32 %v5420_v48, %v10138_v38 }
0x11f0   : > { %8104 = verf.f32 %v5490_v35  ;;  %v5581_v55 = vmul.f32 %v5549_v54, %v5452_v9  ;;  %v5492_v3 = vmul.f32 0.70710677, %v5419_v39 }
0x11f1   : > { %8106 = verf.f32 %v5491_v50  ;;  %v5493_v30 = vmul.f32 0.70710677, %v5421_v24  ;;  %v5602_v62 = vpack.c.bf16 %v5580_v18, %v5578_v28  ;;  %v5457_v18 = vmul.f32 0.5, %v10205_v10 }
0x11f2   : > { %v8097_v57 = vpop.eup %8096  ;;  %8108 = verf.f32 %v5492_v3  ;;  %v5603_v8 = vpack.c.bf16 %v5581_v55, %v5579_v56  ;;  %v5459_v56 = vmul.f32 0.5, %v5419_v39  ;;  %v5458_v55 = vmul.f32 0.5, %v10209_v47 }
0x11f3   : > { %v8099_v2 = vpop.eup %8098  ;;  %v5424_v20 = vpop.f32.mrb[204].mxu1  ;;  %v5550_v29 = vadd.f32 1.0, %v8097_v57  ;;  %8110 = verf.f32 %v5493_v30  ;;  %v5460_v3 = vmul.f32 0.5, %v5421_v24 }
0x11f4   : > { %v5425_v12 = vadd.f32 %v5424_v20, %v10136_v5  ;;  %v5426_v17 = vpop.f32.mrb[205].mxu1  ;;  %v8101_v43 = vpop.eup %8100  ;;  %v5551_v40 = vadd.f32 1.0, %v8099_v2  ;;  %5809 = vmatprep.mubr.bf16.mxu0 %v5603_v8 }
0x11f5   : > { %v5427_v34 = vadd.f32 %v5426_v17, %v10138_v38  ;;  %v5428_v26 = vpop.f32.mrb[206].mxu1  ;;  %v8103_v36 = vpop.eup %8102  ;;  %v5552_v4 = vadd.f32 1.0, %v8101_v43  ;;  %5810 = vmatmul.mubr.bf16.gmra.mrb[176].mxu0 %v5602_v62  ;;  %v5582_v32 = vmul.f32 %v5550_v29, %v5453_v6 }
0x11f6   : > { %v5494_v60 = vmul.f32 0.70710677, %v5425_v12  ;;  %v5430_v49 = vpop.f32.mrb[207].mxu1  ;;  %v5553_v11 = vadd.f32 1.0, %v8103_v36  ;;  %v5429_v45 = vadd.f32 %v5428_v26, %v10136_v5  ;;  %v5583_v22 = vmul.f32 %v5551_v40, %v5454_v27 }
0x11f7   : > { %v5495_v33 = vmul.f32 0.70710677, %v5427_v34  ;;  %v5584_v15 = vmul.f32 %v5552_v4, %v5455_v13  ;;  %v5431_v19 = vadd.f32 %v5430_v49, %v10138_v38  ;;  %v5461_v39 = vmul.f32 0.5, %v5425_v12  ;;  %v10232_v12 = vld [vmem:[%s10351_s13] ss:$0 sm:$0xff] }
0x11f8   : > { %8112 = verf.f32 %v5494_v60  ;;  %v5585_v59 = vmul.f32 %v5553_v11, %v5456_v61  ;;  %v5496_v0 = vmul.f32 0.70710677, %v5429_v45  ;;  %v5463_v36 = vmul.f32 0.5, %v5429_v45 }
0x11f9   : > { %8114 = verf.f32 %v5495_v33  ;;  %v5497_v35 = vmul.f32 0.70710677, %v5431_v19  ;;  %v5604_v48 = vpack.c.bf16 %v5584_v15, %v5582_v32  ;;  %v5462_v47 = vmul.f32 0.5, %v5427_v34 }
0x11fa   : > { %v8105_v46 = vpop.eup %8104  ;;  %8116 = verf.f32 %v5496_v0  ;;  %v5605_v54 = vpack.c.bf16 %v5585_v59, %v5583_v22  ;;  %v5464_v24 = vmul.f32 0.5, %v5431_v19 }
0x11fb   : > { %v8107_v9 = vpop.eup %8106  ;;  %v5554_v14 = vadd.f32 1.0, %v8105_v46  ;;  %8118 = verf.f32 %v5497_v35 }
0x11fc   : > { %v8109_v50 = vpop.eup %8108  ;;  %v5555_v28 = vadd.f32 1.0, %v8107_v9  ;;  %5817 = vmatprep.mubr.bf16.mxu0 %v5605_v54 }
0x11fd   : > { %v8111_v5 = vpop.eup %8110  ;;  %v5556_v38 = vadd.f32 1.0, %v8109_v50  ;;  %5818 = vmatmul.mubr.bf16.gmra.mrb[180].mxu0 %v5604_v48  ;;  %v5586_v30 = vmul.f32 %v5554_v14, %v5457_v18 }
0x11fe   : > { %v5557_v57 = vadd.f32 1.0, %v8111_v5  ;;  %v5587_v2 = vmul.f32 %v5555_v28, %v5458_v55 }
0x11ff   : > { %v5588_v62 = vmul.f32 %v5556_v38, %v5459_v56 }
0x1200   : > { %v5589_v20 = vmul.f32 %v5557_v57, %v5460_v3 }
0x1201   : > { %v5606_v29 = vpack.c.bf16 %v5588_v62, %v5586_v30 }
0x1202   : > { %v8113_v8 = vpop.eup %8112  ;;  %v5607_v43 = vpack.c.bf16 %v5589_v20, %v5587_v2 }
0x1203   : > { %v8115_v17 = vpop.eup %8114  ;;  %v5558_v6 = vadd.f32 1.0, %v8113_v8 }
0x1204   : > { %v8117_v40 = vpop.eup %8116  ;;  %v5559_v26 = vadd.f32 1.0, %v8115_v17  ;;  %5825 = vmatprep.mubr.bf16.mxu0 %v5607_v43 }
0x1205   : > { %v8119_v10 = vpop.eup %8118  ;;  %v5560_v27 = vadd.f32 1.0, %v8117_v40  ;;  %5826 = vmatmul.mubr.bf16.gmra.mrb[184].mxu0 %v5606_v29  ;;  %v5590_v4 = vmul.f32 %v5558_v6, %v5461_v39 }
0x1206   : > { %v5561_v13 = vadd.f32 1.0, %v8119_v10  ;;  %v5591_v49 = vmul.f32 %v5559_v26, %v5462_v47 }
0x1207   : > { %v5592_v60 = vmul.f32 %v5560_v27, %v5463_v36 }
0x1208   : > { %v5593_v61 = vmul.f32 %v5561_v13, %v5464_v24 }
0x1209   : > { %v5608_v11 = vpack.c.bf16 %v5592_v60, %v5590_v4 }
0x120a   : > { %v5609_v33 = vpack.c.bf16 %v5593_v61, %v5591_v49 }
0x120c   : > { %5833 = vmatprep.mubr.bf16.mxu0 %v5609_v33 }
0x120d   : > { %5834 = vmatmul.mubr.bf16.gmra.mrb[188].mxu0 %v5608_v11 }
0x12a8   : > { %v6702_v32 = vpop.f32.mrb[160].mxu0 }
0x12a9   : > { %v6703_v45 = vpop.f32.mrb[161].mxu0 }
0x12aa   : > { %v6704_v34 = vadd.f32 %v6703_v45, %v6702_v32  ;;  %v6705_v15 = vpop.f32.mrb[162].mxu0 }
0x12ab   : > { %v6706_v19 = vpop.f32.mrb[163].mxu0 }
0x12ac   : > { %v5780_v22 = vadd.f32 %v6704_v34, %v10232_v12  ;;  %v6707_v59 = vadd.f32 %v6706_v19, %v6705_v15 }
0x12ae   : > { %v5842_v0 = vadd.f32 %v5780_v22, %v9814_v44  ;;  %v5783_v46 = vadd.f32 %v6707_v59, %v10232_v12 }
0x12b0   : > { %5858 = vst [vmem:[%s10239_s26] sm:$0xff] %v5842_v0  ;;  %v5843_v35 = vadd.f32 %v5783_v46, %v9819_v37  ;;  %v6708_v48 = vpop.f32.mrb[164].mxu0 }
0x12b1   : > { %v6709_v9 = vpop.f32.mrb[165].mxu0 }
0x12b2   : > { %5859 = vst [vmem:[%s10239_s26 + $0x8] sm:$0xff] %v5843_v35  ;;  %v6710_v54 = vadd.f32 %v6709_v9, %v6708_v48  ;;  %v6711_v14 = vpop.f32.mrb[166].mxu0 }
0x12b3   : > { %v6712_v50 = vpop.f32.mrb[167].mxu0 }
0x12b4   : > { %v5788_v28 = vadd.f32 %v6710_v54, %v10232_v12  ;;  %v6713_v44 = vadd.f32 %v6712_v50, %v6711_v14 }
0x12b6   : > { %v5844_v5 = vadd.f32 %v5788_v28, %v9823_v58  ;;  %v5791_v18 = vadd.f32 %v6713_v44, %v10232_v12 }
0x12b8   : > { %5860 = vst [vmem:[%s10239_s26 + $0x10] sm:$0xff] %v5844_v5  ;;  %v5845_v56 = vadd.f32 %v5791_v18, %v9827_v25  ;;  %v6714_v38 = vpop.f32.mrb[168].mxu0 }
0x12b9   : > { %v6715_v37 = vpop.f32.mrb[169].mxu0 }
0x12ba   : > { %5861 = vst [vmem:[%s10239_s26 + $0x18] sm:$0xff] %v5845_v56  ;;  %v6716_v55 = vadd.f32 %v6715_v37, %v6714_v38  ;;  %v6717_v3 = vpop.f32.mrb[170].mxu0 }
0x12bb   : > { %v6718_v57 = vpop.f32.mrb[171].mxu0 }
0x12bc   : > { %v5796_v30 = vadd.f32 %v6716_v55, %v10232_v12  ;;  %v6719_v62 = vadd.f32 %v6718_v57, %v6717_v3 }
0x12be   : > { %v5846_v2 = vadd.f32 %v5796_v30, %v9833_v51  ;;  %v5799_v58 = vadd.f32 %v6719_v62, %v10232_v12 }
0x12c0   : > { %5862 = vst [vmem:[%s10239_s26 + $0x20] sm:$0xff] %v5846_v2  ;;  %v5847_v20 = vadd.f32 %v5799_v58, %v9839_v1  ;;  %v6720_v8 = vpop.f32.mrb[172].mxu0 }
0x12c1   : > { %v6721_v25 = vpop.f32.mrb[173].mxu0 }
0x12c2   : > { %5863 = vst [vmem:[%s10239_s26 + $0x28] sm:$0xff] %v5847_v20  ;;  %v6722_v29 = vadd.f32 %v6721_v25, %v6720_v8  ;;  %v6723_v17 = vpop.f32.mrb[174].mxu0 }
0x12c3   : > { %v6724_v43 = vpop.f32.mrb[175].mxu0 }
0x12c4   : > { %v5804_v6 = vadd.f32 %v6722_v29, %v10232_v12  ;;  %v6725_v40 = vadd.f32 %v6724_v43, %v6723_v17 }
0x12c6   : > { %v5848_v26 = vadd.f32 %v5804_v6, %v9843_v52  ;;  %v5807_v51 = vadd.f32 %v6725_v40, %v10232_v12 }
0x12c8   : > { %5864 = vst [vmem:[%s10239_s26 + $0x30] sm:$0xff] %v5848_v26  ;;  %v5849_v10 = vadd.f32 %v5807_v51, %v9847_v7  ;;  %v6726_v39 = vpop.f32.mrb[176].mxu0 }
0x12c9   : > { %v6727_v1 = vpop.f32.mrb[177].mxu0 }
0x12ca   : > { %5865 = vst [vmem:[%s10239_s26 + $0x38] sm:$0xff] %v5849_v10  ;;  %v6728_v36 = vadd.f32 %v6727_v1, %v6726_v39  ;;  %v6729_v27 = vpop.f32.mrb[178].mxu0 }
0x12cb   : > { %v6730_v47 = vpop.f32.mrb[179].mxu0 }
0x12cc   : > { %v5812_v24 = vadd.f32 %v6728_v36, %v10232_v12  ;;  %v6731_v13 = vadd.f32 %v6730_v47, %v6729_v27 }
0x12ce   : > { %v5850_v4 = vadd.f32 %v5812_v24, %v9853_v53  ;;  %v5815_v52 = vadd.f32 %v6731_v13, %v10232_v12 }
0x12d0   : > { %5866 = vst [vmem:[%s10239_s26 + $0x40] sm:$0xff] %v5850_v4  ;;  %v5851_v60 = vadd.f32 %v5815_v52, %v9859_v41  ;;  %v6732_v49 = vpop.f32.mrb[180].mxu0 }
0x12d1   : > { %v6733_v7 = vpop.f32.mrb[181].mxu0 }
0x12d2   : > { %5867 = vst [vmem:[%s10239_s26 + $0x48] sm:$0xff] %v5851_v60  ;;  %v6734_v61 = vadd.f32 %v6733_v7, %v6732_v49  ;;  %v6735_v11 = vpop.f32.mrb[182].mxu0 }
0x12d3   : > { %v6736_v33 = vpop.f32.mrb[183].mxu0 }
0x12d4   : > { %v5820_v32 = vadd.f32 %v6734_v61, %v10232_v12  ;;  %v6737_v45 = vadd.f32 %v6736_v33, %v6735_v11 }
0x12d6   : > { %v5852_v34 = vadd.f32 %v5820_v32, %v9863_v63  ;;  %v5823_v53 = vadd.f32 %v6737_v45, %v10232_v12 }
0x12d8   : > { %5868 = vst [vmem:[%s10239_s26 + $0x50] sm:$0xff] %v5852_v34  ;;  %v5853_v15 = vadd.f32 %v5823_v53, %v9867_v42  ;;  %v6738_v19 = vpop.f32.mrb[184].mxu0 }
0x12d9   : > { %v6739_v41 = vpop.f32.mrb[185].mxu0 }
0x12da   : > { %5869 = vst [vmem:[%s10239_s26 + $0x58] sm:$0xff] %v5853_v15  ;;  %v6740_v22 = vadd.f32 %v6739_v41, %v6738_v19  ;;  %v6741_v59 = vpop.f32.mrb[186].mxu0 }
0x12db   : > { %v6742_v0 = vpop.f32.mrb[187].mxu0 }
0x12dc   : > { %v5828_v46 = vadd.f32 %v6740_v22, %v10232_v12  ;;  %v6743_v35 = vadd.f32 %v6742_v0, %v6741_v59 }
0x12de   : > { %v5854_v48 = vadd.f32 %v5828_v46, %v9873_v23  ;;  %v5831_v63 = vadd.f32 %v6743_v35, %v10232_v12 }
0x12e0   : > { %5870 = vst [vmem:[%s10239_s26 + $0x60] sm:$0xff] %v5854_v48  ;;  %v5855_v9 = vadd.f32 %v5831_v63, %v9879_v21  ;;  %v6744_v42 = vpop.f32.mrb[188].mxu0 }
0x12e1   : > { %v6745_v54 = vpop.f32.mrb[189].mxu0 }
0x12e2   : > { %5871 = vst [vmem:[%s10239_s26 + $0x68] sm:$0xff] %v5855_v9  ;;  %v6746_v14 = vadd.f32 %v6745_v54, %v6744_v42  ;;  %v6747_v50 = vpop.f32.mrb[190].mxu0 }
0x12e3   : > { %v6748_v28 = vpop.f32.mrb[191].mxu0 }
0x12e4   : > { %v5836_v44 = vadd.f32 %v6746_v14, %v10232_v12  ;;  %v6749_v5 = vadd.f32 %v6748_v28, %v6747_v50 }
0x12e6   : > { %v5856_v23 = vadd.f32 %v5836_v44, %v9883_v16  ;;  %v5839_v18 = vadd.f32 %v6749_v5, %v10232_v12 }
0x12e8   : > { %5872 = vst [vmem:[%s10239_s26 + $0x70] sm:$0xff] %v5856_v23  ;;  %v5857_v21 = vadd.f32 %v5839_v18, %v9887_v31 }
0x12ea   : > { %5873 = vst [vmem:[%s10239_s26 + $0x78] sm:$0xff] %v5857_v21 }
0x12eb   : > { %8149 = shalt.err (!%p8146_p3)
}
0x12ec   : > { %s8150_s20 = scalar_lea.hbm %s10288_s28, 2048  ;;  %s8154_s27 = scalar_lea.hbm %s10352_s14, 4096 }
0x12ed   : > { %p8151_p4 = scmp.ne.s32.totalorder %s10288_s28, %s8150_s20  ;;  %p8155_p9 = scmp.lt.u32.totalorder %s10288_s28, %s10352_s14 }
0x12ee   : > { %p8156_p10 = scmp.lt.u32.totalorder %s8154_s27, %s8150_s20  ;;  %p8158_p12 = scmp.lt.u32.totalorder %s8150_s20, %s10288_s28 }
0x12ef   : > { %p8152_p7 = pnand %p8151_p4, %p8317_p5 }
0x12f0   : > { %p8157_p11 = por %p8156_p10, %p8155_p9 }
0x12f1   : > { %p8153_p8 = pneg %p8152_p7 }
0x12f2   : > { %p8159_p13 = por %p8158_p12, %p8157_p11 }
0x12f4   : > { %p8160_p0 = pnand %p8159_p13, %p8153_p8 }
0x12f6   : > { %8163 = shalt.err (!%p8160_p0)
}
0x12f7   : > { %s8202_s21 = smov 128   ;;  %s8203_s0 = smov 8  }
0x12f8   : > { %7550 = dma.vmem_to_hbm [thread:$0]  (%p8317_p5), %s10290_s18, 2048, %s10288_s28, %s10297_s17, %s8202_s21, %s8202_s21, %s8203_s0  }
0x12f9 PF: > { %p7556_p1 = scmp.ge.s32.totalorder %s8198_s16, 2  ;;  %s5903_s26 = sand.u32 1, %s8186_s29  }
0x12fa   : > { %s5904_s20 = scalar_lea.sflag [#allocation3], %s5903_s26 }
0x12fb   : > { %p7553_p2 = pnand %p7556_p1, %p8321_p6 }
0x12fd   : > { %8181 = dma.done.wait (!%p7553_p2), %s5904_s20, 2048  }
0x12fe   : > { %8183 = vsyncadd (!%p7553_p2), %s5904_s20, 4294965248  ;;  %s10410_s22 = sld [smem:[#allocation5_spill]]  ;;  %p24_p3 = scmp.ge.s32.totalorder %s8304_s19, 4  }
0x12ff   : > { %s10411_s29 = smov %s8190_s30  ;;  %s10412_s30 = smov %s8194_s15 }
0x1300   : > { %s10414_s16 = smov %s8304_s19  ;;  %26 = sbr.rel (!%p24_p3) target bundleno = 6 (0x6), region = 123 }
0x1304   : > { %s10413_s15 = smov %s10410_s22 }
0x1307   :  { %5909 = vsyncpa [#allocation3], 1 }
0x1308   :  { %5911 = vsyncpa [#allocation3 + $0x1], 1 }

</bundles_post_ra>
